<compile_context>
chip_gen: v7x
topology: tpu7x:2x2x1
jax: 0.10.0
libtpu: 0.0.40
codegen_flags: <defaults>
</compile_context>

<pallas_src>
import jax
import jax.numpy as jnp
from jax.experimental import pallas as pl
from jax.experimental.pallas import tpu as pltpu

HID = 16                              # GraphConv hidden width (module hardcodes 16)
JK_NUM_LAYERS = 4                     # JumpingKnowledge(num_layers=4)
LSTM_H = (JK_NUM_LAYERS * HID) // 2   # = 32, per DGL/PyG JumpingKnowledge 'lstm'


# ---------------------------------------------------------------------------
# Fused kernel: GraphConv1 -> GraphConv2 -> JK-LSTM -> APPNP -> Linear
#               -> log_softmax, all in one VMEM-resident pass over adj_hat.
# ---------------------------------------------------------------------------
def _gcn_jknet_fused_kernel(adj_ref, x_ref,
                            w1_ref, b1_ref, w2_ref, b2_ref,
                            wih_f_ref, whh_f_ref, b_f_ref,
                            wih_b_ref, whh_b_ref, b_b_ref,
                            att_fw_ref, att_bw_ref,
                            wlin_ref, blin_ref,
                            o_ref):
    f32 = jnp.float32
    adj = adj_ref[...]                       # (N, N) bf16 — read from HBM once

    def propagate(feat_f32):
        # adj_hat @ feat with bf16 MXU operands, f32 accumulation.
        return jnp.dot(adj, feat_f32.astype(jnp.bfloat16),
                       preferred_element_type=f32)

    # --- GraphConv1: h1 = relu(adj @ (x @ W1) + b1) ---
    xw = jnp.dot(x_ref[...], w1_ref[...], preferred_element_type=f32)
    h1 = jnp.maximum(propagate(xw) + b1_ref[...], 0.0)
    # dropout(p=0.5) -> identity (eval mode)

    # --- GraphConv2: h2 = relu(adj @ (h1 @ W2) + b2) ---
    h1w = jnp.dot(h1, w2_ref[...], preferred_element_type=f32)
    h2 = jnp.maximum(propagate(h1w) + b2_ref[...], 0.0)
    # dropout(p=0.5) -> identity (eval mode)

    # --- JumpingKnowledge mode='lstm' over the 2-element list [h1, h2] ---
    n = h1.shape[0]
    zeros_h = jnp.zeros((n, LSTM_H), f32)

    def lstm_step(x, h_prev, c_prev, wih_r, whh_r, b_r):
        # Per-gate, lane-aligned dots; gate order follows PyTorch: i, f, g, o.
        def gate(k):
            return (jnp.dot(x, wih_r[k], preferred_element_type=f32)
                    + jnp.dot(h_prev, whh_r[k], preferred_element_type=f32)
                    + b_r[k])
        i = jax.nn.sigmoid(gate(0))
        f = jax.nn.sigmoid(gate(1))
        g = jnp.tanh(gate(2))
        o = jax.nn.sigmoid(gate(3))
        c = f * c_prev + i * g
        h = o * jnp.tanh(c)
        return h, c

    # forward direction over sequence [h1, h2]
    hf0, cf0 = lstm_step(h1, zeros_h, zeros_h, wih_f_ref, whh_f_ref, b_f_ref)
    hf1, _ = lstm_step(h2, hf0, cf0, wih_f_ref, whh_f_ref, b_f_ref)
    # backward direction over reversed sequence [h2, h1]
    hb1, cb1 = lstm_step(h2, zeros_h, zeros_h, wih_b_ref, whh_b_ref, b_b_ref)
    hb0, _ = lstm_step(h1, hb1, cb1, wih_b_ref, whh_b_ref, b_b_ref)

    a_fw = att_fw_ref[...]        # (1, LSTM_H): attention weights on forward h
    a_bw = att_bw_ref[...]        # (1, LSTM_H): attention weights on backward h
    # NOTE: the attention Linear's scalar bias is shared by both layer
    # positions and therefore cancels in the 2-way softmax -> omitted.
    s0 = (jnp.sum(hf0 * a_fw, axis=-1, keepdims=True)
          + jnp.sum(hb0 * a_bw, axis=-1, keepdims=True))
    s1 = (jnp.sum(hf1 * a_fw, axis=-1, keepdims=True)
          + jnp.sum(hb1 * a_bw, axis=-1, keepdims=True))
    m = jnp.maximum(s0, s1)
    e0 = jnp.exp(s0 - m)
    e1 = jnp.exp(s1 - m)
    inv = 1.0 / (e0 + e1)
    h_jk = (e0 * inv) * h1 + (e1 * inv) * h2             # (N, HID)

    # --- APPNP(k=1, alpha=0) + Linear(16, C) + log_softmax, re-associated:
    #     (adj @ h) @ W == adj @ (h @ W)  -> propagate only C columns.
    hw = jnp.dot(h_jk, wlin_ref[...], preferred_element_type=f32)    # (N, C)
    logits = propagate(hw) + blin_ref[...]
    mx = jnp.max(logits, axis=-1, keepdims=True)
    z = logits - mx
    lse = jnp.log(jnp.sum(jnp.exp(z), axis=-1, keepdims=True))
    o_ref[...] = z - lse


# ---------------------------------------------------------------------------
# Host-side repacking of PyTorch-layout LSTM parameters into per-gate,
# pre-transposed kernel layout.
# ---------------------------------------------------------------------------
def _gates_w(w_torch, in_dim):
    # PyTorch (4H, in) gate-stacked weight -> (4, in, H), gate order i,f,g,o.
    return jnp.transpose(w_torch.reshape(4, LSTM_H, in_dim), (0, 2, 1))


def _gates_b(b_ih, b_hh):
    # PyTorch b_ih + b_hh -> (4, 1, H) per-gate combined bias.
    return (b_ih + b_hh).reshape(4, 1, LSTM_H)


def gcn_jknet_forward(adj_hat, feat, params):
    """adj_hat: (N, N) float32 dense normalized adjacency with self loops."""
    n = adj_hat.shape[0]
    c = params["w_lin"].shape[1]

    adj_bf16 = adj_hat.astype(jnp.bfloat16)   # halve the dominant HBM stream

    wih_f = _gates_w(params["lstm_wih_f"], HID)
    whh_f = _gates_w(params["lstm_whh_f"], LSTM_H)
    b_f = _gates_b(params["lstm_bih_f"], params["lstm_bhh_f"])
    wih_b = _gates_w(params["lstm_wih_b"], HID)
    whh_b = _gates_w(params["lstm_whh_b"], LSTM_H)
    b_b = _gates_b(params["lstm_bih_b"], params["lstm_bhh_b"])
    att_fw = params["att_w"][:, :LSTM_H]
    att_bw = params["att_w"][:, LSTM_H:]

    # Whole problem (bf16 adj + the 16-wide intermediates) stays VMEM-resident;
    # set the scoped VMEM limit explicitly (v5e default is only 16 MiB), but
    # stay well below v7x's 64 MiB physical VMEM for the shapes used here.
    adj_bytes = 2 * n * n
    vmem_limit = int(min(96 * 1024 * 1024, max(32 * 1024 * 1024, 3 * adj_bytes)))

    return pl.pallas_call(
        _gcn_jknet_fused_kernel,
        out_shape=jax.ShapeDtypeStruct((n, c), jnp.float32),
        compiler_params=pltpu.CompilerParams(vmem_limit_bytes=vmem_limit),
    )(adj_bf16, feat,
      params["w1"], params["b1"].reshape(1, -1),
      params["w2"], params["b2"].reshape(1, -1),
      wih_f, whh_f, b_f,
      wih_b, whh_b, b_b,
      att_fw, att_bw,
      params["w_lin"], params["b_lin"].reshape(1, -1))


# ---------------------------------------------------------------------------
# Pure-JAX reference (f32 everywhere, PyTorch-layout params) for validation.
# ---------------------------------------------------------------------------
def reference_forward(adj_hat, feat, params):
    def gcn(h, w, b):
        return jnp.maximum(adj_hat @ (h @ w) + b, 0.0)

    h1 = gcn(feat, params["w1"], params["b1"])
    h2 = gcn(h1, params["w2"], params["b2"])

    def lstm_dir(seq, wih, whh, bih, bhh):
        H = LSTM_H
        n = seq[0].shape[0]
        h = jnp.zeros((n, H), jnp.float32)
        c = jnp.zeros((n, H), jnp.float32)
        b = bih + bhh
        outs = []
        for x in seq:
            gates = x @ wih.T + h @ whh.T + b
            i = jax.nn.sigmoid(gates[:, 0 * H:1 * H])
            f = jax.nn.sigmoid(gates[:, 1 * H:2 * H])
            g = jnp.tanh(gates[:, 2 * H:3 * H])
            o = jax.nn.sigmoid(gates[:, 3 * H:4 * H])
            c = f * c + i * g
            h = o * jnp.tanh(c)
            outs.append(h)
        return outs

    hf = lstm_dir([h1, h2], params["lstm_wih_f"], params["lstm_whh_f"],
                  params["lstm_bih_f"], params["lstm_bhh_f"])
    hb = lstm_dir([h2, h1], params["lstm_wih_b"], params["lstm_whh_b"],
                  params["lstm_bih_b"], params["lstm_bhh_b"])
    # bidirectional output at timestep t = concat(h_fwd[t], h_bwd[T-1-t])
    cat0 = jnp.concatenate([hf[0], hb[1]], axis=-1)
    cat1 = jnp.concatenate([hf[1], hb[0]], axis=-1)
    s0 = cat0 @ params["att_w"].T + params["att_b"]
    s1 = cat1 @ params["att_w"].T + params["att_b"]
    a = jax.nn.softmax(jnp.concatenate([s0, s1], axis=-1), axis=-1)
    h = a[:, 0:1] * h1 + a[:, 1:2] * h2
    h = adj_hat @ h                                # APPNP(k=1, alpha=0)
    logits = h @ params["w_lin"] + params["b_lin"]
    return jax.nn.log_softmax(logits, axis=-1)


# ---------------------------------------------------------------------------
# Parameter construction (PyTorch-layout, including PyTorch LSTM gate order).
# ---------------------------------------------------------------------------
def make_params(key, f_in, num_classes):
    ks = jax.random.split(key, 14)
    s = 0.1

    def rnd(k, shape):
        return (s * jax.random.normal(k, shape)).astype(jnp.float32)

    return {
        # GraphConv1 / GraphConv2 (weights stored as (in, out))
        "w1": rnd(ks[0], (f_in, HID)), "b1": rnd(ks[1], (HID,)),
        "w2": rnd(ks[2], (HID, HID)), "b2": rnd(ks[3], (HID,)),
        # bidirectional LSTM of JumpingKnowledge, PyTorch layout:
        # weight_ih: (4H, in), weight_hh: (4H, H), gate order [i, f, g, o]
        "lstm_wih_f": rnd(ks[4], (4 * LSTM_H, HID)),
        "lstm_whh_f": rnd(ks[5], (4 * LSTM_H, LSTM_H)),
        "lstm_bih_f": rnd(ks[6], (4 * LSTM_H,)),
        "lstm_bhh_f": rnd(ks[7], (4 * LSTM_H,)),
        "lstm_wih_b": rnd(ks[8], (4 * LSTM_H, HID)),
        "lstm_whh_b": rnd(ks[9], (4 * LSTM_H, LSTM_H)),
        "lstm_bih_b": rnd(ks[10], (4 * LSTM_H,)),
        "lstm_bhh_b": rnd(ks[11], (4 * LSTM_H,)),
        # attention Linear(2*LSTM_H, 1); nonzero bias (cancels in the softmax)
        "att_w": rnd(ks[12], (1, 2 * LSTM_H)),
        "att_b": jnp.array([0.25], jnp.float32),
        # lin1: Linear(16, num_classes), stored as (in, out)
        "w_lin": rnd(ks[13], (HID, num_classes)),
        "b_lin": jnp.zeros((num_classes,), jnp.float32),
    }


if __name__ == "__main__":
    key = jax.random.PRNGKey(0)
    k_graph, k_feat, k_params = jax.random.split(key, 3)

    N = 64           # number of graph nodes
    F_IN = 8         # node feature dimension (graph.ndata['feat'].shape[1])
    NUM_CLASSES = 4  # len(g.ndata['label'].unique())

    # Synthetic undirected graph -> dense symmetric-normalized adjacency with
    # self-loops (dgl.add_self_loop + GraphConv/APPNP 'both' normalization).
    a = (jax.random.uniform(k_graph, (N, N)) < 0.10).astype(jnp.float32)
    a = jnp.maximum(a, a.T)
    a = a * (1.0 - jnp.eye(N, dtype=jnp.float32)) + jnp.eye(N, dtype=jnp.float32)
    deg = jnp.sum(a, axis=1)
    d_inv_sqrt = 1.0 / jnp.sqrt(jnp.maximum(deg, 1.0))
    adj_hat = (a * d_inv_sqrt[:, None] * d_inv_sqrt[None, :]).astype(jnp.float32)

    feat = jax.random.normal(k_feat, (N, F_IN), dtype=jnp.float32)
    params = make_params(k_params, F_IN, NUM_CLASSES)

    out = jax.jit(gcn_jknet_forward)(adj_hat, feat, params)
    out = jax.block_until_ready(out)

    assert out.shape == (N, NUM_CLASSES)
    assert bool(jnp.all(jnp.isfinite(out)))
    # rows of log_softmax must exp-sum to 1
    assert bool(jnp.allclose(jnp.sum(jnp.exp(out), axis=1), 1.0, atol=1e-4))

    # Validate against the f32 pure-JAX reference (bf16 adjacency -> loose tol).
    ref = reference_forward(adj_hat, feat, params)
    assert bool(jnp.allclose(out, ref, atol=2e-2)), float(jnp.max(jnp.abs(out - ref)))

    print("KERNEL_OK")
</pallas_src>

<mosaic_0001>
module attributes {stable_mosaic.version = 11 : i64} {
  func.func @_gcn_jknet_fused_kernel(%arg0: memref<64x64xbf16, #tpu.memory_space<vmem>>, %arg1: memref<64x8xf32, #tpu.memory_space<vmem>>, %arg2: memref<8x16xf32, #tpu.memory_space<vmem>>, %arg3: memref<1x16xf32, #tpu.memory_space<vmem>>, %arg4: memref<16x16xf32, #tpu.memory_space<vmem>>, %arg5: memref<1x16xf32, #tpu.memory_space<vmem>>, %arg6: memref<4x16x32xf32, #tpu.memory_space<vmem>>, %arg7: memref<4x32x32xf32, #tpu.memory_space<vmem>>, %arg8: memref<4x1x32xf32, #tpu.memory_space<vmem>>, %arg9: memref<4x16x32xf32, #tpu.memory_space<vmem>>, %arg10: memref<4x32x32xf32, #tpu.memory_space<vmem>>, %arg11: memref<4x1x32xf32, #tpu.memory_space<vmem>>, %arg12: memref<1x32xf32, #tpu.memory_space<vmem>>, %arg13: memref<1x32xf32, #tpu.memory_space<vmem>>, %arg14: memref<16x4xf32, #tpu.memory_space<vmem>>, %arg15: memref<1x4xf32, #tpu.memory_space<vmem>>, %arg16: memref<64x4xf32, #tpu.memory_space<vmem>>) attributes {dimension_semantics = [], scalar_prefetch = 0 : i64, scratch_operands = 0 : i64, tpu.core_type = #tpu.core_type<tc>} {
    %c0 = arith.constant 0 : index
    %c0_0 = arith.constant 0 : index
    %0 = vector.load %arg0[%c0, %c0_0] : memref<64x64xbf16, #tpu.memory_space<vmem>>, vector<64x64xbf16>
    %c0_1 = arith.constant 0 : index
    %c0_2 = arith.constant 0 : index
    %1 = vector.load %arg1[%c0_1, %c0_2] : memref<64x8xf32, #tpu.memory_space<vmem>>, vector<64x8xf32>
    %c0_3 = arith.constant 0 : index
    %c0_4 = arith.constant 0 : index
    %2 = vector.load %arg2[%c0_3, %c0_4] : memref<8x16xf32, #tpu.memory_space<vmem>>, vector<8x16xf32>
    %cst = arith.constant dense<0.000000e+00> : vector<64x16xf32>
    %3 = tpu.matmul %1, %2, %cst {dimension_numbers = #tpu.dot_dimension_numbers<[1], [0], [0], [1], [0, 0, 1, 1], [], []>} : vector<64x8xf32>, vector<8x16xf32>, vector<64x16xf32> -> vector<64x16xf32>
    %4 = arith.truncf %3 : vector<64x16xf32> to vector<64x16xbf16>
    %cst_5 = arith.constant dense<0.000000e+00> : vector<64x16xf32>
    %5 = tpu.matmul %0, %4, %cst_5 {dimension_numbers = #tpu.dot_dimension_numbers<[1], [0], [0], [1], [0, 0, 1, 1], [], []>} : vector<64x64xbf16>, vector<64x16xbf16>, vector<64x16xf32> -> vector<64x16xf32>
    %c0_6 = arith.constant 0 : index
    %c0_7 = arith.constant 0 : index
    %6 = vector.load %arg3[%c0_6, %c0_7] : memref<1x16xf32, #tpu.memory_space<vmem>>, vector<1x16xf32>
    %7 = vector.broadcast %6 : vector<1x16xf32> to vector<64x16xf32>
    %8 = arith.addf %5, %7 : vector<64x16xf32>
    %cst_8 = arith.constant 0.000000e+00 : f32
    %9 = vector.broadcast %cst_8 : f32 to vector<64x16xf32>
    %10 = arith.maximumf %8, %9 : vector<64x16xf32>
    %c0_9 = arith.constant 0 : index
    %c0_10 = arith.constant 0 : index
    %11 = vector.load %arg4[%c0_9, %c0_10] : memref<16x16xf32, #tpu.memory_space<vmem>>, vector<16x16xf32>
    %cst_11 = arith.constant dense<0.000000e+00> : vector<64x16xf32>
    %12 = tpu.matmul %10, %11, %cst_11 {dimension_numbers = #tpu.dot_dimension_numbers<[1], [0], [0], [1], [0, 0, 1, 1], [], []>} : vector<64x16xf32>, vector<16x16xf32>, vector<64x16xf32> -> vector<64x16xf32>
    %13 = arith.truncf %12 : vector<64x16xf32> to vector<64x16xbf16>
    %cst_12 = arith.constant dense<0.000000e+00> : vector<64x16xf32>
    %14 = tpu.matmul %0, %13, %cst_12 {dimension_numbers = #tpu.dot_dimension_numbers<[1], [0], [0], [1], [0, 0, 1, 1], [], []>} : vector<64x64xbf16>, vector<64x16xbf16>, vector<64x16xf32> -> vector<64x16xf32>
    %c0_13 = arith.constant 0 : index
    %c0_14 = arith.constant 0 : index
    %15 = vector.load %arg5[%c0_13, %c0_14] : memref<1x16xf32, #tpu.memory_space<vmem>>, vector<1x16xf32>
    %16 = vector.broadcast %15 : vector<1x16xf32> to vector<64x16xf32>
    %17 = arith.addf %14, %16 : vector<64x16xf32>
    %cst_15 = arith.constant 0.000000e+00 : f32
    %18 = vector.broadcast %cst_15 : f32 to vector<64x16xf32>
    %19 = arith.maximumf %17, %18 : vector<64x16xf32>
    %cst_16 = arith.constant 0.000000e+00 : f32
    %20 = vector.broadcast %cst_16 : f32 to vector<64x32xf32>
    %c0_17 = arith.constant 0 : index
    %c0_18 = arith.constant 0 : index
    %c0_19 = arith.constant 0 : index
    %21 = vector.load %arg6[%c0_17, %c0_18, %c0_19] : memref<4x16x32xf32, #tpu.memory_space<vmem>>, vector<1x16x32xf32>
    %22 = vector.shape_cast %21 : vector<1x16x32xf32> to vector<16x32xf32>
    %cst_20 = arith.constant dense<0.000000e+00> : vector<64x32xf32>
    %23 = tpu.matmul %10, %22, %cst_20 {dimension_numbers = #tpu.dot_dimension_numbers<[1], [0], [0], [1], [0, 0, 1, 1], [], []>} : vector<64x16xf32>, vector<16x32xf32>, vector<64x32xf32> -> vector<64x32xf32>
    %c0_21 = arith.constant 0 : index
    %c0_22 = arith.constant 0 : index
    %c0_23 = arith.constant 0 : index
    %24 = vector.load %arg7[%c0_21, %c0_22, %c0_23] : memref<4x32x32xf32, #tpu.memory_space<vmem>>, vector<1x32x32xf32>
    %25 = vector.shape_cast %24 : vector<1x32x32xf32> to vector<32x32xf32>
    %cst_24 = arith.constant dense<0.000000e+00> : vector<64x32xf32>
    %26 = tpu.matmul %20, %25, %cst_24 {dimension_numbers = #tpu.dot_dimension_numbers<[1], [0], [0], [1], [0, 0, 1, 1], [], []>} : vector<64x32xf32>, vector<32x32xf32>, vector<64x32xf32> -> vector<64x32xf32>
    %27 = arith.addf %23, %26 : vector<64x32xf32>
    %c0_25 = arith.constant 0 : index
    %c0_26 = arith.constant 0 : index
    %c0_27 = arith.constant 0 : index
    %28 = vector.load %arg8[%c0_25, %c0_26, %c0_27] : memref<4x1x32xf32, #tpu.memory_space<vmem>>, vector<1x1x32xf32>
    %29 = vector.shape_cast %28 : vector<1x1x32xf32> to vector<1x32xf32>
    %30 = vector.broadcast %29 : vector<1x32xf32> to vector<64x32xf32>
    %31 = arith.addf %27, %30 : vector<64x32xf32>
    %32 = arith.negf %31 : vector<64x32xf32>
    %33 = math.exp %32 : vector<64x32xf32>
    %cst_28 = arith.constant 1.000000e+00 : f32
    %34 = vector.broadcast %cst_28 : f32 to vector<64x32xf32>
    %35 = arith.addf %34, %33 : vector<64x32xf32>
    %36 = arith.divf %34, %35 : vector<64x32xf32>
    %c1 = arith.constant 1 : index
    %c0_29 = arith.constant 0 : index
    %c0_30 = arith.constant 0 : index
    %37 = vector.load %arg6[%c1, %c0_29, %c0_30] : memref<4x16x32xf32, #tpu.memory_space<vmem>>, vector<1x16x32xf32>
    %38 = vector.shape_cast %37 : vector<1x16x32xf32> to vector<16x32xf32>
    %cst_31 = arith.constant dense<0.000000e+00> : vector<64x32xf32>
    %39 = tpu.matmul %10, %38, %cst_31 {dimension_numbers = #tpu.dot_dimension_numbers<[1], [0], [0], [1], [0, 0, 1, 1], [], []>} : vector<64x16xf32>, vector<16x32xf32>, vector<64x32xf32> -> vector<64x32xf32>
    %c1_32 = arith.constant 1 : index
    %c0_33 = arith.constant 0 : index
    %c0_34 = arith.constant 0 : index
    %40 = vector.load %arg7[%c1_32, %c0_33, %c0_34] : memref<4x32x32xf32, #tpu.memory_space<vmem>>, vector<1x32x32xf32>
    %41 = vector.shape_cast %40 : vector<1x32x32xf32> to vector<32x32xf32>
    %cst_35 = arith.constant dense<0.000000e+00> : vector<64x32xf32>
    %42 = tpu.matmul %20, %41, %cst_35 {dimension_numbers = #tpu.dot_dimension_numbers<[1], [0], [0], [1], [0, 0, 1, 1], [], []>} : vector<64x32xf32>, vector<32x32xf32>, vector<64x32xf32> -> vector<64x32xf32>
    %43 = arith.addf %39, %42 : vector<64x32xf32>
    %c1_36 = arith.constant 1 : index
    %c0_37 = arith.constant 0 : index
    %c0_38 = arith.constant 0 : index
    %44 = vector.load %arg8[%c1_36, %c0_37, %c0_38] : memref<4x1x32xf32, #tpu.memory_space<vmem>>, vector<1x1x32xf32>
    %45 = vector.shape_cast %44 : vector<1x1x32xf32> to vector<1x32xf32>
    %46 = vector.broadcast %45 : vector<1x32xf32> to vector<64x32xf32>
    %47 = arith.addf %43, %46 : vector<64x32xf32>
    %48 = arith.negf %47 : vector<64x32xf32>
    %49 = math.exp %48 : vector<64x32xf32>
    %cst_39 = arith.constant 1.000000e+00 : f32
    %50 = vector.broadcast %cst_39 : f32 to vector<64x32xf32>
    %51 = arith.addf %50, %49 : vector<64x32xf32>
    %52 = arith.divf %50, %51 : vector<64x32xf32>
    %c2 = arith.constant 2 : index
    %c0_40 = arith.constant 0 : index
    %c0_41 = arith.constant 0 : index
    %53 = vector.load %arg6[%c2, %c0_40, %c0_41] : memref<4x16x32xf32, #tpu.memory_space<vmem>>, vector<1x16x32xf32>
    %54 = vector.shape_cast %53 : vector<1x16x32xf32> to vector<16x32xf32>
    %cst_42 = arith.constant dense<0.000000e+00> : vector<64x32xf32>
    %55 = tpu.matmul %10, %54, %cst_42 {dimension_numbers = #tpu.dot_dimension_numbers<[1], [0], [0], [1], [0, 0, 1, 1], [], []>} : vector<64x16xf32>, vector<16x32xf32>, vector<64x32xf32> -> vector<64x32xf32>
    %c2_43 = arith.constant 2 : index
    %c0_44 = arith.constant 0 : index
    %c0_45 = arith.constant 0 : index
    %56 = vector.load %arg7[%c2_43, %c0_44, %c0_45] : memref<4x32x32xf32, #tpu.memory_space<vmem>>, vector<1x32x32xf32>
    %57 = vector.shape_cast %56 : vector<1x32x32xf32> to vector<32x32xf32>
    %cst_46 = arith.constant dense<0.000000e+00> : vector<64x32xf32>
    %58 = tpu.matmul %20, %57, %cst_46 {dimension_numbers = #tpu.dot_dimension_numbers<[1], [0], [0], [1], [0, 0, 1, 1], [], []>} : vector<64x32xf32>, vector<32x32xf32>, vector<64x32xf32> -> vector<64x32xf32>
    %59 = arith.addf %55, %58 : vector<64x32xf32>
    %c2_47 = arith.constant 2 : index
    %c0_48 = arith.constant 0 : index
    %c0_49 = arith.constant 0 : index
    %60 = vector.load %arg8[%c2_47, %c0_48, %c0_49] : memref<4x1x32xf32, #tpu.memory_space<vmem>>, vector<1x1x32xf32>
    %61 = vector.shape_cast %60 : vector<1x1x32xf32> to vector<1x32xf32>
    %62 = vector.broadcast %61 : vector<1x32xf32> to vector<64x32xf32>
    %63 = arith.addf %59, %62 : vector<64x32xf32>
    %64 = math.tanh %63 : vector<64x32xf32>
    %c3 = arith.constant 3 : index
    %c0_50 = arith.constant 0 : index
    %c0_51 = arith.constant 0 : index
    %65 = vector.load %arg6[%c3, %c0_50, %c0_51] : memref<4x16x32xf32, #tpu.memory_space<vmem>>, vector<1x16x32xf32>
    %66 = vector.shape_cast %65 : vector<1x16x32xf32> to vector<16x32xf32>
    %cst_52 = arith.constant dense<0.000000e+00> : vector<64x32xf32>
    %67 = tpu.matmul %10, %66, %cst_52 {dimension_numbers = #tpu.dot_dimension_numbers<[1], [0], [0], [1], [0, 0, 1, 1], [], []>} : vector<64x16xf32>, vector<16x32xf32>, vector<64x32xf32> -> vector<64x32xf32>
    %c3_53 = arith.constant 3 : index
    %c0_54 = arith.constant 0 : index
    %c0_55 = arith.constant 0 : index
    %68 = vector.load %arg7[%c3_53, %c0_54, %c0_55] : memref<4x32x32xf32, #tpu.memory_space<vmem>>, vector<1x32x32xf32>
    %69 = vector.shape_cast %68 : vector<1x32x32xf32> to vector<32x32xf32>
    %cst_56 = arith.constant dense<0.000000e+00> : vector<64x32xf32>
    %70 = tpu.matmul %20, %69, %cst_56 {dimension_numbers = #tpu.dot_dimension_numbers<[1], [0], [0], [1], [0, 0, 1, 1], [], []>} : vector<64x32xf32>, vector<32x32xf32>, vector<64x32xf32> -> vector<64x32xf32>
    %71 = arith.addf %67, %70 : vector<64x32xf32>
    %c3_57 = arith.constant 3 : index
    %c0_58 = arith.constant 0 : index
    %c0_59 = arith.constant 0 : index
    %72 = vector.load %arg8[%c3_57, %c0_58, %c0_59] : memref<4x1x32xf32, #tpu.memory_space<vmem>>, vector<1x1x32xf32>
    %73 = vector.shape_cast %72 : vector<1x1x32xf32> to vector<1x32xf32>
    %74 = vector.broadcast %73 : vector<1x32xf32> to vector<64x32xf32>
    %75 = arith.addf %71, %74 : vector<64x32xf32>
    %76 = arith.negf %75 : vector<64x32xf32>
    %77 = math.exp %76 : vector<64x32xf32>
    %cst_60 = arith.constant 1.000000e+00 : f32
    %78 = vector.broadcast %cst_60 : f32 to vector<64x32xf32>
    %79 = arith.addf %78, %77 : vector<64x32xf32>
    %80 = arith.divf %78, %79 : vector<64x32xf32>
    %81 = arith.mulf %52, %20 : vector<64x32xf32>
    %82 = arith.mulf %36, %64 : vector<64x32xf32>
    %83 = arith.addf %81, %82 : vector<64x32xf32>
    %84 = math.tanh %83 : vector<64x32xf32>
    %85 = arith.mulf %80, %84 : vector<64x32xf32>
    %c0_61 = arith.constant 0 : index
    %c0_62 = arith.constant 0 : index
    %c0_63 = arith.constant 0 : index
    %86 = vector.load %arg6[%c0_61, %c0_62, %c0_63] : memref<4x16x32xf32, #tpu.memory_space<vmem>>, vector<1x16x32xf32>
    %87 = vector.shape_cast %86 : vector<1x16x32xf32> to vector<16x32xf32>
    %cst_64 = arith.constant dense<0.000000e+00> : vector<64x32xf32>
    %88 = tpu.matmul %19, %87, %cst_64 {dimension_numbers = #tpu.dot_dimension_numbers<[1], [0], [0], [1], [0, 0, 1, 1], [], []>} : vector<64x16xf32>, vector<16x32xf32>, vector<64x32xf32> -> vector<64x32xf32>
    %c0_65 = arith.constant 0 : index
    %c0_66 = arith.constant 0 : index
    %c0_67 = arith.constant 0 : index
    %89 = vector.load %arg7[%c0_65, %c0_66, %c0_67] : memref<4x32x32xf32, #tpu.memory_space<vmem>>, vector<1x32x32xf32>
    %90 = vector.shape_cast %89 : vector<1x32x32xf32> to vector<32x32xf32>
    %cst_68 = arith.constant dense<0.000000e+00> : vector<64x32xf32>
    %91 = tpu.matmul %85, %90, %cst_68 {dimension_numbers = #tpu.dot_dimension_numbers<[1], [0], [0], [1], [0, 0, 1, 1], [], []>} : vector<64x32xf32>, vector<32x32xf32>, vector<64x32xf32> -> vector<64x32xf32>
    %92 = arith.addf %88, %91 : vector<64x32xf32>
    %c0_69 = arith.constant 0 : index
    %c0_70 = arith.constant 0 : index
    %c0_71 = arith.constant 0 : index
    %93 = vector.load %arg8[%c0_69, %c0_70, %c0_71] : memref<4x1x32xf32, #tpu.memory_space<vmem>>, vector<1x1x32xf32>
    %94 = vector.shape_cast %93 : vector<1x1x32xf32> to vector<1x32xf32>
    %95 = vector.broadcast %94 : vector<1x32xf32> to vector<64x32xf32>
    %96 = arith.addf %92, %95 : vector<64x32xf32>
    %97 = arith.negf %96 : vector<64x32xf32>
    %98 = math.exp %97 : vector<64x32xf32>
    %cst_72 = arith.constant 1.000000e+00 : f32
    %99 = vector.broadcast %cst_72 : f32 to vector<64x32xf32>
    %100 = arith.addf %99, %98 : vector<64x32xf32>
    %101 = arith.divf %99, %100 : vector<64x32xf32>
    %c1_73 = arith.constant 1 : index
    %c0_74 = arith.constant 0 : index
    %c0_75 = arith.constant 0 : index
    %102 = vector.load %arg6[%c1_73, %c0_74, %c0_75] : memref<4x16x32xf32, #tpu.memory_space<vmem>>, vector<1x16x32xf32>
    %103 = vector.shape_cast %102 : vector<1x16x32xf32> to vector<16x32xf32>
    %cst_76 = arith.constant dense<0.000000e+00> : vector<64x32xf32>
    %104 = tpu.matmul %19, %103, %cst_76 {dimension_numbers = #tpu.dot_dimension_numbers<[1], [0], [0], [1], [0, 0, 1, 1], [], []>} : vector<64x16xf32>, vector<16x32xf32>, vector<64x32xf32> -> vector<64x32xf32>
    %c1_77 = arith.constant 1 : index
    %c0_78 = arith.constant 0 : index
    %c0_79 = arith.constant 0 : index
    %105 = vector.load %arg7[%c1_77, %c0_78, %c0_79] : memref<4x32x32xf32, #tpu.memory_space<vmem>>, vector<1x32x32xf32>
    %106 = vector.shape_cast %105 : vector<1x32x32xf32> to vector<32x32xf32>
    %cst_80 = arith.constant dense<0.000000e+00> : vector<64x32xf32>
    %107 = tpu.matmul %85, %106, %cst_80 {dimension_numbers = #tpu.dot_dimension_numbers<[1], [0], [0], [1], [0, 0, 1, 1], [], []>} : vector<64x32xf32>, vector<32x32xf32>, vector<64x32xf32> -> vector<64x32xf32>
    %108 = arith.addf %104, %107 : vector<64x32xf32>
    %c1_81 = arith.constant 1 : index
    %c0_82 = arith.constant 0 : index
    %c0_83 = arith.constant 0 : index
    %109 = vector.load %arg8[%c1_81, %c0_82, %c0_83] : memref<4x1x32xf32, #tpu.memory_space<vmem>>, vector<1x1x32xf32>
    %110 = vector.shape_cast %109 : vector<1x1x32xf32> to vector<1x32xf32>
    %111 = vector.broadcast %110 : vector<1x32xf32> to vector<64x32xf32>
    %112 = arith.addf %108, %111 : vector<64x32xf32>
    %113 = arith.negf %112 : vector<64x32xf32>
    %114 = math.exp %113 : vector<64x32xf32>
    %cst_84 = arith.constant 1.000000e+00 : f32
    %115 = vector.broadcast %cst_84 : f32 to vector<64x32xf32>
    %116 = arith.addf %115, %114 : vector<64x32xf32>
    %117 = arith.divf %115, %116 : vector<64x32xf32>
    %c2_85 = arith.constant 2 : index
    %c0_86 = arith.constant 0 : index
    %c0_87 = arith.constant 0 : index
    %118 = vector.load %arg6[%c2_85, %c0_86, %c0_87] : memref<4x16x32xf32, #tpu.memory_space<vmem>>, vector<1x16x32xf32>
    %119 = vector.shape_cast %118 : vector<1x16x32xf32> to vector<16x32xf32>
    %cst_88 = arith.constant dense<0.000000e+00> : vector<64x32xf32>
    %120 = tpu.matmul %19, %119, %cst_88 {dimension_numbers = #tpu.dot_dimension_numbers<[1], [0], [0], [1], [0, 0, 1, 1], [], []>} : vector<64x16xf32>, vector<16x32xf32>, vector<64x32xf32> -> vector<64x32xf32>
    %c2_89 = arith.constant 2 : index
    %c0_90 = arith.constant 0 : index
    %c0_91 = arith.constant 0 : index
    %121 = vector.load %arg7[%c2_89, %c0_90, %c0_91] : memref<4x32x32xf32, #tpu.memory_space<vmem>>, vector<1x32x32xf32>
    %122 = vector.shape_cast %121 : vector<1x32x32xf32> to vector<32x32xf32>
    %cst_92 = arith.constant dense<0.000000e+00> : vector<64x32xf32>
    %123 = tpu.matmul %85, %122, %cst_92 {dimension_numbers = #tpu.dot_dimension_numbers<[1], [0], [0], [1], [0, 0, 1, 1], [], []>} : vector<64x32xf32>, vector<32x32xf32>, vector<64x32xf32> -> vector<64x32xf32>
    %124 = arith.addf %120, %123 : vector<64x32xf32>
    %c2_93 = arith.constant 2 : index
    %c0_94 = arith.constant 0 : index
    %c0_95 = arith.constant 0 : index
    %125 = vector.load %arg8[%c2_93, %c0_94, %c0_95] : memref<4x1x32xf32, #tpu.memory_space<vmem>>, vector<1x1x32xf32>
    %126 = vector.shape_cast %125 : vector<1x1x32xf32> to vector<1x32xf32>
    %127 = vector.broadcast %126 : vector<1x32xf32> to vector<64x32xf32>
    %128 = arith.addf %124, %127 : vector<64x32xf32>
    %129 = math.tanh %128 : vector<64x32xf32>
    %c3_96 = arith.constant 3 : index
    %c0_97 = arith.constant 0 : index
    %c0_98 = arith.constant 0 : index
    %130 = vector.load %arg6[%c3_96, %c0_97, %c0_98] : memref<4x16x32xf32, #tpu.memory_space<vmem>>, vector<1x16x32xf32>
    %131 = vector.shape_cast %130 : vector<1x16x32xf32> to vector<16x32xf32>
    %cst_99 = arith.constant dense<0.000000e+00> : vector<64x32xf32>
    %132 = tpu.matmul %19, %131, %cst_99 {dimension_numbers = #tpu.dot_dimension_numbers<[1], [0], [0], [1], [0, 0, 1, 1], [], []>} : vector<64x16xf32>, vector<16x32xf32>, vector<64x32xf32> -> vector<64x32xf32>
    %c3_100 = arith.constant 3 : index
    %c0_101 = arith.constant 0 : index
    %c0_102 = arith.constant 0 : index
    %133 = vector.load %arg7[%c3_100, %c0_101, %c0_102] : memref<4x32x32xf32, #tpu.memory_space<vmem>>, vector<1x32x32xf32>
    %134 = vector.shape_cast %133 : vector<1x32x32xf32> to vector<32x32xf32>
    %cst_103 = arith.constant dense<0.000000e+00> : vector<64x32xf32>
    %135 = tpu.matmul %85, %134, %cst_103 {dimension_numbers = #tpu.dot_dimension_numbers<[1], [0], [0], [1], [0, 0, 1, 1], [], []>} : vector<64x32xf32>, vector<32x32xf32>, vector<64x32xf32> -> vector<64x32xf32>
    %136 = arith.addf %132, %135 : vector<64x32xf32>
    %c3_104 = arith.constant 3 : index
    %c0_105 = arith.constant 0 : index
    %c0_106 = arith.constant 0 : index
    %137 = vector.load %arg8[%c3_104, %c0_105, %c0_106] : memref<4x1x32xf32, #tpu.memory_space<vmem>>, vector<1x1x32xf32>
    %138 = vector.shape_cast %137 : vector<1x1x32xf32> to vector<1x32xf32>
    %139 = vector.broadcast %138 : vector<1x32xf32> to vector<64x32xf32>
    %140 = arith.addf %136, %139 : vector<64x32xf32>
    %141 = arith.negf %140 : vector<64x32xf32>
    %142 = math.exp %141 : vector<64x32xf32>
    %cst_107 = arith.constant 1.000000e+00 : f32
    %143 = vector.broadcast %cst_107 : f32 to vector<64x32xf32>
    %144 = arith.addf %143, %142 : vector<64x32xf32>
    %145 = arith.divf %143, %144 : vector<64x32xf32>
    %146 = arith.mulf %117, %83 : vector<64x32xf32>
    %147 = arith.mulf %101, %129 : vector<64x32xf32>
    %148 = arith.addf %146, %147 : vector<64x32xf32>
    %149 = math.tanh %148 : vector<64x32xf32>
    %150 = arith.mulf %145, %149 : vector<64x32xf32>
    %c0_108 = arith.constant 0 : index
    %c0_109 = arith.constant 0 : index
    %c0_110 = arith.constant 0 : index
    %151 = vector.load %arg9[%c0_108, %c0_109, %c0_110] : memref<4x16x32xf32, #tpu.memory_space<vmem>>, vector<1x16x32xf32>
    %152 = vector.shape_cast %151 : vector<1x16x32xf32> to vector<16x32xf32>
    %cst_111 = arith.constant dense<0.000000e+00> : vector<64x32xf32>
    %153 = tpu.matmul %19, %152, %cst_111 {dimension_numbers = #tpu.dot_dimension_numbers<[1], [0], [0], [1], [0, 0, 1, 1], [], []>} : vector<64x16xf32>, vector<16x32xf32>, vector<64x32xf32> -> vector<64x32xf32>
    %c0_112 = arith.constant 0 : index
    %c0_113 = arith.constant 0 : index
    %c0_114 = arith.constant 0 : index
    %154 = vector.load %arg10[%c0_112, %c0_113, %c0_114] : memref<4x32x32xf32, #tpu.memory_space<vmem>>, vector<1x32x32xf32>
    %155 = vector.shape_cast %154 : vector<1x32x32xf32> to vector<32x32xf32>
    %cst_115 = arith.constant dense<0.000000e+00> : vector<64x32xf32>
    %156 = tpu.matmul %20, %155, %cst_115 {dimension_numbers = #tpu.dot_dimension_numbers<[1], [0], [0], [1], [0, 0, 1, 1], [], []>} : vector<64x32xf32>, vector<32x32xf32>, vector<64x32xf32> -> vector<64x32xf32>
    %157 = arith.addf %153, %156 : vector<64x32xf32>
    %c0_116 = arith.constant 0 : index
    %c0_117 = arith.constant 0 : index
    %c0_118 = arith.constant 0 : index
    %158 = vector.load %arg11[%c0_116, %c0_117, %c0_118] : memref<4x1x32xf32, #tpu.memory_space<vmem>>, vector<1x1x32xf32>
    %159 = vector.shape_cast %158 : vector<1x1x32xf32> to vector<1x32xf32>
    %160 = vector.broadcast %159 : vector<1x32xf32> to vector<64x32xf32>
    %161 = arith.addf %157, %160 : vector<64x32xf32>
    %162 = arith.negf %161 : vector<64x32xf32>
    %163 = math.exp %162 : vector<64x32xf32>
    %cst_119 = arith.constant 1.000000e+00 : f32
    %164 = vector.broadcast %cst_119 : f32 to vector<64x32xf32>
    %165 = arith.addf %164, %163 : vector<64x32xf32>
    %166 = arith.divf %164, %165 : vector<64x32xf32>
    %c1_120 = arith.constant 1 : index
    %c0_121 = arith.constant 0 : index
    %c0_122 = arith.constant 0 : index
    %167 = vector.load %arg9[%c1_120, %c0_121, %c0_122] : memref<4x16x32xf32, #tpu.memory_space<vmem>>, vector<1x16x32xf32>
    %168 = vector.shape_cast %167 : vector<1x16x32xf32> to vector<16x32xf32>
    %cst_123 = arith.constant dense<0.000000e+00> : vector<64x32xf32>
    %169 = tpu.matmul %19, %168, %cst_123 {dimension_numbers = #tpu.dot_dimension_numbers<[1], [0], [0], [1], [0, 0, 1, 1], [], []>} : vector<64x16xf32>, vector<16x32xf32>, vector<64x32xf32> -> vector<64x32xf32>
    %c1_124 = arith.constant 1 : index
    %c0_125 = arith.constant 0 : index
    %c0_126 = arith.constant 0 : index
    %170 = vector.load %arg10[%c1_124, %c0_125, %c0_126] : memref<4x32x32xf32, #tpu.memory_space<vmem>>, vector<1x32x32xf32>
    %171 = vector.shape_cast %170 : vector<1x32x32xf32> to vector<32x32xf32>
    %cst_127 = arith.constant dense<0.000000e+00> : vector<64x32xf32>
    %172 = tpu.matmul %20, %171, %cst_127 {dimension_numbers = #tpu.dot_dimension_numbers<[1], [0], [0], [1], [0, 0, 1, 1], [], []>} : vector<64x32xf32>, vector<32x32xf32>, vector<64x32xf32> -> vector<64x32xf32>
    %173 = arith.addf %169, %172 : vector<64x32xf32>
    %c1_128 = arith.constant 1 : index
    %c0_129 = arith.constant 0 : index
    %c0_130 = arith.constant 0 : index
    %174 = vector.load %arg11[%c1_128, %c0_129, %c0_130] : memref<4x1x32xf32, #tpu.memory_space<vmem>>, vector<1x1x32xf32>
    %175 = vector.shape_cast %174 : vector<1x1x32xf32> to vector<1x32xf32>
    %176 = vector.broadcast %175 : vector<1x32xf32> to vector<64x32xf32>
    %177 = arith.addf %173, %176 : vector<64x32xf32>
    %178 = arith.negf %177 : vector<64x32xf32>
    %179 = math.exp %178 : vector<64x32xf32>
    %cst_131 = arith.constant 1.000000e+00 : f32
    %180 = vector.broadcast %cst_131 : f32 to vector<64x32xf32>
    %181 = arith.addf %180, %179 : vector<64x32xf32>
    %182 = arith.divf %180, %181 : vector<64x32xf32>
    %c2_132 = arith.constant 2 : index
    %c0_133 = arith.constant 0 : index
    %c0_134 = arith.constant 0 : index
    %183 = vector.load %arg9[%c2_132, %c0_133, %c0_134] : memref<4x16x32xf32, #tpu.memory_space<vmem>>, vector<1x16x32xf32>
    %184 = vector.shape_cast %183 : vector<1x16x32xf32> to vector<16x32xf32>
    %cst_135 = arith.constant dense<0.000000e+00> : vector<64x32xf32>
    %185 = tpu.matmul %19, %184, %cst_135 {dimension_numbers = #tpu.dot_dimension_numbers<[1], [0], [0], [1], [0, 0, 1, 1], [], []>} : vector<64x16xf32>, vector<16x32xf32>, vector<64x32xf32> -> vector<64x32xf32>
    %c2_136 = arith.constant 2 : index
    %c0_137 = arith.constant 0 : index
    %c0_138 = arith.constant 0 : index
    %186 = vector.load %arg10[%c2_136, %c0_137, %c0_138] : memref<4x32x32xf32, #tpu.memory_space<vmem>>, vector<1x32x32xf32>
    %187 = vector.shape_cast %186 : vector<1x32x32xf32> to vector<32x32xf32>
    %cst_139 = arith.constant dense<0.000000e+00> : vector<64x32xf32>
    %188 = tpu.matmul %20, %187, %cst_139 {dimension_numbers = #tpu.dot_dimension_numbers<[1], [0], [0], [1], [0, 0, 1, 1], [], []>} : vector<64x32xf32>, vector<32x32xf32>, vector<64x32xf32> -> vector<64x32xf32>
    %189 = arith.addf %185, %188 : vector<64x32xf32>
    %c2_140 = arith.constant 2 : index
    %c0_141 = arith.constant 0 : index
    %c0_142 = arith.constant 0 : index
    %190 = vector.load %arg11[%c2_140, %c0_141, %c0_142] : memref<4x1x32xf32, #tpu.memory_space<vmem>>, vector<1x1x32xf32>
    %191 = vector.shape_cast %190 : vector<1x1x32xf32> to vector<1x32xf32>
    %192 = vector.broadcast %191 : vector<1x32xf32> to vector<64x32xf32>
    %193 = arith.addf %189, %192 : vector<64x32xf32>
    %194 = math.tanh %193 : vector<64x32xf32>
    %c3_143 = arith.constant 3 : index
    %c0_144 = arith.constant 0 : index
    %c0_145 = arith.constant 0 : index
    %195 = vector.load %arg9[%c3_143, %c0_144, %c0_145] : memref<4x16x32xf32, #tpu.memory_space<vmem>>, vector<1x16x32xf32>
    %196 = vector.shape_cast %195 : vector<1x16x32xf32> to vector<16x32xf32>
    %cst_146 = arith.constant dense<0.000000e+00> : vector<64x32xf32>
    %197 = tpu.matmul %19, %196, %cst_146 {dimension_numbers = #tpu.dot_dimension_numbers<[1], [0], [0], [1], [0, 0, 1, 1], [], []>} : vector<64x16xf32>, vector<16x32xf32>, vector<64x32xf32> -> vector<64x32xf32>
    %c3_147 = arith.constant 3 : index
    %c0_148 = arith.constant 0 : index
    %c0_149 = arith.constant 0 : index
    %198 = vector.load %arg10[%c3_147, %c0_148, %c0_149] : memref<4x32x32xf32, #tpu.memory_space<vmem>>, vector<1x32x32xf32>
    %199 = vector.shape_cast %198 : vector<1x32x32xf32> to vector<32x32xf32>
    %cst_150 = arith.constant dense<0.000000e+00> : vector<64x32xf32>
    %200 = tpu.matmul %20, %199, %cst_150 {dimension_numbers = #tpu.dot_dimension_numbers<[1], [0], [0], [1], [0, 0, 1, 1], [], []>} : vector<64x32xf32>, vector<32x32xf32>, vector<64x32xf32> -> vector<64x32xf32>
    %201 = arith.addf %197, %200 : vector<64x32xf32>
    %c3_151 = arith.constant 3 : index
    %c0_152 = arith.constant 0 : index
    %c0_153 = arith.constant 0 : index
    %202 = vector.load %arg11[%c3_151, %c0_152, %c0_153] : memref<4x1x32xf32, #tpu.memory_space<vmem>>, vector<1x1x32xf32>
    %203 = vector.shape_cast %202 : vector<1x1x32xf32> to vector<1x32xf32>
    %204 = vector.broadcast %203 : vector<1x32xf32> to vector<64x32xf32>
    %205 = arith.addf %201, %204 : vector<64x32xf32>
    %206 = arith.negf %205 : vector<64x32xf32>
    %207 = math.exp %206 : vector<64x32xf32>
    %cst_154 = arith.constant 1.000000e+00 : f32
    %208 = vector.broadcast %cst_154 : f32 to vector<64x32xf32>
    %209 = arith.addf %208, %207 : vector<64x32xf32>
    %210 = arith.divf %208, %209 : vector<64x32xf32>
    %211 = arith.mulf %182, %20 : vector<64x32xf32>
    %212 = arith.mulf %166, %194 : vector<64x32xf32>
    %213 = arith.addf %211, %212 : vector<64x32xf32>
    %214 = math.tanh %213 : vector<64x32xf32>
    %215 = arith.mulf %210, %214 : vector<64x32xf32>
    %c0_155 = arith.constant 0 : index
    %c0_156 = arith.constant 0 : index
    %c0_157 = arith.constant 0 : index
    %216 = vector.load %arg9[%c0_155, %c0_156, %c0_157] : memref<4x16x32xf32, #tpu.memory_space<vmem>>, vector<1x16x32xf32>
    %217 = vector.shape_cast %216 : vector<1x16x32xf32> to vector<16x32xf32>
    %cst_158 = arith.constant dense<0.000000e+00> : vector<64x32xf32>
    %218 = tpu.matmul %10, %217, %cst_158 {dimension_numbers = #tpu.dot_dimension_numbers<[1], [0], [0], [1], [0, 0, 1, 1], [], []>} : vector<64x16xf32>, vector<16x32xf32>, vector<64x32xf32> -> vector<64x32xf32>
    %c0_159 = arith.constant 0 : index
    %c0_160 = arith.constant 0 : index
    %c0_161 = arith.constant 0 : index
    %219 = vector.load %arg10[%c0_159, %c0_160, %c0_161] : memref<4x32x32xf32, #tpu.memory_space<vmem>>, vector<1x32x32xf32>
    %220 = vector.shape_cast %219 : vector<1x32x32xf32> to vector<32x32xf32>
    %cst_162 = arith.constant dense<0.000000e+00> : vector<64x32xf32>
    %221 = tpu.matmul %215, %220, %cst_162 {dimension_numbers = #tpu.dot_dimension_numbers<[1], [0], [0], [1], [0, 0, 1, 1], [], []>} : vector<64x32xf32>, vector<32x32xf32>, vector<64x32xf32> -> vector<64x32xf32>
    %222 = arith.addf %218, %221 : vector<64x32xf32>
    %c0_163 = arith.constant 0 : index
    %c0_164 = arith.constant 0 : index
    %c0_165 = arith.constant 0 : index
    %223 = vector.load %arg11[%c0_163, %c0_164, %c0_165] : memref<4x1x32xf32, #tpu.memory_space<vmem>>, vector<1x1x32xf32>
    %224 = vector.shape_cast %223 : vector<1x1x32xf32> to vector<1x32xf32>
    %225 = vector.broadcast %224 : vector<1x32xf32> to vector<64x32xf32>
    %226 = arith.addf %222, %225 : vector<64x32xf32>
    %227 = arith.negf %226 : vector<64x32xf32>
    %228 = math.exp %227 : vector<64x32xf32>
    %cst_166 = arith.constant 1.000000e+00 : f32
    %229 = vector.broadcast %cst_166 : f32 to vector<64x32xf32>
    %230 = arith.addf %229, %228 : vector<64x32xf32>
    %231 = arith.divf %229, %230 : vector<64x32xf32>
    %c1_167 = arith.constant 1 : index
    %c0_168 = arith.constant 0 : index
    %c0_169 = arith.constant 0 : index
    %232 = vector.load %arg9[%c1_167, %c0_168, %c0_169] : memref<4x16x32xf32, #tpu.memory_space<vmem>>, vector<1x16x32xf32>
    %233 = vector.shape_cast %232 : vector<1x16x32xf32> to vector<16x32xf32>
    %cst_170 = arith.constant dense<0.000000e+00> : vector<64x32xf32>
    %234 = tpu.matmul %10, %233, %cst_170 {dimension_numbers = #tpu.dot_dimension_numbers<[1], [0], [0], [1], [0, 0, 1, 1], [], []>} : vector<64x16xf32>, vector<16x32xf32>, vector<64x32xf32> -> vector<64x32xf32>
    %c1_171 = arith.constant 1 : index
    %c0_172 = arith.constant 0 : index
    %c0_173 = arith.constant 0 : index
    %235 = vector.load %arg10[%c1_171, %c0_172, %c0_173] : memref<4x32x32xf32, #tpu.memory_space<vmem>>, vector<1x32x32xf32>
    %236 = vector.shape_cast %235 : vector<1x32x32xf32> to vector<32x32xf32>
    %cst_174 = arith.constant dense<0.000000e+00> : vector<64x32xf32>
    %237 = tpu.matmul %215, %236, %cst_174 {dimension_numbers = #tpu.dot_dimension_numbers<[1], [0], [0], [1], [0, 0, 1, 1], [], []>} : vector<64x32xf32>, vector<32x32xf32>, vector<64x32xf32> -> vector<64x32xf32>
    %238 = arith.addf %234, %237 : vector<64x32xf32>
    %c1_175 = arith.constant 1 : index
    %c0_176 = arith.constant 0 : index
    %c0_177 = arith.constant 0 : index
    %239 = vector.load %arg11[%c1_175, %c0_176, %c0_177] : memref<4x1x32xf32, #tpu.memory_space<vmem>>, vector<1x1x32xf32>
    %240 = vector.shape_cast %239 : vector<1x1x32xf32> to vector<1x32xf32>
    %241 = vector.broadcast %240 : vector<1x32xf32> to vector<64x32xf32>
    %242 = arith.addf %238, %241 : vector<64x32xf32>
    %243 = arith.negf %242 : vector<64x32xf32>
    %244 = math.exp %243 : vector<64x32xf32>
    %cst_178 = arith.constant 1.000000e+00 : f32
    %245 = vector.broadcast %cst_178 : f32 to vector<64x32xf32>
    %246 = arith.addf %245, %244 : vector<64x32xf32>
    %247 = arith.divf %245, %246 : vector<64x32xf32>
    %c2_179 = arith.constant 2 : index
    %c0_180 = arith.constant 0 : index
    %c0_181 = arith.constant 0 : index
    %248 = vector.load %arg9[%c2_179, %c0_180, %c0_181] : memref<4x16x32xf32, #tpu.memory_space<vmem>>, vector<1x16x32xf32>
    %249 = vector.shape_cast %248 : vector<1x16x32xf32> to vector<16x32xf32>
    %cst_182 = arith.constant dense<0.000000e+00> : vector<64x32xf32>
    %250 = tpu.matmul %10, %249, %cst_182 {dimension_numbers = #tpu.dot_dimension_numbers<[1], [0], [0], [1], [0, 0, 1, 1], [], []>} : vector<64x16xf32>, vector<16x32xf32>, vector<64x32xf32> -> vector<64x32xf32>
    %c2_183 = arith.constant 2 : index
    %c0_184 = arith.constant 0 : index
    %c0_185 = arith.constant 0 : index
    %251 = vector.load %arg10[%c2_183, %c0_184, %c0_185] : memref<4x32x32xf32, #tpu.memory_space<vmem>>, vector<1x32x32xf32>
    %252 = vector.shape_cast %251 : vector<1x32x32xf32> to vector<32x32xf32>
    %cst_186 = arith.constant dense<0.000000e+00> : vector<64x32xf32>
    %253 = tpu.matmul %215, %252, %cst_186 {dimension_numbers = #tpu.dot_dimension_numbers<[1], [0], [0], [1], [0, 0, 1, 1], [], []>} : vector<64x32xf32>, vector<32x32xf32>, vector<64x32xf32> -> vector<64x32xf32>
    %254 = arith.addf %250, %253 : vector<64x32xf32>
    %c2_187 = arith.constant 2 : index
    %c0_188 = arith.constant 0 : index
    %c0_189 = arith.constant 0 : index
    %255 = vector.load %arg11[%c2_187, %c0_188, %c0_189] : memref<4x1x32xf32, #tpu.memory_space<vmem>>, vector<1x1x32xf32>
    %256 = vector.shape_cast %255 : vector<1x1x32xf32> to vector<1x32xf32>
    %257 = vector.broadcast %256 : vector<1x32xf32> to vector<64x32xf32>
    %258 = arith.addf %254, %257 : vector<64x32xf32>
    %259 = math.tanh %258 : vector<64x32xf32>
    %c3_190 = arith.constant 3 : index
    %c0_191 = arith.constant 0 : index
    %c0_192 = arith.constant 0 : index
    %260 = vector.load %arg9[%c3_190, %c0_191, %c0_192] : memref<4x16x32xf32, #tpu.memory_space<vmem>>, vector<1x16x32xf32>
    %261 = vector.shape_cast %260 : vector<1x16x32xf32> to vector<16x32xf32>
    %cst_193 = arith.constant dense<0.000000e+00> : vector<64x32xf32>
    %262 = tpu.matmul %10, %261, %cst_193 {dimension_numbers = #tpu.dot_dimension_numbers<[1], [0], [0], [1], [0, 0, 1, 1], [], []>} : vector<64x16xf32>, vector<16x32xf32>, vector<64x32xf32> -> vector<64x32xf32>
    %c3_194 = arith.constant 3 : index
    %c0_195 = arith.constant 0 : index
    %c0_196 = arith.constant 0 : index
    %263 = vector.load %arg10[%c3_194, %c0_195, %c0_196] : memref<4x32x32xf32, #tpu.memory_space<vmem>>, vector<1x32x32xf32>
    %264 = vector.shape_cast %263 : vector<1x32x32xf32> to vector<32x32xf32>
    %cst_197 = arith.constant dense<0.000000e+00> : vector<64x32xf32>
    %265 = tpu.matmul %215, %264, %cst_197 {dimension_numbers = #tpu.dot_dimension_numbers<[1], [0], [0], [1], [0, 0, 1, 1], [], []>} : vector<64x32xf32>, vector<32x32xf32>, vector<64x32xf32> -> vector<64x32xf32>
    %266 = arith.addf %262, %265 : vector<64x32xf32>
    %c3_198 = arith.constant 3 : index
    %c0_199 = arith.constant 0 : index
    %c0_200 = arith.constant 0 : index
    %267 = vector.load %arg11[%c3_198, %c0_199, %c0_200] : memref<4x1x32xf32, #tpu.memory_space<vmem>>, vector<1x1x32xf32>
    %268 = vector.shape_cast %267 : vector<1x1x32xf32> to vector<1x32xf32>
    %269 = vector.broadcast %268 : vector<1x32xf32> to vector<64x32xf32>
    %270 = arith.addf %266, %269 : vector<64x32xf32>
    %271 = arith.negf %270 : vector<64x32xf32>
    %272 = math.exp %271 : vector<64x32xf32>
    %cst_201 = arith.constant 1.000000e+00 : f32
    %273 = vector.broadcast %cst_201 : f32 to vector<64x32xf32>
    %274 = arith.addf %273, %272 : vector<64x32xf32>
    %275 = arith.divf %273, %274 : vector<64x32xf32>
    %276 = arith.mulf %247, %213 : vector<64x32xf32>
    %277 = arith.mulf %231, %259 : vector<64x32xf32>
    %278 = arith.addf %276, %277 : vector<64x32xf32>
    %279 = math.tanh %278 : vector<64x32xf32>
    %280 = arith.mulf %275, %279 : vector<64x32xf32>
    %c0_202 = arith.constant 0 : index
    %c0_203 = arith.constant 0 : index
    %281 = vector.load %arg12[%c0_202, %c0_203] : memref<1x32xf32, #tpu.memory_space<vmem>>, vector<1x32xf32>
    %c0_204 = arith.constant 0 : index
    %c0_205 = arith.constant 0 : index
    %282 = vector.load %arg13[%c0_204, %c0_205] : memref<1x32xf32, #tpu.memory_space<vmem>>, vector<1x32xf32>
    %283 = vector.broadcast %281 : vector<1x32xf32> to vector<64x32xf32>
    %284 = arith.mulf %85, %283 : vector<64x32xf32>
    %cst_206 = arith.constant dense<0.000000e+00> : vector<64xf32>
    %285 = vector.multi_reduction <add>, %284, %cst_206 [1] : vector<64x32xf32> to vector<64xf32>
    %286 = vector.shape_cast %285 : vector<64xf32> to vector<64x1xf32>
    %287 = vector.broadcast %282 : vector<1x32xf32> to vector<64x32xf32>
    %288 = arith.mulf %280, %287 : vector<64x32xf32>
    %cst_207 = arith.constant dense<0.000000e+00> : vector<64xf32>
    %289 = vector.multi_reduction <add>, %288, %cst_207 [1] : vector<64x32xf32> to vector<64xf32>
    %290 = vector.shape_cast %289 : vector<64xf32> to vector<64x1xf32>
    %291 = arith.addf %286, %290 : vector<64x1xf32>
    %292 = vector.broadcast %281 : vector<1x32xf32> to vector<64x32xf32>
    %293 = arith.mulf %150, %292 : vector<64x32xf32>
    %cst_208 = arith.constant dense<0.000000e+00> : vector<64xf32>
    %294 = vector.multi_reduction <add>, %293, %cst_208 [1] : vector<64x32xf32> to vector<64xf32>
    %295 = vector.shape_cast %294 : vector<64xf32> to vector<64x1xf32>
    %296 = vector.broadcast %282 : vector<1x32xf32> to vector<64x32xf32>
    %297 = arith.mulf %215, %296 : vector<64x32xf32>
    %cst_209 = arith.constant dense<0.000000e+00> : vector<64xf32>
    %298 = vector.multi_reduction <add>, %297, %cst_209 [1] : vector<64x32xf32> to vector<64xf32>
    %299 = vector.shape_cast %298 : vector<64xf32> to vector<64x1xf32>
    %300 = arith.addf %295, %299 : vector<64x1xf32>
    %301 = arith.maximumf %291, %300 : vector<64x1xf32>
    %302 = arith.subf %291, %301 : vector<64x1xf32>
    %303 = math.exp %302 : vector<64x1xf32>
    %304 = arith.subf %300, %301 : vector<64x1xf32>
    %305 = math.exp %304 : vector<64x1xf32>
    %306 = arith.addf %303, %305 : vector<64x1xf32>
    %cst_210 = arith.constant 1.000000e+00 : f32
    %307 = vector.broadcast %cst_210 : f32 to vector<64x1xf32>
    %308 = arith.divf %307, %306 : vector<64x1xf32>
    %309 = arith.mulf %303, %308 : vector<64x1xf32>
    %310 = vector.broadcast %309 : vector<64x1xf32> to vector<64x16xf32>
    %311 = arith.mulf %310, %10 : vector<64x16xf32>
    %312 = arith.mulf %305, %308 : vector<64x1xf32>
    %313 = vector.broadcast %312 : vector<64x1xf32> to vector<64x16xf32>
    %314 = arith.mulf %313, %19 : vector<64x16xf32>
    %315 = arith.addf %311, %314 : vector<64x16xf32>
    %c0_211 = arith.constant 0 : index
    %c0_212 = arith.constant 0 : index
    %316 = vector.load %arg14[%c0_211, %c0_212] : memref<16x4xf32, #tpu.memory_space<vmem>>, vector<16x4xf32>
    %cst_213 = arith.constant dense<0.000000e+00> : vector<64x4xf32>
    %317 = tpu.matmul %315, %316, %cst_213 {dimension_numbers = #tpu.dot_dimension_numbers<[1], [0], [0], [1], [0, 0, 1, 1], [], []>} : vector<64x16xf32>, vector<16x4xf32>, vector<64x4xf32> -> vector<64x4xf32>
    %318 = arith.truncf %317 : vector<64x4xf32> to vector<64x4xbf16>
    %cst_214 = arith.constant dense<0.000000e+00> : vector<64x4xf32>
    %319 = tpu.matmul %0, %318, %cst_214 {dimension_numbers = #tpu.dot_dimension_numbers<[1], [0], [0], [1], [0, 0, 1, 1], [], []>} : vector<64x64xbf16>, vector<64x4xbf16>, vector<64x4xf32> -> vector<64x4xf32>
    %c0_215 = arith.constant 0 : index
    %c0_216 = arith.constant 0 : index
    %320 = vector.load %arg15[%c0_215, %c0_216] : memref<1x4xf32, #tpu.memory_space<vmem>>, vector<1x4xf32>
    %321 = vector.broadcast %320 : vector<1x4xf32> to vector<64x4xf32>
    %322 = arith.addf %319, %321 : vector<64x4xf32>
    %cst_217 = arith.constant dense<0xFF800000> : vector<64xf32>
    %323 = vector.multi_reduction <maximumf>, %322, %cst_217 [1] : vector<64x4xf32> to vector<64xf32>
    %324 = vector.shape_cast %323 : vector<64xf32> to vector<64x1xf32>
    %325 = vector.broadcast %324 : vector<64x1xf32> to vector<64x4xf32>
    %326 = arith.subf %322, %325 : vector<64x4xf32>
    %327 = math.exp %326 : vector<64x4xf32>
    %cst_218 = arith.constant dense<0.000000e+00> : vector<64xf32>
    %328 = vector.multi_reduction <add>, %327, %cst_218 [1] : vector<64x4xf32> to vector<64xf32>
    %329 = vector.shape_cast %328 : vector<64xf32> to vector<64x1xf32>
    %330 = math.log %329 : vector<64x1xf32>
    %331 = vector.broadcast %330 : vector<64x1xf32> to vector<64x4xf32>
    %332 = arith.subf %326, %331 : vector<64x4xf32>
    %c0_219 = arith.constant 0 : index
    %c0_220 = arith.constant 0 : index
    %333 = vector.load %arg16[%c0_219, %c0_220] : memref<64x4xf32, #tpu.memory_space<vmem>>, vector<64x4xf32>
    tpu.vector_store %arg16[%c0_219, %c0_220], %332 {strides = array<i32>} : memref<64x4xf32, #tpu.memory_space<vmem>>, vector<64x4xf32>,
    return
  }
}

</mosaic_0001>

<bundles_post_ra>
// kernel: gcn_jknet_forward.1
= control target key start
LH: loop header
LB: loop body
LE: loop exit
PB: predicated region body
PF: predicated region fallthrough
CT: control target
= control target key end

     0   :  { %vm71_vm0 = vcmask 64512   ;;  %vm232_vm1 = vcmask 523264   ;;  %vm320_vm2 = vcmask 130048   ;;  %vm540_vm3 = vcmask 261120   ;;  %s9663_s2 = inlined_call_operand.vmem [shape: f32[8,16], index: 2, kind: input, shape index: {}]   ;;  %s9664_s1 = inlined_call_operand.vmem [shape: f32[64,8], index: 1, kind: input, shape index: {}]   ;;  %s9665_s0 = inlined_call_operand.vmem [shape: bf16[64,64], index: 0, kind: input, shape index: {}]   ;;  %s9666_s4 = inlined_call_operand.vmem [shape: f32[16,16], index: 4, kind: input, shape index: {}]   ;;  %s9667_s3 = inlined_call_operand.vmem [shape: f32[1,16], index: 3, kind: input, shape index: {}]   ;;  %s9668_s7 = inlined_call_operand.vmem [shape: f32[4,32,32], index: 7, kind: input, shape index: {}]   ;;  %s9669_s6 = inlined_call_operand.vmem [shape: f32[4,16,32], index: 6, kind: input, shape index: {}]   ;;  %s9670_s8 = inlined_call_operand.vmem [shape: f32[4,1,32], index: 8, kind: input, shape index: {}]   ;;  %s9671_s12 = inlined_call_operand.vmem [shape: f32[1,32], index: 12, kind: input, shape index: {}]   ;;  %s9672_s5 = inlined_call_operand.vmem [shape: f32[1,16], index: 5, kind: input, shape index: {}]   ;;  %s9673_s10 = inlined_call_operand.vmem [shape: f32[4,32,32], index: 10, kind: input, shape index: {}]   ;;  %s9674_s9 = inlined_call_operand.vmem [shape: f32[4,16,32], index: 9, kind: input, shape index: {}]   ;;  %s9675_s11 = inlined_call_operand.vmem [shape: f32[4,1,32], index: 11, kind: input, shape index: {}]   ;;  %s9676_s13 = inlined_call_operand.vmem [shape: f32[1,32], index: 13, kind: input, shape index: {}]   ;;  %s9677_s14 = inlined_call_operand.vmem [shape: f32[16,4], index: 14, kind: input, shape index: {}]   ;;  %s9678_s15 = inlined_call_operand.vmem [shape: f32[1,4], index: 15, kind: input, shape index: {}]   ;;  %s9679_s16 = inlined_call_operand.vmem [shape: f32[64,4], index: 16, kind: output, shape index: {}]  }
   0x1   :  { %9687 = sst [smem:[#allocation9_spill]] %s9663_s2  ;;  %v62_v1 = vld [vmem:[%s9664_s1] sm:$0xff]  ;;  %v63_v2 = vld [vmem:[%s9664_s1 + $0x8] sm:$0xff]  ;;  %v64_v3 = vld [vmem:[%s9664_s1 + $0x10] sm:$0xff]  ;;  %vm5473_vm4 = vcmask 31744  }
   0x2   :  { %s9688_s23 = sld [smem:[#allocation9_spill]]  ;;  %6372 = vmatprep.mubr.msk.f32.mxu0 %vm71_vm0, %v62_v1  ;;  %v65_v4 = vld [vmem:[%s9664_s1 + $0x18] sm:$0xff]  ;;  %v66_v5 = vld [vmem:[%s9664_s1 + $0x20] sm:$0xff]  ;;  %v67_v6 = vld [vmem:[%s9664_s1 + $0x28] sm:$0xff] }
   0x3   :  { %v68_v7 = vld [vmem:[%s9664_s1 + $0x30] sm:$0xff]  ;;  %v69_v8 = vld [vmem:[%s9664_s1 + $0x38] sm:$0xff]  ;;  %v8109_v9 = vld [vmem:[%s9665_s0] sm:$0xff]  }
   0x4   :  { %6392 = vmatprep.mubr.msk.bf16.mxu1 %vm232_vm1, %v8109_v9  ;;  %v318_v10 = vld [vmem:[%s9666_s4] sm:$0xff]  ;;  %v319_v11 = vld [vmem:[%s9666_s4 + $0x8] sm:$0xff]  ;;  %v7379_v26 = vld [vmem:[%s9665_s0 + $0x10] sm:$0xff]  }
   0x5   :  { %v7040_v12 = vpack.c.bf16 %v319_v11, %v318_v10  ;;  %v8122_v25 = vld [vmem:[%s9665_s0 + $0x8] sm:$0xff]   ;;  %v8133_v27 = vld [vmem:[%s9665_s0 + $0x18] sm:$0xff]   ;;  %v5590_v28 = vld [vmem:[%s9667_s3] ss:$0 sm:$0xff] }
   0x6   :  { %v536_v62 = vld [vmem:[%s9668_s7] sm:$0xff]  ;;  %v537_v63 = vld [vmem:[%s9668_s7 + $0x8] sm:$0xff]  ;;  %v5634_v10 = vld [vmem:[%s9668_s7 + $0x38] sm:$0xff] }
   0x7   :  { %v5632_v1 = vld [vmem:[%s9668_s7 + $0x28] sm:$0xff] }
   0x8   :  { %v70_v0 = vld [vmem:[%s9688_s23] sm:$0xff] }
   0x9   :  { %6370 = vmatprep.subr.mxu0 %v70_v0 }
   0xa   :  { %6371 = vmatpush3.msra.mxu0 %v70_v0  ;;  %v5631_v0 = vld [vmem:[%s9668_s7 + $0x20] sm:$0xff] }
   0xb   :  { %6373 = vmatmul.mubr.msk.f32.vlgmr.msra.gmra.mrb[0].mxu0 %vm71_vm0, %v63_v2  ;;  %7041 = vmatprep.subr.bf16.mxu0 %v7040_v12 }
   0xc   :  { %6375 = vmatprep.mubr.msk.f32.mxu0 %vm71_vm0, %v64_v3  ;;  %7043 = vmatpush3.bf16.msra.mxu0 %v7040_v12 }
   0xf   :  { %6376 = vmatmul.mubr.msk.f32.gmra.mrb[2].mxu0 %vm71_vm0, %v65_v4 }
  0x10   :  { %6378 = vmatprep.mubr.msk.f32.mxu0 %vm71_vm0, %v66_v5  ;;  %v8187_v5 = vpack.c.bf16 %v537_v63, %v536_v62 }
  0x13   :  { %6379 = vmatmul.mubr.msk.f32.gmra.mrb[4].mxu0 %vm71_vm0, %v67_v6  ;;  %v8189_v6 = vpack.c.bf16 %v5632_v1, %v5631_v0 }
  0x14   :  { %6381 = vmatprep.mubr.msk.f32.mxu0 %vm71_vm0, %v68_v7  ;;  %v538_v7 = vld [vmem:[%s9668_s7 + $0x10] sm:$0xff] }
  0x17   :  { %6382 = vmatmul.mubr.msk.f32.gmra.mrb[6].mxu0 %vm71_vm0, %v69_v8  ;;  %v539_v8 = vld [vmem:[%s9668_s7 + $0x18] sm:$0xff] }
  0x18   :  { %v8205_v11 = vpack.c.bf16 %v539_v8, %v538_v7 }
  0xde   :  { %v6374_v13 = vpop.f32.mrb[0].mxu0 }
  0xdf   :  { %v162_v14 = vpop.f32.mrb[1].mxu0 }
  0xe0   :  { %v201_v15 = vpack.c.bf16 %v6374_v13, %v162_v14  ;;  %v534_v13 = vld [vmem:[%s9669_s6] sm:$0xff]  ;;  %v535_v14 = vld [vmem:[%s9669_s6 + $0x8] sm:$0xff] }
  0xe2   :  { %v6377_v16 = vpop.f32.mrb[2].mxu0  ;;  %6384 = vmatprep.subr.bf16.mxu1 %v201_v15 }
  0xe3   :  { %v172_v17 = vpop.f32.mrb[3].mxu0  ;;  %6385 = vmatpush3.bf16.msra.mxu1 %v201_v15  ;;  %v5629_v15 = vld [vmem:[%s9669_s6 + $0x10] sm:$0xff] }
  0xe4   :  { %v202_v18 = vpack.c.bf16 %v6377_v16, %v172_v17  ;;  %v5630_v16 = vld [vmem:[%s9669_s6 + $0x18] sm:$0xff]  ;;  %v8229_v17 = vpack.c.bf16 %v535_v14, %v534_v13 }
  0xe6   :  { %v6380_v19 = vpop.f32.mrb[4].mxu0  ;;  %6386 = vmatprep.subr.bf16.mxu1 %v202_v18 }
  0xe7   :  { %v182_v20 = vpop.f32.mrb[5].mxu0  ;;  %6387 = vmatpush3.bf16.msra.mxu1 %v202_v18  ;;  %v8231_v18 = vpack.c.bf16 %v5630_v16, %v5629_v15 }
  0xe8   :  { %v203_v21 = vpack.c.bf16 %v6380_v19, %v182_v20  ;;  %v7985_v19 = vmov 0.0   ;;  %v5655_v20 = vld [vmem:[%s9668_s7 + $0x40] sm:$0xff] }
  0xea   :  { %v6383_v22 = vpop.f32.mrb[6].mxu0  ;;  %6388 = vmatprep.subr.bf16.mxu1 %v203_v21 }
  0xeb   :  { %v192_v23 = vpop.f32.mrb[7].mxu0  ;;  %6389 = vmatpush3.bf16.msra.mxu1 %v203_v21  ;;  %v5656_v21 = vld [vmem:[%s9668_s7 + $0x48] sm:$0xff] }
  0xec   :  { %v204_v24 = vpack.c.bf16 %v6383_v22, %v192_v23  ;;  %v5671_v22 = vld [vmem:[%s9668_s7 + $0x60] sm:$0xff]  ;;  %v5672_v23 = vld [vmem:[%s9668_s7 + $0x68] sm:$0xff] }
  0xee   :  { %6390 = vmatprep.subr.bf16.mxu1 %v204_v24 }
  0xef   :  { %6391 = vmatpush3.bf16.msra.mxu1 %v204_v24  ;;  %v8251_v24 = vpack.c.bf16 %v5656_v21, %v5655_v20 }
  0xf2   :  { %6393 = vmatmul.mubr.msk.bf16.vlgmr.msra.gmra.mrb[0].mxu1 %vm232_vm1, %v8122_v25 }
  0xf3   :  { %6396 = vmatprep.mubr.msk.bf16.mxu1 %vm232_vm1, %v7379_v26 }
  0xfa   :  { %6397 = vmatmul.mubr.msk.bf16.gmra.mrb[4].mxu1 %vm232_vm1, %v8133_v27 }
  0xfb   :  { %6428 = vmatprep.mubr.msk.bf16.mxu1 %vm232_vm1, %v7379_v26  ;;  %v5657_v26 = vld [vmem:[%s9668_s7 + $0x50] sm:$0xff] }
 0x1c5   :  { %v6394_v29 = vpop.f32.mrb[0].mxu1 }
 0x1c6   :  { %v279_v30 = vpop.f32.mrb[1].mxu1  ;;  %v288_v33 = vadd.f32 %v6394_v29, %v5590_v28  ;;  %v5674_v29 = vld [vmem:[%s9668_s7 + $0x78] sm:$0xff] }
 0x1c7   :  { %v280_v31 = vadd.f32 %v5590_v28, %v279_v30  ;;  %v6395_v32 = vpop.f32.mrb[2].mxu1 }
 0x1c8   :  { %v282_v34 = vpop.f32.mrb[3].mxu1  ;;  %v291_v37 = vadd.f32 %v6395_v32, %v5590_v28  ;;  %v8147_v39 = vmax.f32 %v288_v33, 0.0  ;;  %v5653_v32 = vld [vmem:[%s9669_s6 + $0x20] sm:$0xff]  ;;  %v5654_v33 = vld [vmem:[%s9669_s6 + $0x28] sm:$0xff] }
 0x1c9   :  { %v8141_v35 = vmax.f32 %v280_v31, 0.0  ;;  %v283_v36 = vadd.f32 %v5590_v28, %v282_v34  ;;  %v5669_v34 = vld [vmem:[%s9669_s6 + $0x30] sm:$0xff] }
 0x1ca   :  { %v8153_v42 = vmax.f32 %v291_v37, 0.0  ;;  %v8317_v37 = vpack.c.bf16 %v5654_v33, %v5653_v32 }
 0x1cb   :  { %v8143_v38 = vmax.f32 %v283_v36, 0.0  ;;  %6404 = vmatprep.mubr.msk.f32.mxu0 %vm320_vm2, %v8141_v35  ;;  %v5670_v36 = vld [vmem:[%s9669_s6 + $0x38] sm:$0xff] }
 0x1cd   :  { %v6398_v40 = vpop.f32.mrb[4].mxu1  ;;  %6405 = vmatmul.mubr.msk.f32.vlgmr.msra.gmra.mrb[8].mxu0 %vm320_vm2, %v8143_v38 }
 0x1ce   :  { %v295_v41 = vpop.f32.mrb[5].mxu1  ;;  %6407 = vmatprep.mubr.msk.f32.mxu0 %vm320_vm2, %v8147_v39  ;;  %v304_v45 = vadd.f32 %v6398_v40, %v5590_v28  ;;  %v8319_v40 = vpack.c.bf16 %v5670_v36, %v5669_v34 }
 0x1cf   :  { %v296_v43 = vadd.f32 %v5590_v28, %v295_v41  ;;  %v6399_v44 = vpop.f32.mrb[6].mxu1 }
 0x1d0   :  { %v298_v46 = vpop.f32.mrb[7].mxu1  ;;  %v307_v49 = vadd.f32 %v6399_v44, %v5590_v28  ;;  %v8163_v51 = vmax.f32 %v304_v45, 0.0 }
 0x1d1   :  { %v8155_v47 = vmax.f32 %v296_v43, 0.0  ;;  %v299_v48 = vadd.f32 %v5590_v28, %v298_v46  ;;  %6408 = vmatmul.mubr.msk.f32.gmra.mrb[10].mxu0 %vm320_vm2, %v8153_v42  ;;  %v5673_v28 = vld [vmem:[%s9668_s7 + $0x70] sm:$0xff] }
 0x1d2   :  { %v8169_v52 = vmax.f32 %v307_v49, 0.0  ;;  %v8291_v31 = vpack.c.bf16 %v5674_v29, %v5673_v28 }
 0x1d3   :  { %v8159_v50 = vmax.f32 %v299_v48, 0.0  ;;  %6410 = vmatprep.mubr.msk.f32.mxu0 %vm320_vm2, %v8155_v47 }
 0x1d5   :  { %6411 = vmatmul.mubr.msk.f32.gmra.mrb[12].mxu0 %vm320_vm2, %v8159_v50 }
 0x1d6   :  { %6413 = vmatprep.mubr.msk.f32.mxu0 %vm320_vm2, %v8163_v51 }
 0x1d9   :  { %6414 = vmatmul.mubr.msk.f32.gmra.mrb[14].mxu0 %vm320_vm2, %v8169_v52 }
 0x1da   :  { %6424 = vmatprep.mubr.msk.bf16.mxu0 %vm232_vm1, %v8109_v9  ;;  %v5633_v9 = vld [vmem:[%s9668_s7 + $0x30] sm:$0xff] }
 0x1db   :  { %v8207_v12 = vpack.c.bf16 %v5634_v10, %v5633_v9 }
 0x2a0   :  { %v6406_v53 = vpop.f32.mrb[8].mxu0 }
 0x2a1   :  { %v411_v54 = vpop.f32.mrb[9].mxu0 }
 0x2a2   :  { %v450_v55 = vpack.c.bf16 %v6406_v53, %v411_v54  ;;  %v8424_v54 = vld [vmem:[%s9670_s8] ss:$0 sm:$0xff] }
 0x2a4   :  { %v6409_v56 = vpop.f32.mrb[10].mxu0  ;;  %6416 = vmatprep.subr.bf16.mxu0 %v450_v55  ;;  %7240 = vmatprep.subr.bf16.mxu1 %v450_v55 }
 0x2a5   :  { %v421_v57 = vpop.f32.mrb[11].mxu0  ;;  %6417 = vmatpush3.bf16.msra.mxu0 %v450_v55  ;;  %7244 = vmatpush3.bf16.msra.mxu1 %v450_v55  ;;  %v8429_v55 = vld [vmem:[%s9670_s8 + $0x1] ss:$0 sm:$0xff] }
 0x2a6   :  { %v451_v58 = vpack.c.bf16 %v6409_v56, %v421_v57 }
 0x2a8   :  { %v6412_v59 = vpop.f32.mrb[12].mxu0  ;;  %6418 = vmatprep.subr.bf16.mxu0 %v451_v58  ;;  %7241 = vmatprep.subr.bf16.mxu1 %v451_v58 }
 0x2a9   :  { %v431_v60 = vpop.f32.mrb[13].mxu0  ;;  %6419 = vmatpush3.bf16.msra.mxu0 %v451_v58  ;;  %7245 = vmatpush3.bf16.msra.mxu1 %v451_v58 }
 0x2aa   :  { %v452_v61 = vpack.c.bf16 %v6412_v59, %v431_v60 }
 0x2ac   :  { %v6415_v2 = vpop.f32.mrb[14].mxu0  ;;  %6420 = vmatprep.subr.bf16.mxu0 %v452_v61  ;;  %7242 = vmatprep.subr.bf16.mxu1 %v452_v61 }
 0x2ad   :  { %v441_v3 = vpop.f32.mrb[15].mxu0  ;;  %6421 = vmatpush3.bf16.msra.mxu0 %v452_v61  ;;  %7246 = vmatpush3.bf16.msra.mxu1 %v452_v61 }
 0x2ae   :  { %v453_v4 = vpack.c.bf16 %v6415_v2, %v441_v3 }
 0x2b0   :  { %6422 = vmatprep.subr.bf16.mxu0 %v453_v4  ;;  %7243 = vmatprep.subr.bf16.mxu1 %v453_v4 }
 0x2b1   :  { %6423 = vmatpush3.bf16.msra.mxu0 %v453_v4  ;;  %7247 = vmatpush3.bf16.msra.mxu1 %v453_v4 }
 0x2b2   :  { %7045 = vmatprep.subr.bf16.mxu0 %v8187_v5  ;;  %7057 = vmatprep.subr.bf16.mxu1 %v8189_v6 }
 0x2b4   :  { %6425 = vmatmul.mubr.msk.bf16.vlgmr.msra.gmra.mrb[16].mxu0 %vm232_vm1, %v8122_v25  ;;  %6429 = vmatmul.mubr.msk.bf16.vlgmr.msra.gmra.mrb[8].mxu1 %vm232_vm1, %v8133_v27  ;;  %v8253_v25 = vpack.c.bf16 %v5672_v23, %v5671_v22  ;;  %v5658_v27 = vld [vmem:[%s9668_s7 + $0x58] sm:$0xff] }
 0x2b5   :  { %7047 = vmatpush3.bf16.msra.mxu0 %v8187_v5  ;;  %7059 = vmatpush3.bf16.msra.mxu1 %v8189_v6  ;;  %v8289_v30 = vpack.c.bf16 %v5658_v27, %v5657_v26 }
 0x2b6   :  { %7049 = vmatprep.subr.bf16.mxu0 %v8205_v11  ;;  %7061 = vmatprep.subr.bf16.mxu1 %v8207_v12 }
 0x2b7   :  { %6440 = vmatprep.mubr.f32.mxu0 %v7985_v19  ;;  %6476 = vmatprep.mubr.f32.mxu1 %v7985_v19 }
 0x2b9   :  { %7051 = vmatpush3.bf16.msra.mxu0 %v8205_v11  ;;  %7063 = vmatpush3.bf16.msra.mxu1 %v8207_v12 }
 0x2ba   :  { %7053 = vmatprep.subr.bf16.mxu0 %v8229_v17  ;;  %7065 = vmatprep.subr.bf16.mxu1 %v8231_v18 }
 0x2bc   :  { %6441 = vmatmul.mubr.f32.vlgmr.msra.gmra.mrb[20].mxu0 %v7985_v19  ;;  %6477 = vmatmul.mubr.f32.vlgmr.msra.gmra.mrb[12].mxu1 %v7985_v19 }
 0x2bd   :  { %7055 = vmatpush3.bf16.msra.mxu0 %v8229_v17  ;;  %7067 = vmatpush3.bf16.msra.mxu1 %v8231_v18 }
 0x2be   :  { %6443 = vmatprep.mubr.f32.mxu0 %v7985_v19  ;;  %6479 = vmatprep.mubr.f32.mxu1 %v7985_v19 }
 0x2bf   :  { %7069 = vmatprep.subr.bf16.mxu0 %v8251_v24  ;;  %7081 = vmatprep.subr.bf16.mxu1 %v8253_v25 }
 0x2c0   :  { %6444 = vmatmul.mubr.f32.gmra.mrb[22].mxu0 %v7985_v19  ;;  %6480 = vmatmul.mubr.f32.gmra.mrb[14].mxu1 %v7985_v19 }
 0x2c1   :  { %6446 = vmatprep.mubr.f32.mxu0 %v7985_v19  ;;  %6482 = vmatprep.mubr.f32.mxu1 %v7985_v19 }
 0x2c4   :  { %6447 = vmatmul.mubr.f32.gmra.mrb[24].mxu0 %v7985_v19  ;;  %6483 = vmatmul.mubr.f32.gmra.mrb[16].mxu1 %v7985_v19 }
 0x2c5   :  { %6449 = vmatprep.mubr.f32.mxu0 %v7985_v19  ;;  %6485 = vmatprep.mubr.f32.mxu1 %v7985_v19 }
 0x2c8   :  { %6450 = vmatmul.mubr.f32.gmra.mrb[26].mxu0 %v7985_v19  ;;  %6486 = vmatmul.mubr.f32.gmra.mrb[18].mxu1 %v7985_v19 }
 0x2c9   :  { %6456 = vmatprep.mubr.msk.f32.mxu0 %vm320_vm2, %v8141_v35  ;;  %6492 = vmatprep.mubr.msk.f32.mxu1 %vm320_vm2, %v8141_v35 }
 0x2cc   :  { %6457 = vmatmul.mubr.msk.f32.vlgmr.msra.gmra.mrb[20].mxu0 %vm320_vm2, %v8143_v38  ;;  %6493 = vmatmul.mubr.msk.f32.vlgmr.msra.gmra.mrb[12].mxu1 %vm320_vm2, %v8143_v38 }
 0x2cd   :  { %6459 = vmatprep.mubr.msk.f32.mxu0 %vm320_vm2, %v8147_v39  ;;  %6495 = vmatprep.mubr.msk.f32.mxu1 %vm320_vm2, %v8147_v39 }
 0x2ce   :  { %7071 = vmatpush3.bf16.msra.mxu0 %v8251_v24  ;;  %7083 = vmatpush3.bf16.msra.mxu1 %v8253_v25 }
 0x2cf   :  { %7073 = vmatprep.subr.bf16.mxu0 %v8289_v30  ;;  %7085 = vmatprep.subr.bf16.mxu1 %v8291_v31 }
 0x2d0   :  { %6460 = vmatmul.mubr.msk.f32.gmra.mrb[22].mxu0 %vm320_vm2, %v8153_v42  ;;  %6496 = vmatmul.mubr.msk.f32.gmra.mrb[14].mxu1 %vm320_vm2, %v8153_v42 }
 0x2d1   :  { %6462 = vmatprep.mubr.msk.f32.mxu0 %vm320_vm2, %v8155_v47  ;;  %6498 = vmatprep.mubr.msk.f32.mxu1 %vm320_vm2, %v8155_v47 }
 0x2d2   :  { %7075 = vmatpush3.bf16.msra.mxu0 %v8289_v30  ;;  %7087 = vmatpush3.bf16.msra.mxu1 %v8291_v31 }
 0x2d3   :  { %7077 = vmatprep.subr.bf16.mxu0 %v8317_v37  ;;  %7089 = vmatprep.subr.bf16.mxu1 %v8319_v40 }
 0x2d4   :  { %6463 = vmatmul.mubr.msk.f32.gmra.mrb[24].mxu0 %vm320_vm2, %v8159_v50  ;;  %6499 = vmatmul.mubr.msk.f32.gmra.mrb[16].mxu1 %vm320_vm2, %v8159_v50 }
 0x2d5   :  { %6465 = vmatprep.mubr.msk.f32.mxu0 %vm320_vm2, %v8163_v51  ;;  %6501 = vmatprep.mubr.msk.f32.mxu1 %vm320_vm2, %v8163_v51 }
 0x2d8   :  { %6466 = vmatmul.mubr.msk.f32.gmra.mrb[26].mxu0 %vm320_vm2, %v8169_v52  ;;  %6502 = vmatmul.mubr.msk.f32.gmra.mrb[18].mxu1 %vm320_vm2, %v8169_v52 }
 0x2d9   :  { %6512 = vmatprep.mubr.f32.mxu0 %v7985_v19  ;;  %6548 = vmatprep.mubr.f32.mxu1 %v7985_v19 }
 0x2dc   :  { %6513 = vmatmul.mubr.f32.vlgmr.msra.gmra.mrb[28].mxu0 %v7985_v19  ;;  %6549 = vmatmul.mubr.f32.vlgmr.msra.gmra.mrb[20].mxu1 %v7985_v19 }
 0x2dd   :  { %7079 = vmatpush3.bf16.msra.mxu0 %v8317_v37  ;;  %7091 = vmatpush3.bf16.msra.mxu1 %v8319_v40 }
 0x2de   :  { %6515 = vmatprep.mubr.f32.mxu0 %v7985_v19  ;;  %6551 = vmatprep.mubr.f32.mxu1 %v7985_v19 }
 0x2df   :  { %7093 = vmatprep.subr.bf16.mxu0 %v8187_v5  ;;  %7105 = vmatprep.subr.bf16.mxu1 %v8189_v6 }
 0x2e0   :  { %6516 = vmatmul.mubr.f32.gmra.mrb[30].mxu0 %v7985_v19  ;;  %6552 = vmatmul.mubr.f32.gmra.mrb[22].mxu1 %v7985_v19 }
 0x2e1   :  { %6518 = vmatprep.mubr.f32.mxu0 %v7985_v19  ;;  %6554 = vmatprep.mubr.f32.mxu1 %v7985_v19 }
 0x2e4   :  { %6519 = vmatmul.mubr.f32.gmra.mrb[32].mxu0 %v7985_v19  ;;  %6555 = vmatmul.mubr.f32.gmra.mrb[24].mxu1 %v7985_v19 }
 0x2e5   :  { %6521 = vmatprep.mubr.f32.mxu0 %v7985_v19  ;;  %6557 = vmatprep.mubr.f32.mxu1 %v7985_v19 }
 0x2e8   :  { %6522 = vmatmul.mubr.f32.gmra.mrb[34].mxu0 %v7985_v19  ;;  %6558 = vmatmul.mubr.f32.gmra.mrb[26].mxu1 %v7985_v19 }
 0x2e9   :  { %6528 = vmatprep.mubr.msk.f32.mxu0 %vm320_vm2, %v8141_v35  ;;  %6564 = vmatprep.mubr.msk.f32.mxu1 %vm320_vm2, %v8141_v35 }
 0x2ec   :  { %6529 = vmatmul.mubr.msk.f32.vlgmr.msra.gmra.mrb[28].mxu0 %vm320_vm2, %v8143_v38  ;;  %6565 = vmatmul.mubr.msk.f32.vlgmr.msra.gmra.mrb[20].mxu1 %vm320_vm2, %v8143_v38 }
 0x2ed   :  { %6531 = vmatprep.mubr.msk.f32.mxu0 %vm320_vm2, %v8147_v39  ;;  %6567 = vmatprep.mubr.msk.f32.mxu1 %vm320_vm2, %v8147_v39 }
 0x2ee   :  { %7095 = vmatpush3.bf16.msra.mxu0 %v8187_v5  ;;  %7107 = vmatpush3.bf16.msra.mxu1 %v8189_v6 }
 0x2ef   :  { %7097 = vmatprep.subr.bf16.mxu0 %v8205_v11  ;;  %7109 = vmatprep.subr.bf16.mxu1 %v8207_v12 }
 0x2f0   :  { %6532 = vmatmul.mubr.msk.f32.gmra.mrb[30].mxu0 %vm320_vm2, %v8153_v42  ;;  %6568 = vmatmul.mubr.msk.f32.gmra.mrb[22].mxu1 %vm320_vm2, %v8153_v42 }
 0x2f1   :  { %6534 = vmatprep.mubr.msk.f32.mxu0 %vm320_vm2, %v8155_v47  ;;  %6570 = vmatprep.mubr.msk.f32.mxu1 %vm320_vm2, %v8155_v47 }
 0x2f2   :  { %7099 = vmatpush3.bf16.msra.mxu0 %v8205_v11  ;;  %7111 = vmatpush3.bf16.msra.mxu1 %v8207_v12 }
 0x2f3   :  { %7101 = vmatprep.subr.bf16.mxu0 %v8229_v17  ;;  %7113 = vmatprep.subr.bf16.mxu1 %v8231_v18 }
 0x2f4   :  { %6535 = vmatmul.mubr.msk.f32.gmra.mrb[32].mxu0 %vm320_vm2, %v8159_v50  ;;  %6571 = vmatmul.mubr.msk.f32.gmra.mrb[24].mxu1 %vm320_vm2, %v8159_v50 }
 0x2f5   :  { %6537 = vmatprep.mubr.msk.f32.mxu0 %vm320_vm2, %v8163_v51  ;;  %6573 = vmatprep.mubr.msk.f32.mxu1 %vm320_vm2, %v8163_v51 }
 0x2f8   :  { %6538 = vmatmul.mubr.msk.f32.gmra.mrb[34].mxu0 %vm320_vm2, %v8169_v52  ;;  %6574 = vmatmul.mubr.msk.f32.gmra.mrb[26].mxu1 %vm320_vm2, %v8169_v52 }
 0x387   :  { %v8405_v41 = vpop.f32.mrb[16].mxu0  ;;  %v8407_v43 = vpop.f32.mrb[8].mxu1 }
 0x388   :  { %v8409_v44 = vpop.f32.mrb[17].mxu0  ;;  %v8411_v45 = vpop.f32.mrb[9].mxu1 }
 0x389   :  { %v8413_v46 = vpop.f32.mrb[18].mxu0  ;;  %v8415_v48 = vpop.f32.mrb[10].mxu1 }
 0x38a   :  { %v8417_v49 = vpop.f32.mrb[19].mxu0  ;;  %v8419_v53 = vpop.f32.mrb[11].mxu1 }
 0x39f   :  { %v6458_v56 = vpop.f32.mrb[20].mxu0  ;;  %v6494_v57 = vpop.f32.mrb[12].mxu1 }
 0x3a0   :  { %v762_v58 = vadd.f32 %v6458_v56, %v8424_v54  ;;  %v1044_v59 = vadd.f32 %v6494_v57, %v8429_v55  ;;  %v715_v60 = vpop.f32.mrb[21].mxu0  ;;  %v996_v61 = vpop.f32.mrb[13].mxu1 }
 0x3a1   :  { %v761_v62 = vadd.f32 %v8424_v54, %v715_v60  ;;  %v1043_v63 = vadd.f32 %v8429_v55, %v996_v61 }
 0x3a2   :  { %v5622_v0 = vmul.f32 -1.442695, %v762_v58  ;;  %v5646_v1 = vmul.f32 -1.442695, %v1044_v59 }
 0x3a3   :  { %v5621_v2 = vmul.f32 -1.442695, %v761_v62  ;;  %v5645_v3 = vmul.f32 -1.442695, %v1043_v63  ;;  %v6461_v4 = vpop.f32.mrb[22].mxu0  ;;  %v6497_v5 = vpop.f32.mrb[14].mxu1 }
 0x3a4   :  { %7381 = vpow2.f32 %v5622_v0  ;;  %v764_v6 = vadd.f32 %v6461_v4, %v8424_v54  ;;  %v1046_v7 = vadd.f32 %v6497_v5, %v8429_v55  ;;  %v725_v8 = vpop.f32.mrb[23].mxu0  ;;  %v1006_v9 = vpop.f32.mrb[15].mxu1 }
 0x3a5   :  { %7383 = vpow2.f32 %v5646_v1  ;;  %v763_v10 = vadd.f32 %v8424_v54, %v725_v8  ;;  %v1045_v11 = vadd.f32 %v8429_v55, %v1006_v9 }
 0x3a6   :  { %7385 = vpow2.f32 %v5621_v2  ;;  %v5624_v12 = vmul.f32 -1.442695, %v764_v6  ;;  %v5648_v13 = vmul.f32 -1.442695, %v1046_v7 }
 0x3a7   :  { %7387 = vpow2.f32 %v5645_v3  ;;  %v5623_v14 = vmul.f32 -1.442695, %v763_v10  ;;  %v5647_v15 = vmul.f32 -1.442695, %v1045_v11  ;;  %v6464_v16 = vpop.f32.mrb[24].mxu0  ;;  %v6500_v20 = vpop.f32.mrb[16].mxu1 }
 0x3a8   :  { %7389 = vpow2.f32 %v5624_v12  ;;  %v766_v21 = vadd.f32 %v6464_v16, %v8424_v54  ;;  %v1048_v22 = vadd.f32 %v6500_v20, %v8429_v55  ;;  %v735_v23 = vpop.f32.mrb[25].mxu0  ;;  %v1016_v26 = vpop.f32.mrb[17].mxu1 }
 0x3a9   :  { %7391 = vpow2.f32 %v5648_v13  ;;  %v765_v27 = vadd.f32 %v8424_v54, %v735_v23  ;;  %v1047_v28 = vadd.f32 %v8429_v55, %v1016_v26 }
 0x3aa   :  { %7393 = vpow2.f32 %v5623_v14  ;;  %v5626_v29 = vmul.f32 -1.442695, %v766_v21  ;;  %v5650_v32 = vmul.f32 -1.442695, %v1048_v22 }
 0x3ab   :  { %7395 = vpow2.f32 %v5647_v15  ;;  %v5625_v33 = vmul.f32 -1.442695, %v765_v27  ;;  %v5649_v34 = vmul.f32 -1.442695, %v1047_v28  ;;  %v6467_v36 = vpop.f32.mrb[26].mxu0  ;;  %v6503_v56 = vpop.f32.mrb[18].mxu1 }
 0x3ac   :  { %7397 = vpow2.f32 %v5626_v29  ;;  %v768_v57 = vadd.f32 %v6467_v36, %v8424_v54  ;;  %v745_v58 = vpop.f32.mrb[27].mxu0  ;;  %v1026_v59 = vpop.f32.mrb[19].mxu1  ;;  %v1050_v14 = vadd.f32 %v6503_v56, %v8429_v55 }
 0x3ad   :  { %7399 = vpow2.f32 %v5650_v32  ;;  %v767_v20 = vadd.f32 %v8424_v54, %v745_v58  ;;  %v1049_v23 = vadd.f32 %v8429_v55, %v1026_v59  ;;  %v8454_v55 = vld [vmem:[%s9670_s8 + $0x2] ss:$0 sm:$0xff] }
 0x3ae   :  { %v7382_v60 = vpop.eup %7381  ;;  %7401 = vpow2.f32 %v5625_v33  ;;  %v5628_v61 = vmul.f32 -1.442695, %v768_v57  ;;  %v5652_v32 = vmul.f32 -1.442695, %v1050_v14  ;;  %v8459_v57 = vld [vmem:[%s9670_s8 + $0x3] ss:$0 sm:$0xff] }
 0x3af   :  { %v7384_v62 = vpop.eup %7383  ;;  %v794_v63 = vadd.f32 1.0, %v7382_v60  ;;  %7403 = vpow2.f32 %v5649_v34  ;;  %v5627_v33 = vmul.f32 -1.442695, %v767_v20  ;;  %v5651_v36 = vmul.f32 -1.442695, %v1049_v23 }
 0x3b0   :  { %v7386_v0 = vpop.eup %7385  ;;  %v1076_v1 = vadd.f32 1.0, %v7384_v62  ;;  %7405 = vpow2.f32 %v5628_v61 }
 0x3b1   :  { %v7388_v2 = vpop.eup %7387  ;;  %v793_v3 = vadd.f32 1.0, %v7386_v0  ;;  %7407 = vrcp.f32 %v794_v63 }
 0x3b2   :  { %v7390_v4 = vpop.eup %7389  ;;  %v1075_v5 = vadd.f32 1.0, %v7388_v2  ;;  %7409 = vrcp.f32 %v1076_v1 }
 0x3b3   :  { %v7392_v6 = vpop.eup %7391  ;;  %v796_v7 = vadd.f32 1.0, %v7390_v4  ;;  %7411 = vrcp.f32 %v793_v3 }
 0x3b4   :  { %v7394_v8 = vpop.eup %7393  ;;  %v1078_v9 = vadd.f32 1.0, %v7392_v6  ;;  %7413 = vrcp.f32 %v1075_v5 }
 0x3b5   :  { %v7396_v10 = vpop.eup %7395  ;;  %v795_v11 = vadd.f32 1.0, %v7394_v8  ;;  %7415 = vrcp.f32 %v796_v7 }
 0x3b6   :  { %v7398_v12 = vpop.eup %7397  ;;  %v1077_v13 = vadd.f32 1.0, %v7396_v10  ;;  %7417 = vrcp.f32 %v1078_v9 }
 0x3b7   :  { %v7400_v15 = vpop.eup %7399  ;;  %v798_v16 = vadd.f32 1.0, %v7398_v12  ;;  %7419 = vrcp.f32 %v795_v11 }
 0x3b8   :  { %v7402_v21 = vpop.eup %7401  ;;  %v1080_v22 = vadd.f32 1.0, %v7400_v15  ;;  %7421 = vrcp.f32 %v1077_v13 }
 0x3b9   :  { %v7404_v26 = vpop.eup %7403  ;;  %v797_v27 = vadd.f32 1.0, %v7402_v21  ;;  %7423 = vrcp.f32 %v798_v16 }
 0x3ba   :  { %v7406_v28 = vpop.eup %7405  ;;  %v1079_v29 = vadd.f32 1.0, %v7404_v26  ;;  %7425 = vrcp.f32 %v1080_v22 }
 0x3bb   :  { %v8447_v34 = vpop.eup %7407  ;;  %7427 = vrcp.f32 %v797_v27  ;;  %v800_v54 = vadd.f32 1.0, %v7406_v28 }
 0x3bc   :  { %v8449_v56 = vpop.eup %7409  ;;  %7429 = vrcp.f32 %v1079_v29 }
 0x3bd   :  { %v8461_v58 = vpop.eup %7411  ;;  %7431 = vpow2.f32 %v5652_v32 }
 0x3be   :  { %v8463_v59 = vpop.eup %7413  ;;  %7433 = vpow2.f32 %v5627_v33 }
 0x3bf   :  { %v6530_v60 = vpop.f32.mrb[28].mxu0  ;;  %v6566_v61 = vpop.f32.mrb[20].mxu1  ;;  %7435 = vpow2.f32 %v5651_v36 }
 0x3c0   :  { %v8465_v62 = vpop.eup %7415  ;;  %v1326_v63 = vadd.f32 %v6530_v60, %v8454_v55  ;;  %v1568_v0 = vadd.f32 %v6566_v61, %v8459_v57  ;;  %v1278_v1 = vpop.f32.mrb[29].mxu0  ;;  %7437 = vrcp.f32 %v800_v54 }
 0x3c1   :  { %v1520_v2 = vpop.f32.mrb[21].mxu1  ;;  %v8469_v3 = vpop.eup %7417  ;;  %v1325_v4 = vadd.f32 %v8454_v55, %v1278_v1 }
 0x3c2   :  { %v1567_v5 = vadd.f32 %v8459_v57, %v1520_v2  ;;  %v8473_v6 = vpop.eup %7419  ;;  %7439 = vtanh.f32 %v1326_v63  ;;  %v5686_v7 = vmul.f32 -1.442695, %v1568_v0 }
 0x3c3   :  { %v8475_v8 = vpop.eup %7421  ;;  %7441 = vtanh.f32 %v1325_v4  ;;  %v6533_v10 = vpop.f32.mrb[30].mxu0 }
 0x3c4   :  { %v5685_v9 = vmul.f32 -1.442695, %v1567_v5  ;;  %v6569_v11 = vpop.f32.mrb[22].mxu1  ;;  %v8477_v12 = vpop.eup %7423  ;;  %7443 = vpow2.f32 %v5686_v7  ;;  %v1328_v13 = vadd.f32 %v6533_v10, %v8454_v55 }
 0x3c5   :  { %v1570_v14 = vadd.f32 %v6569_v11, %v8459_v57  ;;  %v1288_v15 = vpop.f32.mrb[31].mxu0  ;;  %v1530_v16 = vpop.f32.mrb[23].mxu1 }
 0x3c6   :  { %v8481_v20 = vpop.eup %7425  ;;  %7445 = vpow2.f32 %v5685_v9  ;;  %v1327_v21 = vadd.f32 %v8454_v55, %v1288_v15  ;;  %v1569_v22 = vadd.f32 %v8459_v57, %v1530_v16 }
 0x3c7   :  { %v8485_v23 = vpop.eup %7427  ;;  %7447 = vtanh.f32 %v1328_v13  ;;  %v5688_v26 = vmul.f32 -1.442695, %v1570_v14  ;;  %v6536_v29 = vpop.f32.mrb[32].mxu0 }
 0x3c8   :  { %v8487_v27 = vpop.eup %7429  ;;  %7449 = vtanh.f32 %v1327_v21  ;;  %v5687_v28 = vmul.f32 -1.442695, %v1569_v22  ;;  %v6572_v32 = vpop.f32.mrb[24].mxu1  ;;  %v1330_v36 = vadd.f32 %v6536_v29, %v8454_v55 }
 0x3c9   :  { %v7432_v33 = vpop.eup %7431  ;;  %7451 = vpow2.f32 %v5688_v26  ;;  %v1572_v54 = vadd.f32 %v6572_v32, %v8459_v57  ;;  %v1298_v60 = vpop.f32.mrb[33].mxu0  ;;  %v1624_v26 = vmul.f32 0.0, %v8449_v56  ;;  %v1623_v32 = vmul.f32 0.0, %v8463_v59 }
 0x3ca   :  { %v1540_v61 = vpop.f32.mrb[25].mxu1  ;;  %v7434_v63 = vpop.eup %7433  ;;  %v1082_v0 = vadd.f32 1.0, %v7432_v33  ;;  %7453 = vpow2.f32 %v5687_v28  ;;  %v1329_v10 = vadd.f32 %v8454_v55, %v1298_v60 }
 0x3cb   :  { %v1571_v1 = vadd.f32 %v8459_v57, %v1540_v61  ;;  %v7436_v2 = vpop.eup %7435  ;;  %v799_v4 = vadd.f32 1.0, %v7434_v63  ;;  %7455 = vtanh.f32 %v1330_v36  ;;  %v5690_v5 = vmul.f32 -1.442695, %v1572_v54  ;;  %v6539_v11 = vpop.f32.mrb[34].mxu0 }
 0x3cc   :  { %v8492_v7 = vpop.eup %7437  ;;  %7457 = vrcp.f32 %v1082_v0  ;;  %v1081_v9 = vadd.f32 1.0, %v7436_v2  ;;  %v6575_v13 = vpop.f32.mrb[26].mxu1 }
 0x3cd   :  { %v7440_v14 = vpop.eup %7439  ;;  %7459 = vrcp.f32 %v799_v4  ;;  %v5689_v15 = vmul.f32 -1.442695, %v1571_v1  ;;  %v1308_v16 = vpop.f32.mrb[35].mxu0  ;;  %v1626_v1 = vmul.f32 0.0, %v8469_v3 }
 0x3ce   :  { %v1550_v21 = vpop.f32.mrb[27].mxu1  ;;  %v7442_v22 = vpop.eup %7441  ;;  %7461 = vrcp.f32 %v1081_v9  ;;  %v1632_v28 = vmul.f32 %v7440_v14, %v8447_v34 }
 0x3cf   :  { %v7444_v29 = vpop.eup %7443  ;;  %v1631_v33 = vmul.f32 %v7442_v22, %v8461_v58  ;;  %7463 = vpow2.f32 %v5690_v5  ;;  %v1625_v58 = vmul.f32 0.0, %v8475_v8  ;;  %v1628_v22 = vmul.f32 0.0, %v8481_v20 }
 0x3d0   :  { %v7446_v36 = vpop.eup %7445  ;;  %v8499_v54 = vadd.f32 %v1632_v28, %v1624_v26  ;;  %v1600_v60 = vadd.f32 1.0, %v7444_v29  ;;  %7465 = vtanh.f32 %v1329_v10  ;;  %v1332_v26 = vadd.f32 %v6539_v11, %v8454_v55 }
 0x3d1   :  { %v7448_v61 = vpop.eup %7447  ;;  %v8501_v63 = vadd.f32 %v1631_v33, %v1623_v32  ;;  %v1599_v0 = vadd.f32 1.0, %v7446_v36  ;;  %7467 = vpow2.f32 %v5689_v15  ;;  %v1574_v15 = vadd.f32 %v6575_v13, %v8459_v57 }
 0x3d2   :  { %v7450_v56 = vpop.eup %7449  ;;  %7469 = vtanh.f32 %v8499_v54  ;;  %v1634_v34 = vmul.f32 %v7448_v61, %v8465_v62  ;;  %v1573_v20 = vadd.f32 %v8459_v57, %v1550_v21  ;;  %v8535_v21 = vld [vmem:[%s9671_s12] ss:$0 sm:$0xff] }
 0x3d3   :  { %v7452_v59 = vpop.eup %7451  ;;  %7471 = vrcp.f32 %v1600_v60  ;;  %v1633_v2 = vmul.f32 %v7450_v56, %v8473_v6  ;;  %v5692_v13 = vmul.f32 -1.442695, %v1574_v15  ;;  %v1627_v60 = vmul.f32 0.0, %v8487_v27 }
 0x3d4   :  { %v7454_v4 = vpop.eup %7453  ;;  %7473 = vtanh.f32 %v8501_v63  ;;  %v8509_v5 = vadd.f32 %v1634_v34, %v1626_v1  ;;  %v1602_v9 = vadd.f32 1.0, %v7452_v59  ;;  %v1331_v56 = vadd.f32 %v8454_v55, %v1308_v16 }
 0x3d5   :  { %v7456_v10 = vpop.eup %7455  ;;  %7475 = vrcp.f32 %v1599_v0  ;;  %v8511_v14 = vadd.f32 %v1633_v2, %v1625_v58  ;;  %v1601_v3 = vadd.f32 1.0, %v7454_v4  ;;  %v5691_v57 = vmul.f32 -1.442695, %v1573_v20 }
 0x3d6   :  { %v7458_v62 = vpop.eup %7457  ;;  %7477 = vtanh.f32 %v8509_v5  ;;  %v1636_v6 = vmul.f32 %v7456_v10, %v8477_v12 }
 0x3d7   :  { %v8517_v8 = vpop.eup %7459  ;;  %7479 = vrcp.f32 %v1602_v9 }
 0x3d8   :  { %v8520_v28 = vpop.eup %7461  ;;  %7481 = vtanh.f32 %v8511_v14  ;;  %v8523_v29 = vadd.f32 %v1636_v6, %v1628_v22 }
 0x3d9   :  { %v7464_v32 = vpop.eup %7463  ;;  %7483 = vrcp.f32 %v1601_v3 }
 0x3da   :  { %v7466_v33 = vpop.eup %7465  ;;  %7485 = vtanh.f32 %v8523_v29  ;;  %v1604_v12 = vadd.f32 1.0, %v7464_v32 }
 0x3db   :  { %v7468_v36 = vpop.eup %7467  ;;  %v1635_v11 = vmul.f32 %v7466_v33, %v8485_v23  ;;  %7487 = vtanh.f32 %v1332_v26 }
 0x3dc   :  { %v7470_v61 = vpop.eup %7469  ;;  %7489 = vrcp.f32 %v1604_v12  ;;  %v1603_v0 = vadd.f32 1.0, %v7468_v36 }
 0x3dd   :  { %v7472_v1 = vpop.eup %7471  ;;  %v8530_v34 = vadd.f32 %v1635_v11, %v1627_v60  ;;  %7491 = vpow2.f32 %v5692_v13  ;;  %v1630_v13 = vmul.f32 0.0, %v7458_v62 }
 0x3de   :  { %v7474_v59 = vpop.eup %7473  ;;  %v8537_v27 = vmul.f32 %v7472_v1, %v7470_v61  ;;  %7493 = vrcp.f32 %v1603_v0  ;;  %v1629_v0 = vmul.f32 0.0, %v8520_v28 }
 0x3df   :  { %v7476_v23 = vpop.eup %7475  ;;  %7495 = vtanh.f32 %v8530_v34 }
 0x3e0   :  { %v7478_v58 = vpop.eup %7477  ;;  %7497 = vtanh.f32 %v1331_v56  ;;  %v8540_v55 = vmul.f32 %v7476_v23, %v7474_v59  ;;  %v4997_v16 = vmul.f32 %v8535_v21, %v8537_v27 }
 0x3e1   :  { %v7480_v2 = vpop.eup %7479  ;;  %7499 = vpow2.f32 %v5691_v57 }
 0x3e2   :  { %v7482_v4 = vpop.eup %7481  ;;  %6584 = vmatprep.mubr.msk.f32.mxu0 %vm540_vm3, %v8540_v55  ;;  %6620 = vmatprep.mubr.msk.f32.mxu1 %vm540_vm3, %v8540_v55  ;;  %v5007_v9 = vsel %vm540_vm3, %v4997_v16, 0.0  ;;  %v4996_v3 = vmul.f32 %v8535_v21, %v8540_v55  ;;  %v8559_v26 = vmul.f32 %v7480_v2, %v7478_v58  ;;  %v5607_v16 = vld [vmem:[%s9672_s5] ss:$0 sm:$0xff] }
 0x3e3   :  { %v7484_v10 = vpop.eup %7483  ;;  %6585 = vmatmul.mubr.msk.f32.vlgmr.msra.gmra.mrb[36].mxu0 %vm540_vm3, %v8537_v27  ;;  %6621 = vmatmul.mubr.msk.f32.vlgmr.msra.gmra.mrb[28].mxu1 %vm540_vm3, %v8537_v27 }
 0x3e4   :  { %v7486_v15 = vpop.eup %7485  ;;  %5008 = vadd.xlane.f32.xlu0 %v5007_v9  ;;  %7103 = vmatpush3.bf16.msra.mxu0 %v8229_v17  ;;  %v8556_v22 = vmul.f32 %v7484_v10, %v7482_v4  ;;  %v4999_v36 = vmul.f32 %v8535_v21, %v8559_v26 }
 0x3e5   :  { %v7488_v6 = vpop.eup %7487  ;;  %7115 = vmatpush3.bf16.msra.mxu1 %v8231_v18  ;;  %7117 = vmatprep.subr.bf16.mxu0 %v8251_v24  ;;  %v5004_v18 = vsel %vm540_vm3, %v4996_v3, 0.0 }
 0x3e6   :  { %v7490_v32 = vpop.eup %7489  ;;  %v1638_v20 = vmul.f32 %v7488_v6, %v8492_v7  ;;  %6587 = vmatprep.mubr.msk.f32.mxu0 %vm540_vm3, %v8556_v22  ;;  %6623 = vmatprep.mubr.msk.f32.mxu1 %vm540_vm3, %v8556_v22  ;;  %v4998_v28 = vmul.f32 %v8535_v21, %v8556_v22 }
 0x3e7   :  { %v7492_v17 = vpop.eup %7491  ;;  %6588 = vmatmul.mubr.msk.f32.gmra.mrb[38].mxu0 %vm540_vm3, %v8559_v26  ;;  %6624 = vmatmul.mubr.msk.f32.gmra.mrb[30].mxu1 %vm540_vm3, %v8559_v26  ;;  %v8581_v1 = vmul.f32 %v7490_v32, %v7486_v15  ;;  %v496_v15 = vadd.f32 %v5607_v16, %v8409_v44 }
 0x3e8   :  { %v7494_v33 = vpop.eup %7493  ;;  %v8572_v12 = vadd.f32 %v1638_v20, %v1630_v13  ;;  %5005 = vadd.xlane.f32.xlu0 %v5004_v18  ;;  %7129 = vmatprep.subr.bf16.mxu1 %v8253_v25  ;;  %v1606_v62 = vadd.f32 1.0, %v7492_v17  ;;  %v5010_v23 = vsel %vm540_vm3, %v4998_v28, 0.0  ;;  %v499_v20 = vadd.f32 %v5607_v16, %v8417_v49  ;;  %v5824_v28 = vld [vmem:[%s9673_s10 + $0x40] sm:$0xff] }
 0x3e9   :  { %v7496_v7 = vpop.eup %7495  ;;  %v5001_v58 = vmul.f32 %v8535_v21, %v8581_v1  ;;  %v504_v18 = vadd.f32 %v8405_v41, %v5607_v16  ;;  %v507_v41 = vadd.f32 %v8413_v46, %v5607_v16  ;;  %v515_v46 = vadd.f32 %v5607_v16, %v8419_v53  ;;  %v5800_v53 = vld [vmem:[%s9673_s10 + $0x20] sm:$0xff] }
 0x3ea   :  { %v7498_v60 = vpop.eup %7497  ;;  %v8577_v11 = vmul.f32 %v7496_v7, %v7494_v33  ;;  %7501 = vtanh.f32 %v8572_v12  ;;  %v8615_v33 = vmax.f32 %v496_v15, 0.0  ;;  %v8630_v44 = vmax.f32 %v499_v20, 0.0  ;;  %v5843_v15 = vld [vmem:[%s9673_s10 + $0x78] sm:$0xff]  ;;  %v5822_v20 = vld [vmem:[%s9674_s9 + $0x20] sm:$0xff] }
 0x3eb   :  { %v7500_v61 = vpop.eup %7499  ;;  %v1637_v56 = vmul.f32 %v7498_v60, %v8517_v8  ;;  %7503 = vrcp.f32 %v1606_v62  ;;  %v5013_v8 = vsel %vm540_vm3, %v4999_v36, 0.0  ;;  %v5019_v2 = vsel %vm540_vm3, %v5001_v58, 0.0  ;;  %v5801_v36 = vld [vmem:[%s9673_s10 + $0x28] sm:$0xff]  ;;  %v5840_v58 = vld [vmem:[%s9673_s10 + $0x60] sm:$0xff] }
 0x3ec   :  { %v1605_v57 = vadd.f32 1.0, %v7500_v61  ;;  %6590 = vmatprep.mubr.msk.f32.mxu0 %vm540_vm3, %v8577_v11  ;;  %6626 = vmatprep.mubr.msk.f32.mxu1 %vm540_vm3, %v8577_v11  ;;  %v5000_v4 = vmul.f32 %v8535_v21, %v8577_v11  ;;  %9689 = vst [vmem:[#allocation2_spill] sm:$0xff] %v8615_v33  ;;  %v8632_v49 = vmax.f32 %v504_v18, 0.0  ;;  %v512_v21 = vadd.f32 %v5607_v16, %v8411_v45  ;;  %v5823_v18 = vld [vmem:[%s9674_s9 + $0x28] sm:$0xff] }
 0x3ed   :  { %v8588_v59 = vadd.f32 %v1637_v56, %v1629_v0  ;;  %6591 = vmatmul.mubr.msk.f32.gmra.mrb[40].mxu0 %vm540_vm3, %v8581_v1  ;;  %6627 = vmatmul.mubr.msk.f32.gmra.mrb[32].mxu1 %vm540_vm3, %v8581_v1  ;;  %v8643_v7 = vmax.f32 %v507_v41, 0.0  ;;  %v520_v45 = vadd.f32 %v8407_v43, %v5607_v16  ;;  %v8702_v61 = vpack.c.bf16 %v5801_v36, %v5800_v53  ;;  %v2776_v0 = vld [vmem:[%s9674_s9 + $0x8] sm:$0xff]  ;;  %v5798_v56 = vld [vmem:[%s9674_s9 + $0x10] sm:$0xff]  ;;  %v8985_v53 = vld [vmem:[%s9670_s8 + $0x1] ss:$0 sm:$0xff] }
 0x3ee   :  { %7505 = vrcp.f32 %v1605_v57  ;;  %5014 = vadd.xlane.f32.xlu0 %v5013_v8  ;;  %v5016_v32 = vsel %vm540_vm3, %v5000_v4, 0.0  ;;  %9690 = vst [vmem:[#allocation3_spill] sm:$0xff] %v8632_v49  ;;  %v8649_v62 = vmax.f32 %v512_v21, 0.0  ;;  %v5838_v41 = vld [vmem:[%s9674_s9 + $0x30] sm:$0xff]  ;;  %v5839_v21 = vld [vmem:[%s9674_s9 + $0x38] sm:$0xff] }
 0x3ef   :  { %7507 = vtanh.f32 %v8588_v59  ;;  %9691 = vst [vmem:[#allocation4_spill] sm:$0xff] %v8643_v7  ;;  %v8666_v43 = vmax.f32 %v520_v45, 0.0  ;;  %v8890_v45 = vpack.c.bf16 %v5839_v21, %v5838_v41 }
 0x3f0   :  { %9692 = vst [vmem:[#allocation5_spill] sm:$0xff] %v8649_v62 }
 0x3f1   :  { %9694 = vst [vmem:[#allocation7_spill] sm:$0xff] %v8666_v43 }
 0x3f2   :  { %5011 = vadd.xlane.f32.xlu0 %v5010_v23  ;;  %v5825_v23 = vld [vmem:[%s9673_s10 + $0x48] sm:$0xff] }
 0x3f4   :  { %v7502_v9 = vpop.eup %7501 }
 0x3f5   :  { %v7504_v10 = vpop.eup %7503 }
 0x3f6   :  { %5020 = vadd.xlane.f32.xlu0 %v5019_v2  ;;  %v8612_v17 = vmul.f32 %v7504_v10, %v7502_v9  ;;  %v8822_v2 = vpack.c.bf16 %v5825_v23, %v5824_v28  ;;  %v5826_v9 = vld [vmem:[%s9673_s10 + $0x50] sm:$0xff]  ;;  %v5827_v10 = vld [vmem:[%s9673_s10 + $0x58] sm:$0xff] }
 0x3f8   :  { %v7506_v3 = vpop.eup %7505 }
 0x3f9   :  { %v7508_v6 = vpop.eup %7507 }
 0x3fa   :  { %v8609_v13 = vmul.f32 %v7508_v6, %v7506_v3  ;;  %5017 = vadd.xlane.f32.xlu0 %v5016_v32  ;;  %v5842_v3 = vld [vmem:[%s9673_s10 + $0x70] sm:$0xff]  ;;  %v8860_v6 = vpack.c.bf16 %v5827_v10, %v5826_v9 }
 0x3fb   :  { %v8862_v32 = vpack.c.bf16 %v5843_v15, %v5842_v3 }
 0x3fc   :  { %6593 = vmatprep.mubr.msk.f32.mxu0 %vm540_vm3, %v8609_v13  ;;  %6629 = vmatprep.mubr.msk.f32.mxu1 %vm540_vm3, %v8609_v13 }
 0x3fd   :  { %6594 = vmatmul.mubr.msk.f32.gmra.mrb[42].mxu0 %vm540_vm3, %v8612_v17  ;;  %6630 = vmatmul.mubr.msk.f32.gmra.mrb[34].mxu1 %vm540_vm3, %v8612_v17 }
 0x3fe   :  { %6600 = vmatprep.mubr.msk.f32.mxu0 %vm320_vm2, %v8615_v33  ;;  %6636 = vmatprep.mubr.msk.f32.mxu1 %vm320_vm2, %v8615_v33 }
 0x401   :  { %6601 = vmatmul.mubr.msk.f32.vlgmr.msra.gmra.mrb[36].mxu0 %vm320_vm2, %v8630_v44  ;;  %6637 = vmatmul.mubr.msk.f32.vlgmr.msra.gmra.mrb[28].mxu1 %vm320_vm2, %v8630_v44 }
 0x402   :  { %6603 = vmatprep.mubr.msk.f32.mxu0 %vm320_vm2, %v8632_v49  ;;  %6639 = vmatprep.mubr.msk.f32.mxu1 %vm320_vm2, %v8632_v49 }
 0x403   :  { %7119 = vmatpush3.bf16.msra.mxu0 %v8251_v24  ;;  %7131 = vmatpush3.bf16.msra.mxu1 %v8253_v25  ;;  %v523_v24 = vadd.f32 %v8415_v48, %v5607_v16  ;;  %v8662_v25 = vmax.f32 %v515_v46, 0.0  ;;  %v2778_v48 = vld [vmem:[%s9673_s10 + $0x8] sm:$0xff]  ;;  %v8888_v46 = vpack.c.bf16 %v5823_v18, %v5822_v20 }
 0x404   :  { %7121 = vmatprep.subr.bf16.mxu0 %v8289_v30  ;;  %7133 = vmatprep.subr.bf16.mxu1 %v8291_v31  ;;  %v5841_v16 = vld [vmem:[%s9673_s10 + $0x68] sm:$0xff] }
 0x405   :  { %6604 = vmatmul.mubr.msk.f32.gmra.mrb[38].mxu0 %vm320_vm2, %v8643_v7  ;;  %6640 = vmatmul.mubr.msk.f32.gmra.mrb[30].mxu1 %vm320_vm2, %v8643_v7  ;;  %9693 = vst [vmem:[#allocation6_spill] sm:$0xff] %v8662_v25  ;;  %v8824_v4 = vpack.c.bf16 %v5841_v16, %v5840_v58 }
 0x406   :  { %6606 = vmatprep.mubr.msk.f32.mxu0 %vm320_vm2, %v8649_v62  ;;  %6642 = vmatprep.mubr.msk.f32.mxu1 %vm320_vm2, %v8649_v62 }
 0x407   :  { %7123 = vmatpush3.bf16.msra.mxu0 %v8289_v30  ;;  %7135 = vmatpush3.bf16.msra.mxu1 %v8291_v31  ;;  %v8678_v30 = vmax.f32 %v523_v24, 0.0  ;;  %v2777_v31 = vld [vmem:[%s9673_s10] sm:$0xff] }
 0x408   :  { %7125 = vmatprep.subr.bf16.mxu0 %v8317_v37  ;;  %7137 = vmatprep.subr.bf16.mxu1 %v8319_v40  ;;  %v8700_v60 = vpack.c.bf16 %v2778_v48, %v2777_v31  ;;  %v8979_v31 = vld [vmem:[%s9670_s8] ss:$0 sm:$0xff] }
 0x409   :  { %6607 = vmatmul.mubr.msk.f32.gmra.mrb[40].mxu0 %vm320_vm2, %v8662_v25  ;;  %6643 = vmatmul.mubr.msk.f32.gmra.mrb[32].mxu1 %vm320_vm2, %v8662_v25  ;;  %9695 = vst [vmem:[#allocation8_spill] sm:$0xff] %v8678_v30 }
 0x40a   :  { %6609 = vmatprep.mubr.msk.f32.mxu0 %vm320_vm2, %v8666_v43  ;;  %6645 = vmatprep.mubr.msk.f32.mxu1 %vm320_vm2, %v8666_v43 }
 0x40d   :  { %6610 = vmatmul.mubr.msk.f32.gmra.mrb[42].mxu0 %vm320_vm2, %v8678_v30  ;;  %6646 = vmatmul.mubr.msk.f32.gmra.mrb[34].mxu1 %vm320_vm2, %v8678_v30 }
 0x40e   :  { %6656 = vmatprep.mubr.msk.f32.mxu0 %vm540_vm3, %v8540_v55  ;;  %6692 = vmatprep.mubr.msk.f32.mxu1 %vm540_vm3, %v8540_v55  ;;  %v5803_v55 = vld [vmem:[%s9673_s10 + $0x38] sm:$0xff] }
 0x411   :  { %6657 = vmatmul.mubr.msk.f32.vlgmr.msra.gmra.mrb[44].mxu0 %vm540_vm3, %v8537_v27  ;;  %6693 = vmatmul.mubr.msk.f32.vlgmr.msra.gmra.mrb[36].mxu1 %vm540_vm3, %v8537_v27  ;;  %v5802_v27 = vld [vmem:[%s9673_s10 + $0x30] sm:$0xff] }
 0x412   :  { %6659 = vmatprep.mubr.msk.f32.mxu0 %vm540_vm3, %v8556_v22  ;;  %7127 = vmatpush3.bf16.msra.mxu0 %v8317_v37  ;;  %v2779_v37 = vld [vmem:[%s9673_s10 + $0x10] sm:$0xff] }
 0x413   :  { %6695 = vmatprep.mubr.msk.f32.mxu1 %vm540_vm3, %v8556_v22  ;;  %7139 = vmatpush3.bf16.msra.mxu1 %v8319_v40  ;;  %v2780_v40 = vld [vmem:[%s9673_s10 + $0x18] sm:$0xff] }
 0x414   :  { %7141 = vmatprep.subr.bf16.mxu0 %v8700_v60  ;;  %7153 = vmatprep.subr.bf16.mxu1 %v8702_v61  ;;  %v8752_v22 = vpack.c.bf16 %v2780_v40, %v2779_v37 }
 0x415   :  { %6660 = vmatmul.mubr.msk.f32.gmra.mrb[46].mxu0 %vm540_vm3, %v8559_v26  ;;  %6696 = vmatmul.mubr.msk.f32.gmra.mrb[38].mxu1 %vm540_vm3, %v8559_v26  ;;  %v8754_v26 = vpack.c.bf16 %v5803_v55, %v5802_v27 }
 0x416   :  { %6662 = vmatprep.mubr.msk.f32.mxu0 %vm540_vm3, %v8577_v11  ;;  %6698 = vmatprep.mubr.msk.f32.mxu1 %vm540_vm3, %v8577_v11  ;;  %v2775_v11 = vld [vmem:[%s9674_s9] sm:$0xff] }
 0x417   :  { %v8780_v57 = vpack.c.bf16 %v2776_v0, %v2775_v11 }
 0x419   :  { %6663 = vmatmul.mubr.msk.f32.gmra.mrb[48].mxu0 %vm540_vm3, %v8581_v1  ;;  %6699 = vmatmul.mubr.msk.f32.gmra.mrb[40].mxu1 %vm540_vm3, %v8581_v1  ;;  %v5799_v1 = vld [vmem:[%s9674_s9 + $0x18] sm:$0xff] }
 0x41a   :  { %6665 = vmatprep.mubr.msk.f32.mxu0 %vm540_vm3, %v8609_v13  ;;  %6701 = vmatprep.mubr.msk.f32.mxu1 %vm540_vm3, %v8609_v13  ;;  %v8782_v8 = vpack.c.bf16 %v5799_v1, %v5798_v56 }
 0x41d   :  { %6666 = vmatmul.mubr.msk.f32.gmra.mrb[50].mxu0 %vm540_vm3, %v8612_v17  ;;  %6702 = vmatmul.mubr.msk.f32.gmra.mrb[42].mxu1 %vm540_vm3, %v8612_v17 }
 0x41e   :  { %6672 = vmatprep.mubr.msk.f32.mxu0 %vm320_vm2, %v8615_v33  ;;  %6708 = vmatprep.mubr.msk.f32.mxu1 %vm320_vm2, %v8615_v33 }
 0x421   :  { %6673 = vmatmul.mubr.msk.f32.vlgmr.msra.gmra.mrb[44].mxu0 %vm320_vm2, %v8630_v44  ;;  %6709 = vmatmul.mubr.msk.f32.vlgmr.msra.gmra.mrb[36].mxu1 %vm320_vm2, %v8630_v44 }
 0x422   :  { %6675 = vmatprep.mubr.msk.f32.mxu0 %vm320_vm2, %v8632_v49  ;;  %6711 = vmatprep.mubr.msk.f32.mxu1 %vm320_vm2, %v8632_v49 }
 0x423   :  { %7143 = vmatpush3.bf16.msra.mxu0 %v8700_v60  ;;  %7155 = vmatpush3.bf16.msra.mxu1 %v8702_v61 }
 0x424   :  { %7145 = vmatprep.subr.bf16.mxu0 %v8752_v22  ;;  %7157 = vmatprep.subr.bf16.mxu1 %v8754_v26 }
 0x425   :  { %6676 = vmatmul.mubr.msk.f32.gmra.mrb[46].mxu0 %vm320_vm2, %v8643_v7  ;;  %6712 = vmatmul.mubr.msk.f32.gmra.mrb[38].mxu1 %vm320_vm2, %v8643_v7 }
 0x426   :  { %6678 = vmatprep.mubr.msk.f32.mxu0 %vm320_vm2, %v8649_v62  ;;  %6714 = vmatprep.mubr.msk.f32.mxu1 %vm320_vm2, %v8649_v62 }
 0x427   :  { %7147 = vmatpush3.bf16.msra.mxu0 %v8752_v22  ;;  %7159 = vmatpush3.bf16.msra.mxu1 %v8754_v26 }
 0x428   :  { %7149 = vmatprep.subr.bf16.mxu0 %v8780_v57  ;;  %7161 = vmatprep.subr.bf16.mxu1 %v8782_v8 }
 0x429   :  { %6679 = vmatmul.mubr.msk.f32.gmra.mrb[48].mxu0 %vm320_vm2, %v8662_v25  ;;  %6715 = vmatmul.mubr.msk.f32.gmra.mrb[40].mxu1 %vm320_vm2, %v8662_v25 }
 0x42a   :  { %6681 = vmatprep.mubr.msk.f32.mxu0 %vm320_vm2, %v8666_v43  ;;  %6717 = vmatprep.mubr.msk.f32.mxu1 %vm320_vm2, %v8666_v43 }
 0x42d   :  { %6682 = vmatmul.mubr.msk.f32.gmra.mrb[50].mxu0 %vm320_vm2, %v8678_v30  ;;  %6718 = vmatmul.mubr.msk.f32.gmra.mrb[42].mxu1 %vm320_vm2, %v8678_v30 }
 0x42e   :  { %6728 = vmatprep.mubr.f32.mxu0 %v7985_v19  ;;  %6764 = vmatprep.mubr.f32.mxu1 %v7985_v19 }
 0x431   :  { %6729 = vmatmul.mubr.f32.vlgmr.msra.gmra.mrb[52].mxu0 %v7985_v19  ;;  %6765 = vmatmul.mubr.f32.vlgmr.msra.gmra.mrb[44].mxu1 %v7985_v19 }
 0x432   :  { %7151 = vmatpush3.bf16.msra.mxu0 %v8780_v57  ;;  %7163 = vmatpush3.bf16.msra.mxu1 %v8782_v8 }
 0x433   :  { %6731 = vmatprep.mubr.f32.mxu0 %v7985_v19  ;;  %6767 = vmatprep.mubr.f32.mxu1 %v7985_v19 }
 0x434   :  { %7165 = vmatprep.subr.bf16.mxu0 %v8822_v2  ;;  %7177 = vmatprep.subr.bf16.mxu1 %v8824_v4 }
 0x435   :  { %6732 = vmatmul.mubr.f32.gmra.mrb[54].mxu0 %v7985_v19  ;;  %6768 = vmatmul.mubr.f32.gmra.mrb[46].mxu1 %v7985_v19 }
 0x436   :  { %6734 = vmatprep.mubr.f32.mxu0 %v7985_v19  ;;  %6770 = vmatprep.mubr.f32.mxu1 %v7985_v19 }
 0x439   :  { %6735 = vmatmul.mubr.f32.gmra.mrb[56].mxu0 %v7985_v19  ;;  %6771 = vmatmul.mubr.f32.gmra.mrb[48].mxu1 %v7985_v19 }
 0x43a   :  { %6737 = vmatprep.mubr.f32.mxu0 %v7985_v19  ;;  %6773 = vmatprep.mubr.f32.mxu1 %v7985_v19 }
 0x43d   :  { %6738 = vmatmul.mubr.f32.gmra.mrb[58].mxu0 %v7985_v19  ;;  %6774 = vmatmul.mubr.f32.gmra.mrb[50].mxu1 %v7985_v19 }
 0x43e   :  { %6744 = vmatprep.mubr.msk.f32.mxu0 %vm320_vm2, %v8615_v33  ;;  %6780 = vmatprep.mubr.msk.f32.mxu1 %vm320_vm2, %v8615_v33 }
 0x441   :  { %6745 = vmatmul.mubr.msk.f32.vlgmr.msra.gmra.mrb[52].mxu0 %vm320_vm2, %v8630_v44  ;;  %6781 = vmatmul.mubr.msk.f32.vlgmr.msra.gmra.mrb[44].mxu1 %vm320_vm2, %v8630_v44 }
 0x442   :  { %6747 = vmatprep.mubr.msk.f32.mxu0 %vm320_vm2, %v8632_v49  ;;  %6783 = vmatprep.mubr.msk.f32.mxu1 %vm320_vm2, %v8632_v49 }
 0x443   :  { %7167 = vmatpush3.bf16.msra.mxu0 %v8822_v2  ;;  %7179 = vmatpush3.bf16.msra.mxu1 %v8824_v4 }
 0x444   :  { %7169 = vmatprep.subr.bf16.mxu0 %v8860_v6  ;;  %7181 = vmatprep.subr.bf16.mxu1 %v8862_v32 }
 0x445   :  { %6748 = vmatmul.mubr.msk.f32.gmra.mrb[54].mxu0 %vm320_vm2, %v8643_v7  ;;  %6784 = vmatmul.mubr.msk.f32.gmra.mrb[46].mxu1 %vm320_vm2, %v8643_v7 }
 0x446   :  { %6750 = vmatprep.mubr.msk.f32.mxu0 %vm320_vm2, %v8649_v62  ;;  %6786 = vmatprep.mubr.msk.f32.mxu1 %vm320_vm2, %v8649_v62 }
 0x447   :  { %7171 = vmatpush3.bf16.msra.mxu0 %v8860_v6  ;;  %7183 = vmatpush3.bf16.msra.mxu1 %v8862_v32 }
 0x448   :  { %7173 = vmatprep.subr.bf16.mxu0 %v8888_v46  ;;  %7185 = vmatprep.subr.bf16.mxu1 %v8890_v45 }
 0x449   :  { %6751 = vmatmul.mubr.msk.f32.gmra.mrb[56].mxu0 %vm320_vm2, %v8662_v25  ;;  %6787 = vmatmul.mubr.msk.f32.gmra.mrb[48].mxu1 %vm320_vm2, %v8662_v25 }
 0x44a   :  { %6753 = vmatprep.mubr.msk.f32.mxu0 %vm320_vm2, %v8666_v43  ;;  %6789 = vmatprep.mubr.msk.f32.mxu1 %vm320_vm2, %v8666_v43 }
 0x44d   :  { %6754 = vmatmul.mubr.msk.f32.gmra.mrb[58].mxu0 %vm320_vm2, %v8678_v30  ;;  %6790 = vmatmul.mubr.msk.f32.gmra.mrb[50].mxu1 %vm320_vm2, %v8678_v30 }
 0x44e   :  { %6800 = vmatprep.mubr.f32.mxu0 %v7985_v19  ;;  %6836 = vmatprep.mubr.f32.mxu1 %v7985_v19 }
 0x451   :  { %6801 = vmatmul.mubr.f32.vlgmr.msra.gmra.mrb[60].mxu0 %v7985_v19  ;;  %6837 = vmatmul.mubr.f32.vlgmr.msra.gmra.mrb[52].mxu1 %v7985_v19 }
 0x452   :  { %7175 = vmatpush3.bf16.msra.mxu0 %v8888_v46  ;;  %7187 = vmatpush3.bf16.msra.mxu1 %v8890_v45 }
 0x453   :  { %6803 = vmatprep.mubr.f32.mxu0 %v7985_v19  ;;  %6839 = vmatprep.mubr.f32.mxu1 %v7985_v19 }
 0x454   :  { %7189 = vmatprep.subr.bf16.mxu0 %v8700_v60  ;;  %7201 = vmatprep.subr.bf16.mxu1 %v8702_v61 }
 0x455   :  { %6804 = vmatmul.mubr.f32.gmra.mrb[62].mxu0 %v7985_v19  ;;  %6840 = vmatmul.mubr.f32.gmra.mrb[54].mxu1 %v7985_v19 }
 0x456   :  { %6806 = vmatprep.mubr.f32.mxu0 %v7985_v19  ;;  %6842 = vmatprep.mubr.f32.mxu1 %v7985_v19 }
 0x459   :  { %6807 = vmatmul.mubr.f32.gmra.mrb[64].mxu0 %v7985_v19  ;;  %6843 = vmatmul.mubr.f32.gmra.mrb[56].mxu1 %v7985_v19 }
 0x45a   :  { %6809 = vmatprep.mubr.f32.mxu0 %v7985_v19  ;;  %6845 = vmatprep.mubr.f32.mxu1 %v7985_v19 }
 0x45d   :  { %6810 = vmatmul.mubr.f32.gmra.mrb[66].mxu0 %v7985_v19  ;;  %6846 = vmatmul.mubr.f32.gmra.mrb[58].mxu1 %v7985_v19 }
 0x45e   :  { %6816 = vmatprep.mubr.msk.f32.mxu0 %vm320_vm2, %v8615_v33  ;;  %6852 = vmatprep.mubr.msk.f32.mxu1 %vm320_vm2, %v8615_v33 }
 0x461   :  { %6817 = vmatmul.mubr.msk.f32.vlgmr.msra.gmra.mrb[60].mxu0 %vm320_vm2, %v8630_v44  ;;  %6853 = vmatmul.mubr.msk.f32.vlgmr.msra.gmra.mrb[52].mxu1 %vm320_vm2, %v8630_v44 }
 0x462   :  { %6819 = vmatprep.mubr.msk.f32.mxu0 %vm320_vm2, %v8632_v49  ;;  %6855 = vmatprep.mubr.msk.f32.mxu1 %vm320_vm2, %v8632_v49 }
 0x463   :  { %7191 = vmatpush3.bf16.msra.mxu0 %v8700_v60  ;;  %7203 = vmatpush3.bf16.msra.mxu1 %v8702_v61 }
 0x464   :  { %7193 = vmatprep.subr.bf16.mxu0 %v8752_v22  ;;  %7205 = vmatprep.subr.bf16.mxu1 %v8754_v26 }
 0x465   :  { %6820 = vmatmul.mubr.msk.f32.gmra.mrb[62].mxu0 %vm320_vm2, %v8643_v7  ;;  %6856 = vmatmul.mubr.msk.f32.gmra.mrb[54].mxu1 %vm320_vm2, %v8643_v7 }
 0x466   :  { %6822 = vmatprep.mubr.msk.f32.mxu0 %vm320_vm2, %v8649_v62  ;;  %6858 = vmatprep.mubr.msk.f32.mxu1 %vm320_vm2, %v8649_v62 }
 0x467   :  { %7195 = vmatpush3.bf16.msra.mxu0 %v8752_v22  ;;  %7207 = vmatpush3.bf16.msra.mxu1 %v8754_v26 }
 0x468   :  { %7197 = vmatprep.subr.bf16.mxu0 %v8780_v57  ;;  %7209 = vmatprep.subr.bf16.mxu1 %v8782_v8 }
 0x469   :  { %6823 = vmatmul.mubr.msk.f32.gmra.mrb[64].mxu0 %vm320_vm2, %v8662_v25  ;;  %6859 = vmatmul.mubr.msk.f32.gmra.mrb[56].mxu1 %vm320_vm2, %v8662_v25 }
 0x46a   :  { %6825 = vmatprep.mubr.msk.f32.mxu0 %vm320_vm2, %v8666_v43  ;;  %6861 = vmatprep.mubr.msk.f32.mxu1 %vm320_vm2, %v8666_v43 }
 0x46d   :  { %6826 = vmatmul.mubr.msk.f32.gmra.mrb[66].mxu0 %vm320_vm2, %v8678_v30  ;;  %6862 = vmatmul.mubr.msk.f32.gmra.mrb[58].mxu1 %vm320_vm2, %v8678_v30 }
 0x4d4   :  { %v6602_v19 = vpop.f32.mrb[36].mxu0  ;;  %v6638_v24 = vpop.f32.mrb[28].mxu1 }
 0x4d5   :  { %v1922_v48 = vadd.f32 %v8979_v31, %v6602_v19  ;;  %v2188_v36 = vadd.f32 %v8985_v53, %v6638_v24  ;;  %v1882_v60 = vpop.f32.mrb[37].mxu0  ;;  %v2148_v61 = vpop.f32.mrb[29].mxu1 }
 0x4d6   :  { %v1921_v37 = vadd.f32 %v8979_v31, %v1882_v60  ;;  %v2187_v40 = vadd.f32 %v8985_v53, %v2148_v61 }
 0x4d7   :  { %v5710_v27 = vmul.f32 -1.442695, %v1922_v48  ;;  %v5734_v55 = vmul.f32 -1.442695, %v2188_v36 }
 0x4d8   :  { %v5709_v22 = vmul.f32 -1.442695, %v1921_v37  ;;  %v5733_v26 = vmul.f32 -1.442695, %v2187_v40  ;;  %v6605_v11 = vpop.f32.mrb[38].mxu0  ;;  %v6641_v0 = vpop.f32.mrb[30].mxu1 }
 0x4d9   :  { %7509 = vpow2.f32 %v5710_v27  ;;  %v1924_v56 = vadd.f32 %v8979_v31, %v6605_v11  ;;  %v2190_v1 = vadd.f32 %v8985_v53, %v6641_v0  ;;  %v1892_v28 = vpop.f32.mrb[39].mxu0  ;;  %v2158_v23 = vpop.f32.mrb[31].mxu1 }
 0x4da   :  { %7511 = vpow2.f32 %v5734_v55  ;;  %v1923_v58 = vadd.f32 %v8979_v31, %v1892_v28  ;;  %v2189_v16 = vadd.f32 %v8985_v53, %v2158_v23 }
 0x4db   :  { %7513 = vpow2.f32 %v5709_v22  ;;  %v5712_v9 = vmul.f32 -1.442695, %v1924_v56  ;;  %v5736_v10 = vmul.f32 -1.442695, %v2190_v1 }
 0x4dc   :  { %7515 = vpow2.f32 %v5733_v26  ;;  %v5711_v3 = vmul.f32 -1.442695, %v1923_v58  ;;  %v5735_v15 = vmul.f32 -1.442695, %v2189_v16  ;;  %v6608_v20 = vpop.f32.mrb[40].mxu0  ;;  %v6644_v18 = vpop.f32.mrb[32].mxu1 }
 0x4dd   :  { %7517 = vpow2.f32 %v5712_v9  ;;  %v1926_v41 = vadd.f32 %v8979_v31, %v6608_v20  ;;  %v2192_v21 = vadd.f32 %v8985_v53, %v6644_v18  ;;  %v1902_v19 = vpop.f32.mrb[41].mxu0  ;;  %v2168_v24 = vpop.f32.mrb[33].mxu1 }
 0x4de   :  { %7519 = vpow2.f32 %v5736_v10  ;;  %v1925_v48 = vadd.f32 %v8979_v31, %v1902_v19  ;;  %v2191_v36 = vadd.f32 %v8985_v53, %v2168_v24 }
 0x4df   :  { %7521 = vpow2.f32 %v5711_v3  ;;  %v5714_v60 = vmul.f32 -1.442695, %v1926_v41  ;;  %v5738_v61 = vmul.f32 -1.442695, %v2192_v21 }
 0x4e0   :  { %7523 = vpow2.f32 %v5735_v15  ;;  %v5713_v37 = vmul.f32 -1.442695, %v1925_v48  ;;  %v5737_v40 = vmul.f32 -1.442695, %v2191_v36  ;;  %v6611_v27 = vpop.f32.mrb[42].mxu0  ;;  %v6647_v55 = vpop.f32.mrb[34].mxu1 }
 0x4e1   :  { %7525 = vpow2.f32 %v5714_v60  ;;  %v1928_v22 = vadd.f32 %v8979_v31, %v6611_v27  ;;  %v1912_v26 = vpop.f32.mrb[43].mxu0  ;;  %v2178_v11 = vpop.f32.mrb[35].mxu1  ;;  %v2194_v36 = vadd.f32 %v8985_v53, %v6647_v55 }
 0x4e2   :  { %7527 = vpow2.f32 %v5738_v61 }
 0x4e3   :  { %v7510_v0 = vpop.eup %7509  ;;  %7529 = vpow2.f32 %v5713_v37  ;;  %v5716_v56 = vmul.f32 -1.442695, %v1928_v22  ;;  %v1927_v37 = vadd.f32 %v8979_v31, %v1912_v26  ;;  %v2193_v22 = vadd.f32 %v8985_v53, %v2178_v11 }
 0x4e4   :  { %v7512_v1 = vpop.eup %7511  ;;  %v1954_v28 = vadd.f32 1.0, %v7510_v0  ;;  %7531 = vpow2.f32 %v5737_v40 }
 0x4e5   :  { %v7514_v23 = vpop.eup %7513  ;;  %v2220_v58 = vadd.f32 1.0, %v7512_v1  ;;  %7533 = vpow2.f32 %v5716_v56 }
 0x4e6   :  { %v7516_v16 = vpop.eup %7515  ;;  %v1953_v9 = vadd.f32 1.0, %v7514_v23  ;;  %7535 = vrcp.f32 %v1954_v28  ;;  %v5740_v23 = vmul.f32 -1.442695, %v2194_v36 }
 0x4e7   :  { %v7518_v10 = vpop.eup %7517  ;;  %v2219_v3 = vadd.f32 1.0, %v7516_v16  ;;  %7537 = vrcp.f32 %v2220_v58  ;;  %v5715_v58 = vmul.f32 -1.442695, %v1927_v37  ;;  %v5739_v16 = vmul.f32 -1.442695, %v2193_v22 }
 0x4e8   :  { %v7520_v15 = vpop.eup %7519  ;;  %v1956_v20 = vadd.f32 1.0, %v7518_v10  ;;  %7539 = vrcp.f32 %v1953_v9 }
 0x4e9   :  { %v7522_v18 = vpop.eup %7521  ;;  %v2222_v41 = vadd.f32 1.0, %v7520_v15  ;;  %7541 = vrcp.f32 %v2219_v3  ;;  %v9015_v15 = vld [vmem:[%s9670_s8 + $0x2] ss:$0 sm:$0xff] }
 0x4ea   :  { %v7524_v21 = vpop.eup %7523  ;;  %v1955_v19 = vadd.f32 1.0, %v7522_v18  ;;  %7543 = vrcp.f32 %v1956_v20  ;;  %v9021_v18 = vld [vmem:[%s9670_s8 + $0x3] ss:$0 sm:$0xff] }
 0x4eb   :  { %v7526_v24 = vpop.eup %7525  ;;  %v2221_v48 = vadd.f32 1.0, %v7524_v21  ;;  %7545 = vrcp.f32 %v2222_v41 }
 0x4ec   :  { %v7528_v60 = vpop.eup %7527  ;;  %v1958_v61 = vadd.f32 1.0, %v7526_v24  ;;  %7547 = vrcp.f32 %v1955_v19 }
 0x4ed   :  { %v7530_v40 = vpop.eup %7529  ;;  %v2224_v27 = vadd.f32 1.0, %v7528_v60  ;;  %7549 = vrcp.f32 %v2221_v48 }
 0x4ee   :  { %v7532_v0 = vpop.eup %7531  ;;  %v1957_v56 = vadd.f32 1.0, %v7530_v40  ;;  %7551 = vrcp.f32 %v1958_v61 }
 0x4ef   :  { %v7534_v1 = vpop.eup %7533  ;;  %v2223_v28 = vadd.f32 1.0, %v7532_v0  ;;  %7553 = vrcp.f32 %v2224_v27 }
 0x4f0   :  { %v9002_v55 = vpop.eup %7535  ;;  %7555 = vrcp.f32 %v1957_v56  ;;  %v1960_v31 = vadd.f32 1.0, %v7534_v1 }
 0x4f1   :  { %v9004_v9 = vpop.eup %7537  ;;  %7557 = vrcp.f32 %v2223_v28 }
 0x4f2   :  { %v9006_v26 = vpop.eup %7539  ;;  %7559 = vpow2.f32 %v5740_v23 }
 0x4f3   :  { %v9008_v53 = vpop.eup %7541  ;;  %7561 = vpow2.f32 %v5715_v58 }
 0x4f4   :  { %v6674_v11 = vpop.f32.mrb[44].mxu0  ;;  %v6710_v10 = vpop.f32.mrb[36].mxu1  ;;  %7563 = vpow2.f32 %v5739_v16 }
 0x4f5   :  { %v9010_v3 = vpop.eup %7543  ;;  %v2454_v20 = vadd.f32 %v9015_v15, %v6674_v11  ;;  %v2680_v41 = vadd.f32 %v9021_v18, %v6710_v10  ;;  %v2414_v21 = vpop.f32.mrb[45].mxu0  ;;  %7565 = vrcp.f32 %v1960_v31 }
 0x4f6   :  { %v2640_v19 = vpop.f32.mrb[37].mxu1  ;;  %v9024_v24 = vpop.eup %7545  ;;  %v2453_v48 = vadd.f32 %v9015_v15, %v2414_v21 }
 0x4f7   :  { %v2679_v36 = vadd.f32 %v9021_v18, %v2640_v19  ;;  %v9028_v60 = vpop.eup %7547  ;;  %7567 = vtanh.f32 %v2454_v20  ;;  %v5774_v61 = vmul.f32 -1.442695, %v2680_v41 }
 0x4f8   :  { %v9030_v37 = vpop.eup %7549  ;;  %7569 = vtanh.f32 %v2453_v48  ;;  %v6677_v27 = vpop.f32.mrb[46].mxu0 }
 0x4f9   :  { %v5773_v40 = vmul.f32 -1.442695, %v2679_v36  ;;  %v6713_v22 = vpop.f32.mrb[38].mxu1  ;;  %v9032_v0 = vpop.eup %7551  ;;  %7571 = vpow2.f32 %v5774_v61  ;;  %v2456_v56 = vadd.f32 %v9015_v15, %v6677_v27 }
 0x4fa   :  { %v2682_v1 = vadd.f32 %v9021_v18, %v6713_v22  ;;  %v2424_v28 = vpop.f32.mrb[47].mxu0  ;;  %v2650_v23 = vpop.f32.mrb[39].mxu1 }
 0x4fb   :  { %v9036_v58 = vpop.eup %7553  ;;  %7573 = vpow2.f32 %v5773_v40  ;;  %v2455_v16 = vadd.f32 %v9015_v15, %v2424_v28  ;;  %v2681_v31 = vadd.f32 %v9021_v18, %v2650_v23 }
 0x4fc   :  { %v9040_v11 = vpop.eup %7555  ;;  %7575 = vtanh.f32 %v2456_v56  ;;  %v5776_v10 = vmul.f32 -1.442695, %v2682_v1  ;;  %v6680_v21 = vpop.f32.mrb[48].mxu0 }
 0x4fd   :  { %v9042_v20 = vpop.eup %7557  ;;  %7577 = vtanh.f32 %v2455_v16  ;;  %v5775_v41 = vmul.f32 -1.442695, %v2681_v31  ;;  %v6716_v19 = vpop.f32.mrb[40].mxu1  ;;  %v2458_v36 = vadd.f32 %v9015_v15, %v6680_v21 }
 0x4fe   :  { %v7560_v48 = vpop.eup %7559  ;;  %7579 = vpow2.f32 %v5776_v10  ;;  %v2684_v61 = vadd.f32 %v9021_v18, %v6716_v19  ;;  %v2434_v40 = vpop.f32.mrb[49].mxu0 }
 0x4ff   :  { %v2660_v27 = vpop.f32.mrb[41].mxu1  ;;  %v7562_v22 = vpop.eup %7561  ;;  %v2226_v28 = vadd.f32 1.0, %v7560_v48  ;;  %7581 = vpow2.f32 %v5775_v41  ;;  %v2457_v10 = vadd.f32 %v9015_v15, %v2434_v40 }
 0x500   :  { %v2683_v56 = vadd.f32 %v9021_v18, %v2660_v27  ;;  %v7564_v1 = vpop.eup %7563  ;;  %v1959_v23 = vadd.f32 1.0, %v7562_v22  ;;  %7583 = vtanh.f32 %v2458_v36  ;;  %v5778_v16 = vmul.f32 -1.442695, %v2684_v61  ;;  %v6683_v21 = vpop.f32.mrb[50].mxu0 }
 0x501   :  { %v9047_v31 = vpop.eup %7565  ;;  %7585 = vrcp.f32 %v2226_v28  ;;  %v2225_v30 = vadd.f32 1.0, %v7564_v1  ;;  %v6719_v43 = vpop.f32.mrb[42].mxu1  ;;  %v2736_v27 = vmul.f32 %v9004_v9, %v8499_v54  ;;  %v2735_v22 = vmul.f32 %v9008_v53, %v8501_v63 }
 0x502   :  { %v7568_v19 = vpop.eup %7567  ;;  %7587 = vrcp.f32 %v1959_v23  ;;  %v5777_v62 = vmul.f32 -1.442695, %v2683_v56  ;;  %v2444_v25 = vpop.f32.mrb[51].mxu0  ;;  %v2738_v54 = vmul.f32 %v9024_v24, %v8509_v5  ;;  %v2737_v63 = vmul.f32 %v9030_v37, %v8511_v14 }
 0x503   :  { %v2670_v48 = vpop.f32.mrb[43].mxu1  ;;  %v7570_v41 = vpop.eup %7569  ;;  %7589 = vrcp.f32 %v2225_v30  ;;  %v2744_v36 = vmul.f32 %v7568_v19, %v9002_v55  ;;  %v2686_v5 = vadd.f32 %v9021_v18, %v6719_v43 }
 0x504   :  { %v7572_v61 = vpop.eup %7571  ;;  %v2743_v40 = vmul.f32 %v7570_v41, %v9006_v26  ;;  %7591 = vpow2.f32 %v5778_v16  ;;  %v2685_v41 = vadd.f32 %v9021_v18, %v2670_v48  ;;  %v9081_v48 = vld [vmem:[%s9675_s11] ss:$0 sm:$0xff] }
 0x505   :  { %v7574_v28 = vpop.eup %7573  ;;  %v2752_v1 = vadd.f32 %v2744_v36, %v2736_v27  ;;  %v2712_v23 = vadd.f32 1.0, %v7572_v61  ;;  %7593 = vtanh.f32 %v2457_v10  ;;  %v5780_v43 = vmul.f32 -1.442695, %v2686_v5 }
 0x506   :  { %v7576_v56 = vpop.eup %7575  ;;  %v2751_v49 = vadd.f32 %v2743_v40, %v2735_v22  ;;  %v2711_v7 = vadd.f32 1.0, %v7574_v28  ;;  %7595 = vpow2.f32 %v5777_v62  ;;  %v2459_v22 = vadd.f32 %v9015_v15, %v2444_v25 }
 0x507   :  { %v7578_v33 = vpop.eup %7577  ;;  %7597 = vtanh.f32 %v2752_v1  ;;  %v2746_v30 = vmul.f32 %v7576_v56, %v9010_v3  ;;  %v2740_v3 = vmul.f32 %v9036_v58, %v8523_v29  ;;  %v5779_v1 = vmul.f32 -1.442695, %v2685_v41  ;;  %v9091_v56 = vld [vmem:[%s9671_s12] ss:$0 sm:$0xff] }
 0x508   :  { %v7580_v55 = vpop.eup %7579  ;;  %7599 = vrcp.f32 %v2712_v23  ;;  %v2745_v9 = vmul.f32 %v7578_v33, %v9028_v60  ;;  %v2460_v33 = vadd.f32 %v9015_v15, %v6683_v21 }
 0x509   :  { %v7582_v26 = vpop.eup %7581  ;;  %7601 = vtanh.f32 %v2751_v49  ;;  %v2754_v53 = vadd.f32 %v2746_v30, %v2738_v54  ;;  %v2714_v16 = vadd.f32 1.0, %v7580_v55 }
 0x50a   :  { %v7584_v10 = vpop.eup %7583  ;;  %7603 = vrcp.f32 %v2711_v7  ;;  %v2753_v62 = vadd.f32 %v2745_v9, %v2737_v63  ;;  %v2713_v19 = vadd.f32 1.0, %v7582_v26 }
 0x50b   :  { %v9063_v24 = vpop.eup %7585  ;;  %7605 = vtanh.f32 %v2754_v53  ;;  %v2748_v14 = vmul.f32 %v7584_v10, %v9032_v0  ;;  %v2739_v0 = vmul.f32 %v9042_v20, %v8530_v34  ;;  %v9086_v34 = vld [vmem:[%s9675_s11 + $0x1] ss:$0 sm:$0xff] }
 0x50c   :  { %v9068_v37 = vpop.eup %7587  ;;  %7607 = vrcp.f32 %v2714_v16 }
 0x50d   :  { %v9071_v49 = vpop.eup %7589  ;;  %7609 = vtanh.f32 %v2753_v62  ;;  %v2756_v7 = vadd.f32 %v2748_v14, %v2740_v3 }
 0x50e   :  { %v7592_v60 = vpop.eup %7591  ;;  %7611 = vrcp.f32 %v2713_v19 }
 0x50f   :  { %v7594_v27 = vpop.eup %7593  ;;  %7613 = vtanh.f32 %v2756_v7  ;;  %v2716_v29 = vadd.f32 1.0, %v7592_v60 }
 0x510   :  { %v7596_v58 = vpop.eup %7595  ;;  %v2747_v36 = vmul.f32 %v7594_v27, %v9040_v11  ;;  %7615 = vtanh.f32 %v2460_v33 }
 0x511   :  { %v7598_v21 = vpop.eup %7597  ;;  %7617 = vrcp.f32 %v2716_v29  ;;  %v2715_v61 = vadd.f32 1.0, %v7596_v58 }
 0x512   :  { %v7600_v40 = vpop.eup %7599  ;;  %v2755_v28 = vadd.f32 %v2747_v36, %v2739_v0  ;;  %7619 = vpow2.f32 %v5780_v43  ;;  %v2742_v36 = vmul.f32 %v9063_v24, %v8572_v12 }
 0x513   :  { %v7602_v18 = vpop.eup %7601  ;;  %7621 = vrcp.f32 %v2715_v61  ;;  %v2768_v11 = vmul.f32 %v7600_v40, %v7598_v21 }
 0x514   :  { %v7604_v20 = vpop.eup %7603  ;;  %7623 = vtanh.f32 %v2755_v28  ;;  %v6746_v15 = vpop.f32.mrb[52].mxu0 }
 0x515   :  { %v7606_v25 = vpop.eup %7605  ;;  %7625 = vtanh.f32 %v2459_v22  ;;  %v6782_v23 = vpop.f32.mrb[44].mxu1  ;;  %v5075_v54 = vmul.f32 %v9091_v56, %v2768_v11  ;;  %v2767_v30 = vmul.f32 %v7604_v20, %v7602_v18  ;;  %v2999_v63 = vadd.f32 %v6746_v15, %v9081_v48 }
 0x516   :  { %v7608_v55 = vpop.eup %7607  ;;  %7627 = vpow2.f32 %v5779_v1  ;;  %v3281_v9 = vadd.f32 %v6782_v23, %v9086_v34  ;;  %v2952_v26 = vpop.f32.mrb[53].mxu0 }
 0x517   :  { %v3233_v53 = vpop.f32.mrb[45].mxu1  ;;  %v7610_v16 = vpop.eup %7609  ;;  %v2998_v10 = vadd.f32 %v9081_v48, %v2952_v26  ;;  %v5085_v19 = vsel %vm540_vm3, %v5075_v54, 0.0  ;;  %v5074_v5 = vmul.f32 %v9091_v56, %v2767_v30  ;;  %v5791_v14 = vmul.f32 -1.442695, %v2999_v63 }
 0x518   :  { %v3280_v62 = vadd.f32 %v9086_v34, %v3233_v53  ;;  %v7612_v3 = vpop.eup %7611  ;;  %v5815_v33 = vmul.f32 -1.442695, %v3281_v9  ;;  %5086 = vadd.xlane.f32.xlu0 %v5085_v19  ;;  %v2770_v7 = vmul.f32 %v7608_v55, %v7606_v25  ;;  %v6749_v29 = vpop.f32.mrb[54].mxu0 }
 0x519   :  { %v9100_v60 = vpop.eup %7613  ;;  %v5790_v43 = vmul.f32 -1.442695, %v2998_v10  ;;  %v5082_v27 = vsel %vm540_vm3, %v5074_v5, 0.0  ;;  %v2769_v58 = vmul.f32 %v7612_v3, %v7610_v16  ;;  %7629 = vpow2.f32 %v5791_v14  ;;  %v6785_v61 = vpop.f32.mrb[46].mxu1 }
 0x51a   :  { %v5814_v41 = vmul.f32 -1.442695, %v3280_v62  ;;  %v7616_v0 = vpop.eup %7615  ;;  %5083 = vadd.xlane.f32.xlu1 %v5082_v27  ;;  %v3001_v21 = vadd.f32 %v6749_v29, %v9081_v48  ;;  %v2962_v22 = vpop.f32.mrb[55].mxu0  ;;  %v5077_v40 = vmul.f32 %v9091_v56, %v2770_v7  ;;  %7631 = vpow2.f32 %v5815_v33 }
 0x51b   :  { %v7618_v28 = vpop.eup %7617  ;;  %v2750_v1 = vmul.f32 %v7616_v0, %v9047_v31  ;;  %v3283_v18 = vadd.f32 %v6785_v61, %v9086_v34  ;;  %v3000_v11 = vadd.f32 %v9081_v48, %v2962_v22  ;;  %v3243_v20 = vpop.f32.mrb[47].mxu1  ;;  %7633 = vpow2.f32 %v5790_v43 }
 0x51c   :  { %v7620_v25 = vpop.eup %7619  ;;  %v5793_v12 = vmul.f32 -1.442695, %v3001_v21  ;;  %v3282_v24 = vadd.f32 %v9086_v34, %v3243_v20  ;;  %v5091_v15 = vsel %vm540_vm3, %v5077_v40, 0.0  ;;  %7635 = vpow2.f32 %v5814_v41  ;;  %v6752_v31 = vpop.f32.mrb[56].mxu0 }
 0x51d   :  { %v7622_v23 = vpop.eup %7621  ;;  %v2758_v54 = vadd.f32 %v2750_v1, %v2742_v36  ;;  %v2718_v30 = vadd.f32 1.0, %v7620_v25  ;;  %v5817_v55 = vmul.f32 -1.442695, %v3283_v18  ;;  %5092 = vadd.xlane.f32.xlu0 %v5091_v15  ;;  %v6788_v63 = vpop.f32.mrb[48].mxu1  ;;  %v5792_v26 = vmul.f32 -1.442695, %v3000_v11 }
 0x51e   :  { %v7624_v9 = vpop.eup %7623  ;;  %7637 = vpow2.f32 %v5793_v12  ;;  %v3003_v53 = vadd.f32 %v6752_v31, %v9081_v48  ;;  %v2972_v16 = vpop.f32.mrb[57].mxu0  ;;  %v2741_v5 = vmul.f32 %v9071_v49, %v8588_v59  ;;  %v5076_v14 = vmul.f32 %v9091_v56, %v2769_v58 }
 0x51f   :  { %v3253_v10 = vpop.f32.mrb[49].mxu1  ;;  %v7626_v62 = vpop.eup %7625  ;;  %7639 = vtanh.f32 %v2758_v54  ;;  %v5816_v7 = vmul.f32 -1.442695, %v3282_v24  ;;  %v3285_v21 = vadd.f32 %v6788_v63, %v9086_v34  ;;  %v2772_v58 = vmul.f32 %v7618_v28, %v9100_v60 }
 0x520   :  { %v7628_v19 = vpop.eup %7627  ;;  %7641 = vrcp.f32 %v2718_v30  ;;  %v2749_v3 = vmul.f32 %v7626_v62, %v9068_v37  ;;  %v6755_v43 = vpop.f32.mrb[58].mxu0  ;;  %v5795_v27 = vmul.f32 -1.442695, %v3003_v53  ;;  %v5088_v29 = vsel %vm540_vm3, %v5076_v14, 0.0 }
 0x521   :  { %v2717_v33 = vadd.f32 1.0, %v7628_v19  ;;  %7643 = vpow2.f32 %v5817_v55  ;;  %v6791_v0 = vpop.f32.mrb[50].mxu1  ;;  %v2982_v36 = vpop.f32.mrb[59].mxu0  ;;  %5089 = vadd.xlane.f32.xlu0 %v5088_v29  ;;  %v3002_v37 = vadd.f32 %v9081_v48, %v2972_v16  ;;  %v2771_v61 = vmul.f32 %v7624_v9, %v7622_v23 }
 0x522   :  { %v2757_v41 = vadd.f32 %v2749_v3, %v2741_v5  ;;  %7645 = vpow2.f32 %v5792_v26  ;;  %v3263_v59 = vpop.f32.mrb[51].mxu1  ;;  %v3284_v25 = vadd.f32 %v9086_v34, %v3253_v10  ;;  %v5079_v12 = vmul.f32 %v9091_v56, %v2772_v58 }
 0x523   :  { %7647 = vrcp.f32 %v2717_v33  ;;  %v7630_v49 = vpop.eup %7629  ;;  %v5819_v54 = vmul.f32 -1.442695, %v3285_v21  ;;  %v5794_v30 = vmul.f32 -1.442695, %v3002_v37  ;;  %v3005_v60 = vadd.f32 %v6755_v43, %v9081_v48 }
 0x524   :  { %7649 = vtanh.f32 %v2757_v41  ;;  %v7632_v22 = vpop.eup %7631  ;;  %v3031_v40 = vadd.f32 1.0, %v7630_v49  ;;  %v5097_v28 = vsel %vm540_vm3, %v5079_v12, 0.0  ;;  %v5078_v23 = vmul.f32 %v9091_v56, %v2771_v61  ;;  %v9146_v61 = vld [vmem:[%s9675_s11 + $0x3] ss:$0 sm:$0xff] }
 0x525   :  { %7651 = vpow2.f32 %v5816_v7  ;;  %v7634_v1 = vpop.eup %7633  ;;  %v3313_v18 = vadd.f32 1.0, %v7632_v22  ;;  %5098 = vadd.xlane.f32.xlu0 %v5097_v28  ;;  %v5818_v10 = vmul.f32 -1.442695, %v3284_v25  ;;  %v3287_v62 = vadd.f32 %v6791_v0, %v9086_v34 }
 0x526   :  { %7653 = vpow2.f32 %v5795_v27  ;;  %v7636_v11 = vpop.eup %7635  ;;  %v3030_v20 = vadd.f32 1.0, %v7634_v1  ;;  %v5797_v5 = vmul.f32 -1.442695, %v3005_v60  ;;  %v3004_v3 = vadd.f32 %v9081_v48, %v2982_v36 }
 0x527   :  { %7655 = vrcp.f32 %v3031_v40  ;;  %v3312_v15 = vadd.f32 1.0, %v7636_v11  ;;  %v5094_v56 = vsel %vm540_vm3, %v5078_v23, 0.0  ;;  %v3286_v7 = vadd.f32 %v9086_v34, %v3263_v59  ;;  %v9141_v59 = vld [vmem:[%s9675_s11 + $0x2] ss:$0 sm:$0xff] }
 0x528   :  { %v7638_v24 = vpop.eup %7637  ;;  %7657 = vrcp.f32 %v3313_v18  ;;  %v5821_v0 = vmul.f32 -1.442695, %v3287_v62  ;;  %v5796_v21 = vmul.f32 -1.442695, %v3004_v3 }
 0x529   :  { %v7640_v55 = vpop.eup %7639  ;;  %7659 = vrcp.f32 %v3030_v20  ;;  %v3033_v63 = vadd.f32 1.0, %v7638_v24  ;;  %5095 = vadd.xlane.f32.xlu0 %v5094_v56  ;;  %v5820_v36 = vmul.f32 -1.442695, %v3286_v7 }
 0x52a   :  { %v7642_v31 = vpop.eup %7641  ;;  %7661 = vrcp.f32 %v3312_v15 }
 0x52b   :  { %v7644_v9 = vpop.eup %7643  ;;  %v9126_v26 = vmul.f32 %v7642_v31, %v7640_v55  ;;  %7663 = vpow2.f32 %v5819_v54 }
 0x52c   :  { %v7646_v53 = vpop.eup %7645  ;;  %v3315_v16 = vadd.f32 1.0, %v7644_v9  ;;  %7665 = vpow2.f32 %v5794_v30 }
 0x52d   :  { %v7648_v19 = vpop.eup %7647  ;;  %7667 = vrcp.f32 %v3033_v63  ;;  %v3032_v33 = vadd.f32 1.0, %v7646_v53 }
 0x52e   :  { %v7650_v14 = vpop.eup %7649  ;;  %7669 = vrcp.f32 %v3315_v16 }
 0x52f   :  { %v7652_v43 = vpop.eup %7651  ;;  %v9132_v41 = vmul.f32 %v7650_v14, %v7648_v19  ;;  %7671 = vpow2.f32 %v5818_v10 }
 0x530   :  { %v7654_v27 = vpop.eup %7653  ;;  %v3314_v29 = vadd.f32 1.0, %v7652_v43  ;;  %7673 = vpow2.f32 %v5797_v5 }
 0x531   :  { %v9134_v49 = vpop.eup %7655  ;;  %7675 = vrcp.f32 %v3032_v33  ;;  %v3035_v58 = vadd.f32 1.0, %v7654_v27 }
 0x532   :  { %v9136_v37 = vpop.eup %7657  ;;  %7677 = vrcp.f32 %v3314_v29 }
 0x533   :  { %v9148_v22 = vpop.eup %7659  ;;  %7679 = vpow2.f32 %v5821_v0 }
 0x534   :  { %v9150_v40 = vpop.eup %7661  ;;  %7681 = vpow2.f32 %v5796_v21  ;;  %v6818_v1 = vpop.f32.mrb[60].mxu0 }
 0x535   :  { %v6854_v18 = vpop.f32.mrb[52].mxu1  ;;  %v7664_v11 = vpop.eup %7663  ;;  %7683 = vpow2.f32 %v5820_v36  ;;  %v3563_v20 = vadd.f32 %v6818_v1, %v9141_v59 }
 0x536   :  { %v3805_v25 = vadd.f32 %v6854_v18, %v9146_v61  ;;  %v3515_v12 = vpop.f32.mrb[61].mxu0  ;;  %v3757_v24 = vpop.f32.mrb[53].mxu1  ;;  %7685 = vrcp.f32 %v3035_v58  ;;  %v3317_v54 = vadd.f32 1.0, %v7664_v11 }
 0x537   :  { %v7666_v15 = vpop.eup %7665  ;;  %v3804_v30 = vadd.f32 %v9146_v61, %v3757_v24  ;;  %7687 = vtanh.f32 %v3563_v20  ;;  %v3562_v23 = vadd.f32 %v9141_v59, %v3515_v12 }
 0x538   :  { %v9155_v55 = vpop.eup %7667  ;;  %v3034_v60 = vadd.f32 1.0, %v7666_v15  ;;  %v5855_v28 = vmul.f32 -1.442695, %v3805_v25  ;;  %7689 = vrcp.f32 %v3317_v54  ;;  %v6821_v63 = vpop.f32.mrb[62].mxu0 }
 0x539   :  { %v9158_v31 = vpop.eup %7669  ;;  %v6857_v9 = vpop.f32.mrb[54].mxu1  ;;  %v5854_v5 = vmul.f32 -1.442695, %v3804_v30  ;;  %v3565_v14 = vadd.f32 %v6821_v63, %v9141_v59 }
 0x53a   :  { %v7672_v53 = vpop.eup %7671  ;;  %7691 = vrcp.f32 %v3034_v60  ;;  %v3525_v16 = vpop.f32.mrb[63].mxu0  ;;  %v3807_v33 = vadd.f32 %v6857_v9, %v9146_v61 }
 0x53b   :  { %v3767_v10 = vpop.f32.mrb[55].mxu1  ;;  %v7674_v62 = vpop.eup %7673  ;;  %v3316_v19 = vadd.f32 1.0, %v7672_v53  ;;  %7693 = vpow2.f32 %v5855_v28  ;;  %v3564_v24 = vadd.f32 %v9141_v59, %v3525_v16  ;;  %v3861_v53 = vmul.f32 0.0, %v9136_v37 }
 0x53c   :  { %v9160_v3 = vpop.eup %7675  ;;  %v3037_v56 = vadd.f32 1.0, %v7674_v62  ;;  %7695 = vtanh.f32 %v3562_v23  ;;  %v6824_v43 = vpop.f32.mrb[64].mxu0  ;;  %v3806_v0 = vadd.f32 %v9146_v61, %v3767_v10  ;;  %v5857_v20 = vmul.f32 -1.442695, %v3807_v33 }
 0x53d   :  { %v9164_v7 = vpop.eup %7677  ;;  %7697 = vrcp.f32 %v3316_v19  ;;  %v6860_v27 = vpop.f32.mrb[56].mxu1  ;;  %v3860_v37 = vmul.f32 0.0, %v9150_v40 }
 0x53e   :  { %v7680_v29 = vpop.eup %7679  ;;  %7699 = vrcp.f32 %v3037_v56  ;;  %v3535_v21 = vpop.f32.mrb[65].mxu0  ;;  %v5856_v60 = vmul.f32 -1.442695, %v3806_v0  ;;  %v3809_v28 = vadd.f32 %v6860_v27, %v9146_v61 }
 0x53f   :  { %v3777_v36 = vpop.f32.mrb[57].mxu1  ;;  %v7682_v58 = vpop.eup %7681  ;;  %v3319_v1 = vadd.f32 1.0, %v7680_v29  ;;  %7701 = vpow2.f32 %v5854_v5  ;;  %v3567_v5 = vadd.f32 %v6824_v43, %v9141_v59  ;;  %v3566_v43 = vadd.f32 %v9141_v59, %v3535_v21 }
 0x540   :  { %v7684_v18 = vpop.eup %7683  ;;  %v3036_v11 = vadd.f32 1.0, %v7682_v58  ;;  %7703 = vtanh.f32 %v3565_v14  ;;  %v6827_v15 = vpop.f32.mrb[66].mxu0  ;;  %v5859_v33 = vmul.f32 -1.442695, %v3809_v28  ;;  %v3808_v27 = vadd.f32 %v9146_v61, %v3777_v36 }
 0x541   :  { %v9167_v25 = vpop.eup %7685  ;;  %7705 = vrcp.f32 %v3319_v1  ;;  %v3318_v12 = vadd.f32 1.0, %v7684_v18  ;;  %v6863_v54 = vpop.f32.mrb[58].mxu1 }
 0x542   :  { %v7688_v30 = vpop.eup %7687  ;;  %7707 = vrcp.f32 %v3036_v11  ;;  %v3545_v23 = vpop.f32.mrb[67].mxu0  ;;  %v5858_v36 = vmul.f32 -1.442695, %v3808_v27 }
 0x543   :  { %v3787_v63 = vpop.f32.mrb[59].mxu1  ;;  %v9171_v9 = vpop.eup %7689  ;;  %7709 = vrcp.f32 %v3318_v12  ;;  %v3869_v10 = vmul.f32 %v7688_v30, %v9134_v49  ;;  %v3863_v12 = vmul.f32 0.0, %v9158_v31  ;;  %v3569_v30 = vadd.f32 %v6827_v15, %v9141_v59 }
 0x544   :  { %v9175_v62 = vpop.eup %7691  ;;  %7711 = vpow2.f32 %v5857_v20  ;;  %v3811_v20 = vadd.f32 %v6863_v54, %v9146_v61 }
 0x545   :  { %v7694_v16 = vpop.eup %7693  ;;  %v9177_v19 = vadd.f32 %v3869_v10, %v3861_v53  ;;  %7713 = vtanh.f32 %v3564_v24  ;;  %v3810_v53 = vadd.f32 %v9146_v61, %v3787_v63 }
 0x546   :  { %v7696_v56 = vpop.eup %7695  ;;  %v3837_v14 = vadd.f32 1.0, %v7694_v16  ;;  %7715 = vpow2.f32 %v5856_v60  ;;  %v5861_v54 = vmul.f32 -1.442695, %v3811_v20  ;;  %v3862_v16 = vmul.f32 0.0, %v9164_v7 }
 0x547   :  { %v9181_v29 = vpop.eup %7697  ;;  %7717 = vtanh.f32 %v9177_v19  ;;  %v3868_v49 = vmul.f32 %v7696_v56, %v9148_v22  ;;  %v5860_v63 = vmul.f32 -1.442695, %v3810_v53 }
 0x548   :  { %v9186_v0 = vpop.eup %7699  ;;  %7719 = vrcp.f32 %v3837_v14  ;;  %v3568_v14 = vadd.f32 %v9141_v59, %v3545_v23 }
 0x549   :  { %v7702_v58 = vpop.eup %7701  ;;  %v9188_v1 = vadd.f32 %v3868_v49, %v3860_v37  ;;  %7721 = vtanh.f32 %v3567_v5  ;;  %v9214_v37 = vld [vmem:[%s9676_s13] ss:$0 sm:$0xff] }
 0x54a   :  { %v7704_v18 = vpop.eup %7703  ;;  %v3836_v11 = vadd.f32 1.0, %v7702_v58  ;;  %7723 = vpow2.f32 %v5859_v33  ;;  %v3865_v58 = vmul.f32 0.0, %v9171_v9 }
 0x54b   :  { %v9192_v40 = vpop.eup %7705  ;;  %7725 = vtanh.f32 %v9188_v1  ;;  %v3871_v22 = vmul.f32 %v7704_v18, %v9155_v55 }
 0x54c   :  { %v9197_v24 = vpop.eup %7707  ;;  %7727 = vrcp.f32 %v3836_v11 }
 0x54d   :  { %v9200_v21 = vpop.eup %7709  ;;  %v9202_v60 = vadd.f32 %v3871_v22, %v3863_v12  ;;  %7729 = vtanh.f32 %v3566_v43 }
 0x54e   :  { %v7712_v28 = vpop.eup %7711  ;;  %7731 = vpow2.f32 %v5858_v36 }
 0x54f   :  { %v7714_v31 = vpop.eup %7713  ;;  %7733 = vtanh.f32 %v9202_v60  ;;  %v3839_v10 = vadd.f32 1.0, %v7712_v28  ;;  %v3864_v28 = vmul.f32 0.0, %v9181_v29  ;;  %v3867_v29 = vmul.f32 0.0, %v9192_v40 }
 0x550   :  { %v7716_v55 = vpop.eup %7715  ;;  %v3870_v5 = vmul.f32 %v7714_v31, %v9160_v3  ;;  %7735 = vtanh.f32 %v3569_v30 }
 0x551   :  { %v7718_v15 = vpop.eup %7717  ;;  %7737 = vrcp.f32 %v3839_v10  ;;  %v3838_v56 = vadd.f32 1.0, %v7716_v55 }
 0x552   :  { %v7720_v33 = vpop.eup %7719  ;;  %v9209_v27 = vadd.f32 %v3870_v5, %v3862_v16  ;;  %7739 = vpow2.f32 %v5861_v54 }
 0x553   :  { %v7722_v49 = vpop.eup %7721  ;;  %v9216_v7 = vmul.f32 %v7720_v33, %v7718_v15  ;;  %7741 = vrcp.f32 %v3838_v56 }
 0x554   :  { %v7724_v3 = vpop.eup %7723  ;;  %7743 = vtanh.f32 %v9209_v27  ;;  %v3873_v23 = vmul.f32 %v7722_v49, %v9167_v25 }
 0x555   :  { %v7726_v43 = vpop.eup %7725  ;;  %v3841_v18 = vadd.f32 1.0, %v7724_v3  ;;  %7745 = vtanh.f32 %v3568_v14  ;;  %v5107_v11 = vmul.f32 %v9214_v37, %v9216_v7  ;;  %v3866_v3 = vmul.f32 0.0, %v9200_v21 }
 0x556   :  { %v7728_v36 = vpop.eup %7727  ;;  %v9223_v20 = vadd.f32 %v3873_v23, %v3865_v58  ;;  %7747 = vpow2.f32 %v5860_v63 }
 0x557   :  { %v7730_v12 = vpop.eup %7729  ;;  %7749 = vrcp.f32 %v3841_v18  ;;  %v9225_v22 = vmul.f32 %v7728_v36, %v7726_v43  ;;  %v5117_v9 = vsel %vm540_vm3, %v5107_v11, 0.0 }
 0x558   :  { %v7732_v30 = vpop.eup %7731  ;;  %7751 = vtanh.f32 %v9223_v20  ;;  %v3872_v25 = vmul.f32 %v7730_v12, %v9175_v62  ;;  %5118 = vadd.xlane.f32.xlu1 %v5117_v9 }
 0x559   :  { %v7734_v54 = vpop.eup %7733  ;;  %v3840_v53 = vadd.f32 1.0, %v7732_v30  ;;  %6872 = vmatprep.mubr.msk.f32.mxu0 %vm540_vm3, %v9225_v22  ;;  %6908 = vmatprep.mubr.msk.f32.mxu1 %vm540_vm3, %v9225_v22  ;;  %v5106_v31 = vmul.f32 %v9214_v37, %v9225_v22 }
 0x55a   :  { %v7736_v10 = vpop.eup %7735  ;;  %v9237_v55 = vadd.f32 %v3872_v25, %v3864_v28  ;;  %6873 = vmatmul.mubr.msk.f32.vlgmr.msra.gmra.mrb[68].mxu0 %vm540_vm3, %v9216_v7  ;;  %6909 = vmatmul.mubr.msk.f32.vlgmr.msra.gmra.mrb[60].mxu1 %vm540_vm3, %v9216_v7 }
 0x55b   :  { %v7738_v62 = vpop.eup %7737  ;;  %7753 = vrcp.f32 %v3840_v53  ;;  %v3875_v16 = vmul.f32 %v7736_v10, %v9186_v0  ;;  %7199 = vmatpush3.bf16.msra.mxu0 %v8780_v57  ;;  %7211 = vmatpush3.bf16.msra.mxu1 %v8782_v8  ;;  %v5114_v5 = vsel %vm540_vm3, %v5106_v31, 0.0 }
 0x55c   :  { %v7740_v15 = vpop.eup %7739  ;;  %7755 = vtanh.f32 %v9237_v55  ;;  %v9249_v56 = vmul.f32 %v7738_v62, %v7734_v54  ;;  %5115 = vadd.xlane.f32.xlu1 %v5114_v5  ;;  %7213 = vmatprep.subr.bf16.mxu0 %v8822_v2 }
 0x55d   :  { %v7742_v14 = vpop.eup %7741  ;;  %v9252_v33 = vadd.f32 %v3875_v16, %v3867_v29  ;;  %7225 = vmatprep.subr.bf16.mxu1 %v8824_v4  ;;  %v3843_v40 = vadd.f32 1.0, %v7740_v15 }
 0x55e   :  { %v7744_v0 = vpop.eup %7743  ;;  %v5109_v57 = vmul.f32 %v9214_v37, %v9249_v56 }
 0x55f   :  { %v7746_v8 = vpop.eup %7745  ;;  %v9257_v63 = vmul.f32 %v7744_v0, %v7742_v14  ;;  %7757 = vtanh.f32 %v9252_v33 }
 0x560   :  { %v7748_v49 = vpop.eup %7747  ;;  %v3874_v58 = vmul.f32 %v7746_v8, %v9197_v24  ;;  %7759 = vrcp.f32 %v3843_v40  ;;  %v5123_v24 = vsel %vm540_vm3, %v5109_v57, 0.0 }
 0x561   :  { %v7750_v23 = vpop.eup %7749  ;;  %v3842_v43 = vadd.f32 1.0, %v7748_v49  ;;  %6875 = vmatprep.mubr.msk.f32.mxu0 %vm540_vm3, %v9257_v63  ;;  %6911 = vmatprep.mubr.msk.f32.mxu1 %vm540_vm3, %v9257_v63  ;;  %v5108_v21 = vmul.f32 %v9214_v37, %v9257_v63 }
 0x562   :  { %v7752_v18 = vpop.eup %7751  ;;  %v9266_v11 = vadd.f32 %v3874_v58, %v3866_v3  ;;  %6876 = vmatmul.mubr.msk.f32.gmra.mrb[70].mxu0 %vm540_vm3, %v9249_v56  ;;  %6912 = vmatmul.mubr.msk.f32.gmra.mrb[62].mxu1 %vm540_vm3, %v9249_v56 }
 0x563   :  { %7761 = vrcp.f32 %v3842_v43  ;;  %v9275_v36 = vmul.f32 %v7752_v18, %v7750_v23  ;;  %5124 = vadd.xlane.f32.xlu1 %v5123_v24  ;;  %v5120_v30 = vsel %vm540_vm3, %v5108_v21, 0.0 }
 0x564   :  { %7763 = vtanh.f32 %v9266_v11 }
 0x565   :  { %v7754_v12 = vpop.eup %7753  ;;  %v5111_v28 = vmul.f32 %v9214_v37, %v9275_v36 }
 0x566   :  { %v7756_v9 = vpop.eup %7755 }
 0x567   :  { %v3896_v25 = vmul.f32 %v7756_v9, %v7754_v12  ;;  %5121 = vadd.xlane.f32.xlu1 %v5120_v30  ;;  %v5129_v54 = vsel %vm540_vm3, %v5111_v28, 0.0 }
 0x569   :  { %6878 = vmatprep.mubr.msk.f32.mxu0 %vm540_vm3, %v3896_v25  ;;  %6914 = vmatprep.mubr.msk.f32.mxu1 %vm540_vm3, %v3896_v25  ;;  %v5110_v53 = vmul.f32 %v9214_v37, %v3896_v25  ;;  %v7758_v31 = vpop.eup %7757 }
 0x56a   :  { %6879 = vmatmul.mubr.msk.f32.gmra.mrb[72].mxu0 %vm540_vm3, %v9275_v36  ;;  %6915 = vmatmul.mubr.msk.f32.gmra.mrb[64].mxu1 %vm540_vm3, %v9275_v36  ;;  %v7760_v10 = vpop.eup %7759 }
 0x56b   :  { %5130 = vadd.xlane.f32.xlu1 %v5129_v54  ;;  %v5126_v16 = vsel %vm540_vm3, %v5110_v53, 0.0  ;;  %v9292_v15 = vmul.f32 %v7760_v10, %v7758_v31 }
 0x56d   :  { %v7762_v62 = vpop.eup %7761 }
 0x56e   :  { %v7764_v29 = vpop.eup %7763 }
 0x56f   :  { %v9290_v5 = vmul.f32 %v7764_v29, %v7762_v62  ;;  %5127 = vadd.xlane.f32.xlu1 %v5126_v16 }
 0x571   :  { %6881 = vmatprep.mubr.msk.f32.mxu0 %vm540_vm3, %v9290_v5  ;;  %6917 = vmatprep.mubr.msk.f32.mxu1 %vm540_vm3, %v9290_v5 }
 0x572   :  { %6882 = vmatmul.mubr.msk.f32.gmra.mrb[74].mxu0 %vm540_vm3, %v9292_v15  ;;  %6918 = vmatmul.mubr.msk.f32.gmra.mrb[66].mxu1 %vm540_vm3, %v9292_v15 }
 0x573   :  { %6888 = vmatprep.mubr.msk.f32.mxu0 %vm320_vm2, %v8141_v35  ;;  %6924 = vmatprep.mubr.msk.f32.mxu1 %vm320_vm2, %v8141_v35 }
 0x576   :  { %6889 = vmatmul.mubr.msk.f32.vlgmr.msra.gmra.mrb[68].mxu0 %vm320_vm2, %v8143_v38  ;;  %6925 = vmatmul.mubr.msk.f32.vlgmr.msra.gmra.mrb[60].mxu1 %vm320_vm2, %v8143_v38 }
 0x577   :  { %6891 = vmatprep.mubr.msk.f32.mxu0 %vm320_vm2, %v8147_v39  ;;  %6927 = vmatprep.mubr.msk.f32.mxu1 %vm320_vm2, %v8147_v39 }
 0x578   :  { %7215 = vmatpush3.bf16.msra.mxu0 %v8822_v2  ;;  %7227 = vmatpush3.bf16.msra.mxu1 %v8824_v4  ;;  %v7978_v2 = vld [vmem:[%s9665_s0] sm:$0xff]  }
 0x579   :  { %7217 = vmatprep.subr.bf16.mxu0 %v8860_v6  ;;  %7229 = vmatprep.subr.bf16.mxu1 %v8862_v32 }
 0x57a   :  { %6892 = vmatmul.mubr.msk.f32.gmra.mrb[70].mxu0 %vm320_vm2, %v8153_v42  ;;  %6928 = vmatmul.mubr.msk.f32.gmra.mrb[62].mxu1 %vm320_vm2, %v8153_v42 }
 0x57b   :  { %6894 = vmatprep.mubr.msk.f32.mxu0 %vm320_vm2, %v8155_v47  ;;  %6930 = vmatprep.mubr.msk.f32.mxu1 %vm320_vm2, %v8155_v47 }
 0x57c   :  { %7219 = vmatpush3.bf16.msra.mxu0 %v8860_v6  ;;  %7231 = vmatpush3.bf16.msra.mxu1 %v8862_v32 }
 0x57d   :  { %7221 = vmatprep.subr.bf16.mxu0 %v8888_v46  ;;  %7233 = vmatprep.subr.bf16.mxu1 %v8890_v45 }
 0x57e   :  { %6895 = vmatmul.mubr.msk.f32.gmra.mrb[72].mxu0 %vm320_vm2, %v8159_v50  ;;  %6931 = vmatmul.mubr.msk.f32.gmra.mrb[64].mxu1 %vm320_vm2, %v8159_v50 }
 0x57f   :  { %6897 = vmatprep.mubr.msk.f32.mxu0 %vm320_vm2, %v8163_v51  ;;  %6933 = vmatprep.mubr.msk.f32.mxu1 %vm320_vm2, %v8163_v51 }
 0x582   :  { %6898 = vmatmul.mubr.msk.f32.gmra.mrb[74].mxu0 %vm320_vm2, %v8169_v52  ;;  %6934 = vmatmul.mubr.msk.f32.gmra.mrb[66].mxu1 %vm320_vm2, %v8169_v52 }
 0x583   :  { %6944 = vmatprep.mubr.msk.f32.mxu0 %vm540_vm3, %v9225_v22  ;;  %6980 = vmatprep.mubr.msk.f32.mxu1 %vm540_vm3, %v9225_v22 }
 0x586   :  { %6945 = vmatmul.mubr.msk.f32.vlgmr.msra.gmra.mrb[76].mxu0 %vm540_vm3, %v9216_v7  ;;  %6981 = vmatmul.mubr.msk.f32.vlgmr.msra.gmra.mrb[68].mxu1 %vm540_vm3, %v9216_v7 }
 0x587   :  { %6947 = vmatprep.mubr.msk.f32.mxu0 %vm540_vm3, %v9257_v63  ;;  %7223 = vmatpush3.bf16.msra.mxu0 %v8888_v46 }
 0x588   :  { %6983 = vmatprep.mubr.msk.f32.mxu1 %vm540_vm3, %v9257_v63  ;;  %7235 = vmatpush3.bf16.msra.mxu1 %v8890_v45 }
 0x58a   :  { %6948 = vmatmul.mubr.msk.f32.gmra.mrb[78].mxu0 %vm540_vm3, %v9249_v56  ;;  %6984 = vmatmul.mubr.msk.f32.gmra.mrb[70].mxu1 %vm540_vm3, %v9249_v56 }
 0x58b   :  { %6950 = vmatprep.mubr.msk.f32.mxu0 %vm540_vm3, %v3896_v25  ;;  %6986 = vmatprep.mubr.msk.f32.mxu1 %vm540_vm3, %v3896_v25 }
 0x58e   :  { %6951 = vmatmul.mubr.msk.f32.gmra.mrb[80].mxu0 %vm540_vm3, %v9275_v36  ;;  %6987 = vmatmul.mubr.msk.f32.gmra.mrb[72].mxu1 %vm540_vm3, %v9275_v36 }
 0x58f   :  { %6953 = vmatprep.mubr.msk.f32.mxu0 %vm540_vm3, %v9290_v5  ;;  %6989 = vmatprep.mubr.msk.f32.mxu1 %vm540_vm3, %v9290_v5 }
 0x592   :  { %6954 = vmatmul.mubr.msk.f32.gmra.mrb[82].mxu0 %vm540_vm3, %v9292_v15  ;;  %6990 = vmatmul.mubr.msk.f32.gmra.mrb[74].mxu1 %vm540_vm3, %v9292_v15 }
 0x593   :  { %6960 = vmatprep.mubr.msk.f32.mxu0 %vm320_vm2, %v8141_v35  ;;  %6996 = vmatprep.mubr.msk.f32.mxu1 %vm320_vm2, %v8141_v35 }
 0x596   :  { %6961 = vmatmul.mubr.msk.f32.vlgmr.msra.gmra.mrb[76].mxu0 %vm320_vm2, %v8143_v38  ;;  %6997 = vmatmul.mubr.msk.f32.vlgmr.msra.gmra.mrb[68].mxu1 %vm320_vm2, %v8143_v38 }
 0x597   :  { %6963 = vmatprep.mubr.msk.f32.mxu0 %vm320_vm2, %v8147_v39  ;;  %6999 = vmatprep.mubr.msk.f32.mxu1 %vm320_vm2, %v8147_v39 }
 0x59a   :  { %6964 = vmatmul.mubr.msk.f32.gmra.mrb[78].mxu0 %vm320_vm2, %v8153_v42  ;;  %7000 = vmatmul.mubr.msk.f32.gmra.mrb[70].mxu1 %vm320_vm2, %v8153_v42 }
 0x59b   :  { %6966 = vmatprep.mubr.msk.f32.mxu0 %vm320_vm2, %v8155_v47  ;;  %7002 = vmatprep.mubr.msk.f32.mxu1 %vm320_vm2, %v8155_v47 }
 0x59e   :  { %6967 = vmatmul.mubr.msk.f32.gmra.mrb[80].mxu0 %vm320_vm2, %v8159_v50  ;;  %7003 = vmatmul.mubr.msk.f32.gmra.mrb[72].mxu1 %vm320_vm2, %v8159_v50 }
 0x59f   :  { %6969 = vmatprep.mubr.msk.f32.mxu0 %vm320_vm2, %v8163_v51  ;;  %7005 = vmatprep.mubr.msk.f32.mxu1 %vm320_vm2, %v8163_v51 }
 0x5a2   :  { %6970 = vmatmul.mubr.msk.f32.gmra.mrb[82].mxu0 %vm320_vm2, %v8169_v52  ;;  %7006 = vmatmul.mubr.msk.f32.gmra.mrb[74].mxu1 %vm320_vm2, %v8169_v52 }
 0x5a3   :  { %7032 = vmatprep.mubr.msk.bf16.mxu1 %vm232_vm1, %v7978_v2 }
 0x649   :  { %v6890_v4 = vpop.f32.mrb[68].mxu0  ;;  %v6926_v6 = vpop.f32.mrb[60].mxu1 }
 0x64a   :  { %v4135_v32 = vadd.f32 %v6890_v4, %v9081_v48  ;;  %v4401_v46 = vadd.f32 %v6926_v6, %v9086_v34  ;;  %v4095_v45 = vpop.f32.mrb[69].mxu0  ;;  %v4361_v7 = vpop.f32.mrb[61].mxu1 }
 0x64b   :  { %v4134_v22 = vadd.f32 %v9081_v48, %v4095_v45  ;;  %v4400_v56 = vadd.f32 %v9086_v34, %v4361_v7 }
 0x64c   :  { %v5879_v14 = vmul.f32 -1.442695, %v4135_v32  ;;  %v5903_v0 = vmul.f32 -1.442695, %v4401_v46 }
 0x64d   :  { %v5878_v40 = vmul.f32 -1.442695, %v4134_v22  ;;  %v5902_v57 = vmul.f32 -1.442695, %v4400_v56  ;;  %v6893_v8 = vpop.f32.mrb[70].mxu0  ;;  %v6929_v63 = vpop.f32.mrb[62].mxu1 }
 0x64e   :  { %7765 = vpow2.f32 %v5879_v14  ;;  %v4137_v49 = vadd.f32 %v6893_v8, %v9081_v48  ;;  %v4403_v3 = vadd.f32 %v6929_v63, %v9086_v34  ;;  %v4105_v58 = vpop.f32.mrb[71].mxu0  ;;  %v4371_v23 = vpop.f32.mrb[63].mxu1 }
 0x64f   :  { %7767 = vpow2.f32 %v5903_v0  ;;  %v4136_v43 = vadd.f32 %v9081_v48, %v4105_v58  ;;  %v4402_v18 = vadd.f32 %v9086_v34, %v4371_v23 }
 0x650   :  { %7769 = vpow2.f32 %v5878_v40  ;;  %v5881_v24 = vmul.f32 -1.442695, %v4137_v49  ;;  %v5905_v21 = vmul.f32 -1.442695, %v4403_v3 }
 0x651   :  { %7771 = vpow2.f32 %v5902_v57  ;;  %v5880_v36 = vmul.f32 -1.442695, %v4136_v43  ;;  %v5904_v12 = vmul.f32 -1.442695, %v4402_v18  ;;  %v6896_v9 = vpop.f32.mrb[72].mxu0  ;;  %v6932_v30 = vpop.f32.mrb[64].mxu1 }
 0x652   :  { %7773 = vpow2.f32 %v5881_v24  ;;  %v4139_v28 = vadd.f32 %v6896_v9, %v9081_v48  ;;  %v4405_v25 = vadd.f32 %v6932_v30, %v9086_v34  ;;  %v4115_v54 = vpop.f32.mrb[73].mxu0  ;;  %v4381_v53 = vpop.f32.mrb[65].mxu1  ;;  %v7979_v30 = vld [vmem:[%s9675_s11] ss:$0 sm:$0xff] }
 0x653   :  { %7775 = vpow2.f32 %v5905_v21  ;;  %v4138_v31 = vadd.f32 %v9081_v48, %v4115_v54  ;;  %v4404_v10 = vadd.f32 %v9086_v34, %v4381_v53  ;;  %v7980_v53 = vld [vmem:[%s9675_s11 + $0x1] ss:$0 sm:$0xff] }
 0x654   :  { %7777 = vpow2.f32 %v5880_v36  ;;  %v5883_v62 = vmul.f32 -1.442695, %v4139_v28  ;;  %v5907_v29 = vmul.f32 -1.442695, %v4405_v25 }
 0x655   :  { %7779 = vpow2.f32 %v5904_v12  ;;  %v5882_v16 = vmul.f32 -1.442695, %v4138_v31  ;;  %v5906_v2 = vmul.f32 -1.442695, %v4404_v10  ;;  %v6899_v4 = vpop.f32.mrb[74].mxu0  ;;  %v6935_v6 = vpop.f32.mrb[66].mxu1 }
 0x656   :  { %7781 = vpow2.f32 %v5883_v62  ;;  %v4141_v32 = vadd.f32 %v6899_v4, %v9081_v48  ;;  %v4125_v46 = vpop.f32.mrb[75].mxu0  ;;  %v4391_v45 = vpop.f32.mrb[67].mxu1  ;;  %v4407_v36 = vadd.f32 %v6935_v6, %v9086_v34 }
 0x657   :  { %7783 = vpow2.f32 %v5907_v29  ;;  %v4140_v28 = vadd.f32 %v7979_v30, %v4125_v46  ;;  %v4406_v31 = vadd.f32 %v7980_v53, %v4391_v45 }
 0x658   :  { %v7766_v7 = vpop.eup %7765  ;;  %7785 = vpow2.f32 %v5882_v16  ;;  %v5885_v22 = vmul.f32 -1.442695, %v4141_v32  ;;  %v5909_v16 = vmul.f32 -1.442695, %v4407_v36 }
 0x659   :  { %v7768_v56 = vpop.eup %7767  ;;  %v4167_v14 = vadd.f32 1.0, %v7766_v7  ;;  %7787 = vpow2.f32 %v5906_v2  ;;  %v5884_v2 = vmul.f32 -1.442695, %v4140_v28  ;;  %v5908_v6 = vmul.f32 -1.442695, %v4406_v31 }
 0x65a   :  { %v7770_v0 = vpop.eup %7769  ;;  %v4433_v40 = vadd.f32 1.0, %v7768_v56  ;;  %7789 = vpow2.f32 %v5885_v22 }
 0x65b   :  { %v7772_v57 = vpop.eup %7771  ;;  %v4166_v8 = vadd.f32 1.0, %v7770_v0  ;;  %7791 = vrcp.f32 %v4167_v14 }
 0x65c   :  { %v7774_v63 = vpop.eup %7773  ;;  %v4432_v49 = vadd.f32 1.0, %v7772_v57  ;;  %7793 = vrcp.f32 %v4433_v40 }
 0x65d   :  { %v7776_v3 = vpop.eup %7775  ;;  %v4169_v48 = vadd.f32 1.0, %v7774_v63  ;;  %7795 = vrcp.f32 %v4166_v8 }
 0x65e   :  { %v7778_v58 = vpop.eup %7777  ;;  %v4435_v23 = vadd.f32 1.0, %v7776_v3  ;;  %7797 = vrcp.f32 %v4432_v49 }
 0x65f   :  { %v7780_v43 = vpop.eup %7779  ;;  %v4168_v18 = vadd.f32 1.0, %v7778_v58  ;;  %7799 = vrcp.f32 %v4169_v48 }
 0x660   :  { %v7782_v24 = vpop.eup %7781  ;;  %v4434_v21 = vadd.f32 1.0, %v7780_v43  ;;  %7801 = vrcp.f32 %v4435_v23 }
 0x661   :  { %v7784_v12 = vpop.eup %7783  ;;  %v4171_v9 = vadd.f32 1.0, %v7782_v24  ;;  %7803 = vrcp.f32 %v4168_v18 }
 0x662   :  { %v7786_v25 = vpop.eup %7785  ;;  %v4437_v54 = vadd.f32 1.0, %v7784_v12  ;;  %7805 = vrcp.f32 %v4434_v21 }
 0x663   :  { %v7788_v10 = vpop.eup %7787  ;;  %v4170_v62 = vadd.f32 1.0, %v7786_v25  ;;  %7807 = vrcp.f32 %v4171_v9 }
 0x664   :  { %v7790_v34 = vpop.eup %7789  ;;  %v4436_v29 = vadd.f32 1.0, %v7788_v10  ;;  %7809 = vrcp.f32 %v4437_v54 }
 0x665   :  { %v9430_v4 = vpop.eup %7791  ;;  %7811 = vrcp.f32 %v4170_v62  ;;  %v4173_v46 = vadd.f32 1.0, %v7790_v34 }
 0x666   :  { %v9432_v32 = vpop.eup %7793  ;;  %7813 = vrcp.f32 %v4436_v29 }
 0x667   :  { %v9434_v7 = vpop.eup %7795  ;;  %7815 = vpow2.f32 %v5909_v16 }
 0x668   :  { %v9436_v45 = vpop.eup %7797  ;;  %7817 = vpow2.f32 %v5884_v2 }
 0x669   :  { %v6962_v22 = vpop.f32.mrb[76].mxu0  ;;  %v6998_v56 = vpop.f32.mrb[68].mxu1  ;;  %7819 = vpow2.f32 %v5908_v6 }
 0x66a   :  { %v9438_v14 = vpop.eup %7799  ;;  %v4667_v0 = vadd.f32 %v6962_v22, %v9141_v59  ;;  %v4893_v40 = vadd.f32 %v6998_v56, %v9146_v61  ;;  %v4627_v57 = vpop.f32.mrb[77].mxu0  ;;  %7821 = vrcp.f32 %v4173_v46 }
 0x66b   :  { %v4853_v8 = vpop.f32.mrb[69].mxu1  ;;  %v9442_v63 = vpop.eup %7801  ;;  %v4666_v49 = vadd.f32 %v9141_v59, %v4627_v57 }
 0x66c   :  { %v4892_v3 = vadd.f32 %v9146_v61, %v4853_v8  ;;  %v9446_v48 = vpop.eup %7803  ;;  %7823 = vtanh.f32 %v4667_v0  ;;  %v5943_v58 = vmul.f32 -1.442695, %v4893_v40 }
 0x66d   :  { %v9448_v23 = vpop.eup %7805  ;;  %7825 = vtanh.f32 %v4666_v49  ;;  %v6965_v18 = vpop.f32.mrb[78].mxu0 }
 0x66e   :  { %v5942_v43 = vmul.f32 -1.442695, %v4892_v3  ;;  %v7001_v24 = vpop.f32.mrb[70].mxu1  ;;  %v9450_v21 = vpop.eup %7807  ;;  %7827 = vpow2.f32 %v5943_v58  ;;  %v4669_v36 = vadd.f32 %v6965_v18, %v9141_v59 }
 0x66f   :  { %v4895_v12 = vadd.f32 %v7001_v24, %v9146_v61  ;;  %v4637_v9 = vpop.f32.mrb[79].mxu0  ;;  %v4863_v30 = vpop.f32.mrb[71].mxu1 }
 0x670   :  { %v9454_v28 = vpop.eup %7809  ;;  %7829 = vpow2.f32 %v5942_v43  ;;  %v4668_v25 = vadd.f32 %v9141_v59, %v4637_v9  ;;  %v4894_v54 = vadd.f32 %v9146_v61, %v4863_v30 }
 0x671   :  { %v9458_v53 = vpop.eup %7811  ;;  %7831 = vtanh.f32 %v4669_v36  ;;  %v5945_v31 = vmul.f32 -1.442695, %v4895_v12  ;;  %v6968_v34 = vpop.f32.mrb[80].mxu0 }
 0x672   :  { %v9460_v10 = vpop.eup %7813  ;;  %7833 = vtanh.f32 %v4668_v25  ;;  %v5944_v62 = vmul.f32 -1.442695, %v4894_v54  ;;  %v7004_v29 = vpop.f32.mrb[72].mxu1  ;;  %v4671_v2 = vadd.f32 %v6968_v34, %v9141_v59  ;;  %v4949_v54 = vmul.f32 %v9432_v32, %v9177_v19 }
 0x673   :  { %v7816_v16 = vpop.eup %7815  ;;  %7835 = vpow2.f32 %v5945_v31  ;;  %v4897_v6 = vadd.f32 %v7004_v29, %v9146_v61  ;;  %v4647_v46 = vpop.f32.mrb[81].mxu0  ;;  %v4948_v34 = vmul.f32 %v9436_v45, %v9188_v1  ;;  %v4951_v19 = vmul.f32 %v9442_v63, %v9202_v60 }
 0x674   :  { %v4873_v22 = vpop.f32.mrb[73].mxu1  ;;  %v7818_v56 = vpop.eup %7817  ;;  %v4439_v0 = vadd.f32 1.0, %v7816_v16  ;;  %7837 = vpow2.f32 %v5944_v62  ;;  %v4670_v43 = vadd.f32 %v9141_v59, %v4647_v46  ;;  %v4950_v1 = vmul.f32 %v9448_v23, %v9209_v27 }
 0x675   :  { %v4896_v40 = vadd.f32 %v9146_v61, %v4873_v22  ;;  %v7820_v57 = vpop.eup %7819  ;;  %v4172_v8 = vadd.f32 1.0, %v7818_v56  ;;  %7839 = vtanh.f32 %v4671_v2  ;;  %v5947_v49 = vmul.f32 -1.442695, %v4897_v6  ;;  %v6971_v18 = vpop.f32.mrb[82].mxu0 }
 0x676   :  { %v9465_v3 = vpop.eup %7821  ;;  %7841 = vrcp.f32 %v4439_v0  ;;  %v4438_v58 = vadd.f32 1.0, %v7820_v57  ;;  %v7007_v24 = vpop.f32.mrb[74].mxu1 }
 0x677   :  { %v7824_v36 = vpop.eup %7823  ;;  %7843 = vrcp.f32 %v4172_v8  ;;  %v5946_v12 = vmul.f32 -1.442695, %v4896_v40  ;;  %v4657_v9 = vpop.f32.mrb[83].mxu0  ;;  %v4899_v60 = vadd.f32 %v7007_v24, %v9146_v61 }
 0x678   :  { %v4883_v30 = vpop.f32.mrb[75].mxu1  ;;  %v7826_v25 = vpop.eup %7825  ;;  %7845 = vrcp.f32 %v4438_v58  ;;  %v4957_v31 = vmul.f32 %v7824_v36, %v9430_v4 }
 0x679   :  { %v7828_v62 = vpop.eup %7827  ;;  %v4956_v29 = vmul.f32 %v7826_v25, %v9434_v7  ;;  %7847 = vpow2.f32 %v5947_v49  ;;  %v5949_v25 = vmul.f32 -1.442695, %v4899_v60  ;;  %v4898_v24 = vadd.f32 %v9146_v61, %v4883_v30 }
 0x67a   :  { %v7830_v16 = vpop.eup %7829  ;;  %v4965_v2 = vadd.f32 %v4957_v31, %v4949_v54  ;;  %v4925_v6 = vadd.f32 1.0, %v7828_v62  ;;  %7849 = vtanh.f32 %v4670_v43 }
 0x67b   :  { %v7832_v46 = vpop.eup %7831  ;;  %v4964_v22 = vadd.f32 %v4956_v29, %v4948_v34  ;;  %v4924_v56 = vadd.f32 1.0, %v7830_v16  ;;  %7851 = vpow2.f32 %v5946_v12  ;;  %v4672_v34 = vadd.f32 %v9141_v59, %v4657_v9 }
 0x67c   :  { %v7834_v0 = vpop.eup %7833  ;;  %7853 = vtanh.f32 %v4965_v2  ;;  %v4959_v4 = vmul.f32 %v7832_v46, %v9438_v14  ;;  %v4953_v14 = vmul.f32 %v9454_v28, %v9223_v20  ;;  %v5948_v2 = vmul.f32 -1.442695, %v4898_v24 }
 0x67d   :  { %v7836_v32 = vpop.eup %7835  ;;  %7855 = vrcp.f32 %v4925_v6  ;;  %v4958_v7 = vmul.f32 %v7834_v0, %v9446_v48  ;;  %v4673_v48 = vadd.f32 %v6971_v18, %v9141_v59  ;;  %v5112_v9 = vmul.f32 %v9214_v37, %v9290_v5 }
 0x67e   :  { %v7838_v45 = vpop.eup %7837  ;;  %7857 = vtanh.f32 %v4964_v22  ;;  %v4967_v40 = vadd.f32 %v4959_v4, %v4951_v19  ;;  %v4927_v57 = vadd.f32 1.0, %v7836_v32 }
 0x67f   :  { %v7840_v8 = vpop.eup %7839  ;;  %7859 = vrcp.f32 %v4924_v56  ;;  %v4966_v49 = vadd.f32 %v4958_v7, %v4950_v1  ;;  %v4926_v58 = vadd.f32 1.0, %v7838_v45  ;;  %v7981_v1 = vld [vmem:[%s9671_s12] ss:$0 sm:$0xff] }
 0x680   :  { %v7842_v63 = vpop.eup %7841  ;;  %7861 = vtanh.f32 %v4967_v40  ;;  %v4961_v27 = vmul.f32 %v7840_v8, %v9450_v21  ;;  %v4952_v21 = vmul.f32 %v9460_v10, %v9237_v55  ;;  %v5002_v7 = vmul.f32 %v7981_v1, %v8609_v13 }
 0x681   :  { %v9484_v23 = vpop.eup %7843  ;;  %7863 = vrcp.f32 %v4927_v57  ;;  %v4955_v8 = vmul.f32 %v7842_v63, %v9252_v33 }
 0x682   :  { %v9487_v43 = vpop.eup %7845  ;;  %7865 = vtanh.f32 %v4966_v49  ;;  %v4969_v36 = vadd.f32 %v4961_v27, %v4953_v14  ;;  %v5132_v49 = vsel %vm540_vm3, %v5112_v9, 0.0  ;;  %v5022_v13 = vsel %vm540_vm3, %v5002_v7, 0.0  ;;  %v5266_v9 = vld [vmem:[%s9677_s14] sm:$0xff] }
 0x683   :  { %v7848_v12 = vpop.eup %7847  ;;  %7867 = vrcp.f32 %v4926_v58 }
 0x684   :  { %v7850_v54 = vpop.eup %7849  ;;  %7869 = vtanh.f32 %v4969_v36  ;;  %v4929_v20 = vadd.f32 1.0, %v7848_v12  ;;  %v5080_v12 = vmul.f32 %v7981_v1, %v9132_v41 }
 0x685   :  { %v7852_v28 = vpop.eup %7851  ;;  %v4960_v31 = vmul.f32 %v7850_v54, %v9458_v53  ;;  %7871 = vtanh.f32 %v4673_v48 }
 0x686   :  { %v7854_v18 = vpop.eup %7853  ;;  %7873 = vrcp.f32 %v4929_v20  ;;  %v4928_v62 = vadd.f32 1.0, %v7852_v28  ;;  %v4954_v20 = vmul.f32 %v9487_v43, %v9266_v11  ;;  %v5100_v41 = vsel %vm540_vm3, %v5080_v12, 0.0 }
 0x687   :  { %v7856_v29 = vpop.eup %7855  ;;  %v4968_v16 = vadd.f32 %v4960_v31, %v4952_v21  ;;  %7875 = vpow2.f32 %v5949_v25  ;;  %v5003_v31 = vmul.f32 %v7981_v1, %v8612_v17  ;;  %v5081_v43 = vmul.f32 %v7981_v1, %v9126_v26 }
 0x688   :  { %v7858_v61 = vpop.eup %7857  ;;  %7877 = vrcp.f32 %v4928_v62  ;;  %v4981_v30 = vmul.f32 %v7856_v29, %v7854_v18 }
 0x689   :  { %v7860_v6 = vpop.eup %7859  ;;  %7879 = vtanh.f32 %v4968_v16  ;;  %v5025_v11 = vsel %vm540_vm3, %v5003_v31, 0.0  ;;  %v5103_v16 = vsel %vm540_vm3, %v5081_v43, 0.0 }
 0x68a   :  { %v7862_v46 = vpop.eup %7861  ;;  %7881 = vtanh.f32 %v4672_v34  ;;  %v5035_v55 = vmul.f32 %v9214_v37, %v4981_v30  ;;  %v4980_v53 = vmul.f32 %v7860_v6, %v7858_v61 }
 0x68b   :  { %v7864_v10 = vpop.eup %7863  ;;  %7883 = vpow2.f32 %v5948_v2 }
 0x68c   :  { %v7866_v22 = vpop.eup %7865  ;;  %v5045_v56 = vsel %vm540_vm3, %v5035_v55, 0.0  ;;  %v5034_v59 = vmul.f32 %v9214_v37, %v4980_v53  ;;  %v4983_v0 = vmul.f32 %v7864_v10, %v7862_v46 }
 0x68d   :  { %v7868_v19 = vpop.eup %7867  ;;  %5046 = vadd.xlane.f32.xlu1 %v5045_v56  ;;  %v5113_v56 = vmul.f32 %v9214_v37, %v9292_v15 }
 0x68e   :  { %v7870_v4 = vpop.eup %7869  ;;  %v5042_v32 = vsel %vm540_vm3, %v5034_v59, 0.0  ;;  %v4982_v45 = vmul.f32 %v7868_v19, %v7866_v22  ;;  %v5037_v58 = vmul.f32 %v9214_v37, %v4983_v0  ;;  %v5267_v0 = vld [vmem:[%s9677_s14 + $0x8] sm:$0xff] }
 0x68f   :  { %v7872_v40 = vpop.eup %7871  ;;  %5043 = vadd.xlane.f32.xlu0 %v5042_v32  ;;  %v5135_v59 = vsel %vm540_vm3, %v5113_v56, 0.0  ;;  %v7236_v19 = vpack.c.bf16 %v5267_v0, %v5266_v9 }
 0x690   :  { %v7874_v57 = vpop.eup %7873  ;;  %v4963_v5 = vmul.f32 %v7872_v40, %v9465_v3  ;;  %v5051_v33 = vsel %vm540_vm3, %v5037_v58, 0.0  ;;  %v5036_v3 = vmul.f32 %v9214_v37, %v4982_v45 }
 0x691   :  { %v7876_v60 = vpop.eup %7875  ;;  %5133 = vadd.xlane.f32.xlu1 %v5132_v49  ;;  %v4985_v14 = vmul.f32 %v7874_v57, %v7870_v4  ;;  %7237 = vmatprep.subr.bf16.mxu0 %v7236_v19  ;;  %v5009_v4 = vpop.xlane.xlu0 %5008 }
 0x692   :  { %v7878_v27 = vpop.eup %7877  ;;  %v4971_v48 = vadd.f32 %v4963_v5, %v4955_v8  ;;  %v4931_v36 = vadd.f32 1.0, %v7876_v60  ;;  %v5048_v62 = vsel %vm540_vm3, %v5036_v3, 0.0  ;;  %7239 = vmatpush3.bf16.msra.mxu0 %v7236_v19 }
 0x693   :  { %v7880_v25 = vpop.eup %7879  ;;  %5023 = vadd.xlane.f32.xlu0 %v5022_v13  ;;  %v5039_v34 = vmul.f32 %v9214_v37, %v4985_v14 }
 0x694   :  { %v7882_v24 = vpop.eup %7881  ;;  %7885 = vtanh.f32 %v4971_v48  ;;  %v4984_v63 = vmul.f32 %v7880_v25, %v7878_v27 }
 0x695   :  { %v7884_v54 = vpop.eup %7883  ;;  %7887 = vrcp.f32 %v4931_v36  ;;  %v4962_v28 = vmul.f32 %v7882_v24, %v9484_v23  ;;  %5052 = vadd.xlane.f32.xlu1 %v5051_v33  ;;  %v5057_v23 = vsel %vm540_vm3, %v5039_v34, 0.0  ;;  %v5006_v32 = vpop.xlane.xlu0 %5005 }
 0x696   :  { %v4930_v21 = vadd.f32 1.0, %v7884_v54  ;;  %v5038_v29 = vmul.f32 %v9214_v37, %v4984_v63 }
 0x697   :  { %v4970_v18 = vadd.f32 %v4962_v28, %v4954_v20  ;;  %5101 = vadd.xlane.f32.xlu0 %v5100_v41 }
 0x698   :  { %7889 = vrcp.f32 %v4930_v21  ;;  %v5054_v61 = vsel %vm540_vm3, %v5038_v29, 0.0 }
 0x699   :  { %7891 = vtanh.f32 %v4970_v18  ;;  %5049 = vadd.xlane.f32.xlu1 %v5048_v62  ;;  %v5015_v1 = vpop.xlane.xlu0 %5014 }
 0x69b   :  { %5026 = vadd.xlane.f32.xlu0 %v5025_v11 }
 0x69d   :  { %5058 = vadd.xlane.f32.xlu1 %v5057_v23  ;;  %v5012_v7 = vpop.xlane.xlu0 %5011 }
 0x69e   :  { %v7886_v17 = vpop.eup %7885 }
 0x69f   :  { %v7888_v2 = vpop.eup %7887  ;;  %5104 = vadd.xlane.f32.xlu0 %v5103_v16 }
 0x6a0   :  { %v4987_v30 = vmul.f32 %v7888_v2, %v7886_v17 }
 0x6a1   :  { %5055 = vadd.xlane.f32.xlu1 %v5054_v61  ;;  %v5021_v15 = vpop.xlane.xlu0 %5020 }
 0x6a2   :  { %v7890_v6 = vpop.eup %7889  ;;  %v5041_v46 = vmul.f32 %v9214_v37, %v4987_v30 }
 0x6a3   :  { %v7892_v55 = vpop.eup %7891 }
 0x6a4   :  { %v5063_v26 = vsel %vm540_vm3, %v5041_v46, 0.0  ;;  %v4986_v53 = vmul.f32 %v7892_v55, %v7890_v6 }
 0x6a5   :  { %5064 = vadd.xlane.f32.xlu1 %v5063_v26  ;;  %v9538_v40 = vpop.xlane.xlu0 %5017 }
 0x6a6   :  { %v5040_v10 = vmul.f32 %v9214_v37, %v4986_v53  ;;  %v5084_v37 = vpop.xlane.xlu1 %5083 }
 0x6a8   :  { %v5060_v22 = vsel %vm540_vm3, %v5040_v10, 0.0 }
 0x6a9   :  { %5061 = vadd.xlane.f32.xlu1 %v5060_v22  ;;  %v5087_v8 = vpop.xlane.xlu0 %5086 }
 0x6aa   :  { %v5119_v45 = vpop.xlane.xlu1 %5118 }
 0x6ab   :  { %v5139_v12 = vadd.f32 %v5119_v45, %v5087_v8 }
 0x6ad   :  { %5136 = vadd.xlane.f32.xlu1 %v5135_v59  ;;  %v5093_v49 = vpop.xlane.xlu0 %5092 }
 0x6ae   :  { %v5116_v57 = vpop.xlane.xlu1 %5115 }
 0x6af   :  { %v5138_v33 = vadd.f32 %v5116_v57, %v5084_v37 }
 0x6b1   :  { %v5090_v60 = vpop.xlane.xlu0 %5089 }
 0x6b2   :  { %v5125_v5 = vpop.xlane.xlu1 %5124 }
 0x6b3   :  { %v5141_v34 = vadd.f32 %v5125_v5, %v5093_v49 }
 0x6b5   :  { %v5099_v27 = vpop.xlane.xlu0 %5098 }
 0x6b6   :  { %v5122_v58 = vpop.xlane.xlu1 %5121 }
 0x6b7   :  { %v5140_v2 = vadd.f32 %v5122_v58, %v5090_v60 }
 0x6b9   :  { %v5096_v36 = vpop.xlane.xlu0 %5095 }
 0x6ba   :  { %v5131_v14 = vpop.xlane.xlu1 %5130 }
 0x6bb   :  { %v5143_v10 = vadd.f32 %v5131_v14, %v5099_v27 }
 0x6be   :  { %v5128_v48 = vpop.xlane.xlu1 %5127 }
 0x6bf   :  { %v5142_v58 = vadd.f32 %v5128_v48, %v5096_v36 }
 0x71a   :  { %v5047_v13 = vpop.xlane.xlu1 %5046 }
 0x71b   :  { %v5067_v25 = vadd.f32 %v5047_v13, %v5009_v4 }
 0x71c   :  { %v5044_v24 = vpop.xlane.xlu0 %5043 }
 0x71d   :  { %v5147_v3 = vmax.f32 %v5067_v25, %v5139_v12  ;;  %v5066_v63 = vadd.f32 %v5044_v24, %v5006_v32 }
 0x71e   :  { %v9540_v54 = vpop.xlane.xlu1 %5133 }
 0x71f   :  { %v5155_v20 = vsub.f32 %v5067_v25, %v5147_v3  ;;  %v5179_v28 = vsub.f32 %v5139_v12, %v5147_v3  ;;  %v5146_v21 = vmax.f32 %v5066_v63, %v5138_v33 }
 0x720   :  { %v5024_v46 = vpop.xlane.xlu0 %5023 }
 0x721   :  { %v5164_v41 = vmul.f32 1.442695, %v5155_v20  ;;  %v5188_v31 = vmul.f32 1.442695, %v5179_v28  ;;  %v5154_v18 = vsub.f32 %v5066_v63, %v5146_v21  ;;  %v5178_v62 = vsub.f32 %v5138_v33, %v5146_v21 }
 0x722   :  { %v5053_v11 = vpop.xlane.xlu1 %5052 }
 0x723   :  { %7893 = vpow2.f32 %v5164_v41  ;;  %v5162_v43 = vmul.f32 1.442695, %v5154_v18  ;;  %v5186_v23 = vmul.f32 1.442695, %v5178_v62  ;;  %v5069_v29 = vadd.f32 %v5053_v11, %v5015_v1 }
 0x724   :  { %7895 = vpow2.f32 %v5188_v31  ;;  %v5102_v37 = vpop.xlane.xlu0 %5101 }
 0x725   :  { %7897 = vpow2.f32 %v5162_v43  ;;  %v5149_v17 = vmax.f32 %v5069_v29, %v5141_v34 }
 0x726   :  { %7899 = vpow2.f32 %v5186_v23  ;;  %v5050_v16 = vpop.xlane.xlu1 %5049 }
 0x727   :  { %v5157_v61 = vsub.f32 %v5069_v29, %v5149_v17  ;;  %v5181_v30 = vsub.f32 %v5141_v34, %v5149_v17  ;;  %v5068_v6 = vadd.f32 %v5050_v16, %v5012_v7 }
 0x728   :  { %v5027_v25 = vpop.xlane.xlu0 %5026 }
 0x729   :  { %v5168_v55 = vmul.f32 1.442695, %v5157_v61  ;;  %v5192_v26 = vmul.f32 1.442695, %v5181_v30  ;;  %v5148_v53 = vmax.f32 %v5068_v6, %v5140_v2 }
 0x72a   :  { %v5059_v22 = vpop.xlane.xlu1 %5058 }
 0x72b   :  { %7901 = vpow2.f32 %v5168_v55  ;;  %v5156_v56 = vsub.f32 %v5068_v6, %v5148_v53  ;;  %v5180_v59 = vsub.f32 %v5140_v2, %v5148_v53  ;;  %v5071_v9 = vadd.f32 %v5059_v22, %v5021_v15 }
 0x72c   :  { %7903 = vpow2.f32 %v5192_v26  ;;  %v5105_v62 = vpop.xlane.xlu0 %5104 }
 0x72d   :  { %v7894_v0 = vpop.eup %7893  ;;  %v5166_v19 = vmul.f32 1.442695, %v5156_v56  ;;  %v5190_v4 = vmul.f32 1.442695, %v5180_v59  ;;  %v5151_v32 = vmax.f32 %v5071_v9, %v5143_v10 }
 0x72e   :  { %v7896_v1 = vpop.eup %7895  ;;  %v5056_v45 = vpop.xlane.xlu1 %5055 }
 0x72f   :  { %v7898_v57 = vpop.eup %7897  ;;  %v5203_v7 = vadd.f32 %v7896_v1, %v7894_v0  ;;  %7905 = vpow2.f32 %v5166_v19  ;;  %v5159_v8 = vsub.f32 %v5071_v9, %v5151_v32  ;;  %v5183_v5 = vsub.f32 %v5143_v10, %v5151_v32 }
 0x730   :  { %v7900_v49 = vpop.eup %7899  ;;  %7907 = vpow2.f32 %v5190_v4  ;;  %v5070_v60 = vadd.f32 %v5056_v45, %v9538_v40  ;;  %v5144_v40 = vadd.f32 %v9540_v54, %v5102_v37  ;;  %v9696_v4 = vld [vmem:[#allocation2_spill] sm:$0xff] }
 0x731   :  { %7909 = vrcp.f32 %v5203_v7  ;;  %v5202_v15 = vadd.f32 %v7900_v49, %v7898_v57  ;;  %v5172_v14 = vmul.f32 1.442695, %v5159_v8  ;;  %v5196_v27 = vmul.f32 1.442695, %v5183_v5 }
 0x732   :  { %v5150_v13 = vmax.f32 %v5070_v60, %v5142_v58  ;;  %v5065_v12 = vpop.xlane.xlu1 %5064 }
 0x733   :  { %7911 = vrcp.f32 %v5202_v15  ;;  %v5073_v34 = vadd.f32 %v5065_v12, %v5027_v25 }
 0x734   :  { %7913 = vpow2.f32 %v5172_v14  ;;  %v5158_v24 = vsub.f32 %v5070_v60, %v5150_v13  ;;  %v5182_v33 = vsub.f32 %v5142_v58, %v5150_v13 }
 0x735   :  { %v7902_v3 = vpop.eup %7901  ;;  %7915 = vpow2.f32 %v5196_v27  ;;  %v9697_v27 = vld [vmem:[#allocation4_spill] sm:$0xff] }
 0x736   :  { %v7904_v63 = vpop.eup %7903  ;;  %v5170_v20 = vmul.f32 1.442695, %v5158_v24  ;;  %v5194_v28 = vmul.f32 1.442695, %v5182_v33  ;;  %v5062_v48 = vpop.xlane.xlu1 %5061  ;;  %v9698_v24 = vld [vmem:[#allocation3_spill] sm:$0xff] }
 0x737   :  { %v5205_v36 = vadd.f32 %v7904_v63, %v7902_v3  ;;  %v5072_v21 = vadd.f32 %v5062_v48, %v5024_v46 }
 0x738   :  { %7917 = vpow2.f32 %v5170_v20 }
 0x739   :  { %v7906_v41 = vpop.eup %7905  ;;  %7919 = vrcp.f32 %v5205_v36  ;;  %v5152_v31 = vmax.f32 %v5072_v21, %v5144_v40 }
 0x73a   :  { %v7908_v18 = vpop.eup %7907  ;;  %7921 = vpow2.f32 %v5194_v28  ;;  %v5137_v11 = vpop.xlane.xlu1 %5136 }
 0x73b   :  { %v7910_v43 = vpop.eup %7909  ;;  %v5204_v23 = vadd.f32 %v7908_v18, %v7906_v41  ;;  %v5160_v29 = vsub.f32 %v5072_v21, %v5152_v31  ;;  %v5184_v17 = vsub.f32 %v5144_v40, %v5152_v31  ;;  %v5145_v16 = vadd.f32 %v5137_v11, %v5105_v62  ;;  %v9699_v62 = vld [vmem:[#allocation6_spill] sm:$0xff] }
 0x73c   :  { %v5227_v2 = vmul.f32 %v7910_v43, %v7894_v0  ;;  %v5243_v61 = vmul.f32 %v7910_v43, %v7896_v1  ;;  %v9700_v43 = vld [vmem:[#allocation5_spill] sm:$0xff] }
 0x73d   :  { %v7912_v30 = vpop.eup %7911  ;;  %7923 = vrcp.f32 %v5204_v23  ;;  %v5174_v54 = vmul.f32 1.442695, %v5160_v29  ;;  %v5198_v6 = vmul.f32 1.442695, %v5184_v17  ;;  %v5153_v46 = vmax.f32 %v5073_v34, %v5145_v16 }
 0x73e   :  { %v7914_v55 = vpop.eup %7913  ;;  %v5235_v26 = vmul.f32 %v5227_v2, %v8143_v38  ;;  %v5226_v53 = vmul.f32 %v7912_v30, %v7898_v57  ;;  %v5242_v10 = vmul.f32 %v7912_v30, %v7900_v49  ;;  %v5251_v56 = vmul.f32 %v5243_v61, %v8630_v44 }
 0x73f   :  { %v7916_v22 = vpop.eup %7915  ;;  %7925 = vpow2.f32 %v5174_v54  ;;  %v5161_v59 = vsub.f32 %v5073_v34, %v5153_v46  ;;  %v5185_v9 = vsub.f32 %v5145_v16, %v5153_v46  ;;  %v9701_v54 = vld [vmem:[#allocation7_spill] sm:$0xff] }
 0x740   :  { %v5207_v19 = vadd.f32 %v7916_v22, %v7914_v55  ;;  %7927 = vpow2.f32 %v5198_v6  ;;  %v5234_v0 = vmul.f32 %v5226_v53, %v8141_v35  ;;  %v5250_v32 = vmul.f32 %v5242_v10, %v9696_v4  ;;  %v9702_v53 = vld [vmem:[#allocation8_spill] sm:$0xff] }
 0x741   :  { %v5176_v1 = vmul.f32 1.442695, %v5161_v59  ;;  %v5200_v37 = vmul.f32 1.442695, %v5185_v9  ;;  %v5259_v57 = vadd.f32 %v5251_v56, %v5235_v26 }
 0x742   :  { %v7918_v45 = vpop.eup %7917  ;;  %7929 = vrcp.f32 %v5207_v19  ;;  %v5258_v7 = vadd.f32 %v5250_v32, %v5234_v0 }
 0x743   :  { %v7920_v38 = vpop.eup %7919  ;;  %7931 = vpow2.f32 %v5176_v1 }
 0x744   :  { %v7922_v8 = vpop.eup %7921  ;;  %7933 = vpow2.f32 %v5200_v37  ;;  %7012 = vmatprep.mubr.msk.f32.mxu0 %vm320_vm2, %v5258_v7  ;;  %v5229_v5 = vmul.f32 %v7920_v38, %v7902_v3  ;;  %v5245_v49 = vmul.f32 %v7920_v38, %v7904_v63  ;;  %v7982_v7 = vld [vmem:[%s9665_s0 + $0x8] sm:$0xff]   ;;  %v7983_v38 = vld [vmem:[%s9665_s0 + $0x10] sm:$0xff]  }
 0x745   :  { %v5206_v44 = vadd.f32 %v7922_v8, %v7918_v45  ;;  %7013 = vmatmul.mubr.msk.f32.vlgmr.msra.gmra.mrb[84].mxu0 %vm320_vm2, %v5259_v57  ;;  %v7984_v57 = vld [vmem:[%s9665_s0 + $0x18] sm:$0xff]  }
 0x746   :  { %v5237_v14 = vmul.f32 %v5229_v5, %v8153_v42  ;;  %v5253_v13 = vmul.f32 %v5245_v49, %v9697_v27 }
 0x747   :  { %v7924_v35 = vpop.eup %7923  ;;  %7935 = vrcp.f32 %v5206_v44 }
 0x748   :  { %v5228_v58 = vmul.f32 %v7924_v35, %v7906_v41  ;;  %v5244_v60 = vmul.f32 %v7924_v35, %v7908_v18  ;;  %v5261_v3 = vadd.f32 %v5253_v13, %v5237_v14 }
 0x749   :  { %v7926_v15 = vpop.eup %7925 }
 0x74a   :  { %v7928_v12 = vpop.eup %7927  ;;  %v5236_v25 = vmul.f32 %v5228_v58, %v8147_v39  ;;  %v5252_v33 = vmul.f32 %v5244_v60, %v9698_v24 }
 0x74b   :  { %v5208_v20 = vadd.f32 %v7928_v12, %v7926_v15 }
 0x74c   :  { %v7930_v28 = vpop.eup %7929  ;;  %v5260_v48 = vadd.f32 %v5252_v33, %v5236_v25 }
 0x74d   :  { %v7932_v36 = vpop.eup %7931  ;;  %7937 = vrcp.f32 %v5208_v20  ;;  %v5231_v42 = vmul.f32 %v7930_v28, %v7914_v55  ;;  %v5247_v21 = vmul.f32 %v7930_v28, %v7916_v22 }
 0x74e   :  { %v7934_v63 = vpop.eup %7933  ;;  %7015 = vmatprep.mubr.msk.f32.mxu0 %vm320_vm2, %v5260_v48 }
 0x74f   :  { %v5209_v40 = vadd.f32 %v7934_v63, %v7932_v36  ;;  %7016 = vmatmul.mubr.msk.f32.gmra.mrb[86].mxu0 %vm320_vm2, %v5261_v3  ;;  %v5239_v18 = vmul.f32 %v5231_v42, %v8159_v50  ;;  %v5255_v34 = vmul.f32 %v5247_v21, %v9699_v62 }
 0x751   :  { %v7936_v41 = vpop.eup %7935  ;;  %7939 = vrcp.f32 %v5209_v40  ;;  %v5263_v16 = vadd.f32 %v5255_v34, %v5239_v18 }
 0x752   :  { %v5230_v31 = vmul.f32 %v7936_v41, %v7918_v45  ;;  %v5246_v39 = vmul.f32 %v7936_v41, %v7922_v8  ;;  %v5960_v8 = vld [vmem:[%s9678_s15] ss:$0 sm:$0xff] }
 0x754   :  { %v5238_v11 = vmul.f32 %v5230_v31, %v8155_v47  ;;  %v5254_v23 = vmul.f32 %v5246_v39, %v9700_v43 }
 0x756   :  { %v5262_v29 = vadd.f32 %v5254_v23, %v5238_v11 }
 0x757   :  { %v7938_v17 = vpop.eup %7937 }
 0x758   :  { %7018 = vmatprep.mubr.msk.f32.mxu0 %vm320_vm2, %v5262_v29  ;;  %v5232_v2 = vmul.f32 %v7938_v17, %v7926_v15  ;;  %v5248_v61 = vmul.f32 %v7938_v17, %v7928_v12 }
 0x759   :  { %7019 = vmatmul.mubr.msk.f32.gmra.mrb[88].mxu0 %vm320_vm2, %v5263_v16 }
 0x75a   :  { %v5240_v30 = vmul.f32 %v5232_v2, %v8163_v51  ;;  %v5256_v6 = vmul.f32 %v5248_v61, %v9701_v54 }
 0x75b   :  { %v7940_v50 = vpop.eup %7939 }
 0x75c   :  { %v5264_v46 = vadd.f32 %v5256_v6, %v5240_v30  ;;  %v5233_v55 = vmul.f32 %v7940_v50, %v7932_v36  ;;  %v5249_v26 = vmul.f32 %v7940_v50, %v7934_v63 }
 0x75e   :  { %7021 = vmatprep.mubr.msk.f32.mxu0 %vm320_vm2, %v5264_v46  ;;  %v5241_v47 = vmul.f32 %v5233_v55, %v8169_v52  ;;  %v5257_v10 = vmul.f32 %v5249_v26, %v9702_v53 }
 0x760   :  { %v5265_v22 = vadd.f32 %v5257_v10, %v5241_v47 }
 0x762   :  { %7022 = vmatmul.mubr.msk.f32.gmra.mrb[90].mxu0 %vm320_vm2, %v5265_v22 }
 0x818   :  { %v7014_v56 = vpop.f32.mrb[84].mxu0 }
 0x819   :  { %v5358_v59 = vpop.f32.mrb[85].mxu0 }
 0x81a   :  { %v5397_v9 = vpack.c.bf16 %v7014_v56, %v5358_v59 }
 0x81c   :  { %7024 = vmatprep.subr.bf16.mxu1 %v5397_v9 }
 0x81d   :  { %7025 = vmatpush3.bf16.msra.mxu1 %v5397_v9 }
 0x822   :  { %v7017_v51 = vpop.f32.mrb[86].mxu0 }
 0x823   :  { %v5368_v19 = vpop.f32.mrb[87].mxu0 }
 0x824   :  { %v5398_v0 = vpack.c.bf16 %v7017_v51, %v5368_v19 }
 0x826   :  { %7026 = vmatprep.subr.bf16.mxu1 %v5398_v0 }
 0x827   :  { %7027 = vmatpush3.bf16.msra.mxu1 %v5398_v0 }
 0x82c   :  { %v7020_v4 = vpop.f32.mrb[88].mxu0 }
 0x82d   :  { %v5378_v32 = vpop.f32.mrb[89].mxu0 }
 0x82e   :  { %v5399_v1 = vpack.c.bf16 %v7020_v4, %v5378_v32 }
 0x830   :  { %7028 = vmatprep.subr.bf16.mxu1 %v5399_v1 }
 0x831   :  { %7029 = vmatpush3.bf16.msra.mxu1 %v5399_v1 }
 0x835   :  { %v7023_v52 = vpop.f32.mrb[90].mxu0 }
 0x836   :  { %v5388_v37 = vpop.f32.mrb[91].mxu0 }
 0x837   :  { %v5400_v45 = vpack.c.bf16 %v7023_v52, %v5388_v37 }
 0x839   :  { %7030 = vmatprep.subr.bf16.mxu1 %v5400_v45 }
 0x83a   :  { %7031 = vmatpush3.bf16.msra.mxu1 %v5400_v45 }
 0x83d   :  { %7033 = vmatmul.mubr.msk.bf16.vlgmr.msra.gmra.mrb[76].mxu1 %vm232_vm1, %v7982_v7 }
 0x83e   :  { %7036 = vmatprep.mubr.msk.bf16.mxu1 %vm232_vm1, %v7983_v38 }
 0x845   :  { %7037 = vmatmul.mubr.msk.bf16.gmra.mrb[80].mxu1 %vm232_vm1, %v7984_v57 }
 0x910   :  { %v7034_v44 = vpop.f32.mrb[76].mxu1 }
 0x911   :  { %v5451_v5 = vadd.f32 %v7034_v44, %v5960_v8  ;;  %v5442_v49 = vpop.f32.mrb[77].mxu1 }
 0x912   :  { %v7035_v35 = vpop.f32.mrb[78].mxu1  ;;  %v5443_v58 = vadd.f32 %v5960_v8, %v5442_v49 }
 0x913   :  { %v5454_v60 = vadd.f32 %v7035_v35, %v5960_v8  ;;  %v5445_v15 = vpop.f32.mrb[79].mxu1  ;;  %v5480_v14 = vsel %vm5473_vm4, %v5451_v5, -inf }
 0x914   :  { %5481 = vmax.xlane.f32.xlu0 %v5480_v14  ;;  %v5446_v27 = vadd.f32 %v5960_v8, %v5445_v15  ;;  %v5474_v12 = vsel %vm5473_vm4, %v5443_v58, -inf }
 0x915   :  { %v5483_v13 = vsel %vm5473_vm4, %v5454_v60, -inf }
 0x916   :  { %5484 = vmax.xlane.f32.xlu1 %v5483_v13  ;;  %v5477_v33 = vsel %vm5473_vm4, %v5446_v27, -inf }
 0x918   :  { %v7038_v25 = vpop.f32.mrb[80].mxu1  ;;  %5475 = vmax.xlane.f32.xlu0 %v5474_v12 }
 0x919   :  { %v5458_v24 = vpop.f32.mrb[81].mxu1  ;;  %v5467_v36 = vadd.f32 %v7038_v25, %v5960_v8 }
 0x91a   :  { %v5459_v20 = vadd.f32 %v5960_v8, %v5458_v24  ;;  %v7039_v28 = vpop.f32.mrb[82].mxu1  ;;  %5478 = vmax.xlane.f32.xlu1 %v5477_v33 }
 0x91b   :  { %v5461_v48 = vpop.f32.mrb[83].mxu1  ;;  %v5470_v40 = vadd.f32 %v7039_v28, %v5960_v8  ;;  %v5492_v21 = vsel %vm5473_vm4, %v5467_v36, -inf }
 0x91c   :  { %v5462_v3 = vadd.f32 %v5960_v8, %v5461_v48  ;;  %v5486_v63 = vsel %vm5473_vm4, %v5459_v20, -inf }
 0x91d   :  { %5487 = vmax.xlane.f32.xlu0 %v5486_v63  ;;  %v5495_v41 = vsel %vm5473_vm4, %v5470_v40, -inf }
 0x91e   :  { %v5489_v42 = vsel %vm5473_vm4, %v5462_v3, -inf }
 0x91f   :  { %5490 = vmax.xlane.f32.xlu1 %v5489_v42 }
 0x921   :  { %5493 = vmax.xlane.f32.xlu0 %v5492_v21 }
 0x923   :  { %5496 = vmax.xlane.f32.xlu1 %v5495_v41 }
 0x9a1   :  { %v5482_v31 = vpop.xlane.xlu0 %5481 }
 0x9a2   :  { %v9591_v39 = vsub.f32 %v5451_v5, %v5482_v31 }
 0x9a3   :  { %v5485_v18 = vpop.xlane.xlu1 %5484 }
 0x9a4   :  { %v5510_v62 = vmul.f32 1.442695, %v9591_v39  ;;  %v9594_v34 = vsub.f32 %v5454_v60, %v5485_v18 }
 0x9a5   :  { %v5476_v11 = vpop.xlane.xlu0 %5475 }
 0x9a6   :  { %7941 = vpow2.f32 %v5510_v62  ;;  %v5512_v43 = vmul.f32 1.442695, %v9594_v34  ;;  %v9597_v23 = vsub.f32 %v5443_v58, %v5476_v11 }
 0x9a7   :  { %v5479_v29 = vpop.xlane.xlu1 %5478 }
 0x9a8   :  { %7943 = vpow2.f32 %v5512_v43  ;;  %v5506_v17 = vmul.f32 1.442695, %v9597_v23  ;;  %v9600_v16 = vsub.f32 %v5446_v27, %v5479_v29 }
 0x9aa   :  { %7945 = vpow2.f32 %v5506_v17  ;;  %v5508_v2 = vmul.f32 1.442695, %v9600_v16  ;;  %v5488_v61 = vpop.xlane.xlu0 %5487 }
 0x9ab   :  { %v9603_v30 = vsub.f32 %v5459_v20, %v5488_v61 }
 0x9ac   :  { %7947 = vpow2.f32 %v5508_v2  ;;  %v5491_v54 = vpop.xlane.xlu1 %5490 }
 0x9ad   :  { %v5514_v6 = vmul.f32 1.442695, %v9603_v30  ;;  %v9606_v50 = vsub.f32 %v5462_v3, %v5491_v54 }
 0x9ae   :  { %v5494_v46 = vpop.xlane.xlu0 %5493 }
 0x9af   :  { %7949 = vpow2.f32 %v5514_v6  ;;  %v5516_v55 = vmul.f32 1.442695, %v9606_v50  ;;  %v9609_v26 = vsub.f32 %v5467_v36, %v5494_v46 }
 0x9b0   :  { %v7942_v47 = vpop.eup %7941  ;;  %v5497_v53 = vpop.xlane.xlu1 %5496 }
 0x9b1   :  { %7951 = vpow2.f32 %v5516_v55  ;;  %v5518_v10 = vmul.f32 1.442695, %v9609_v26  ;;  %v9612_v22 = vsub.f32 %v5470_v40, %v5497_v53  ;;  %v5528_v56 = vsel %vm5473_vm4, %v7942_v47, 0.0 }
 0x9b2   :  { %v7944_v59 = vpop.eup %7943  ;;  %5529 = vadd.xlane.f32.xlu0 %v5528_v56 }
 0x9b3   :  { %7953 = vpow2.f32 %v5518_v10  ;;  %v5520_v9 = vmul.f32 1.442695, %v9612_v22  ;;  %v5531_v51 = vsel %vm5473_vm4, %v7944_v59, 0.0 }
 0x9b4   :  { %v7946_v19 = vpop.eup %7945  ;;  %5532 = vadd.xlane.f32.xlu1 %v5531_v51 }
 0x9b5   :  { %7955 = vpow2.f32 %v5520_v9  ;;  %v5522_v0 = vsel %vm5473_vm4, %v7946_v19, 0.0 }
 0x9b6   :  { %v7948_v4 = vpop.eup %7947  ;;  %5523 = vadd.xlane.f32.xlu0 %v5522_v0 }
 0x9b7   :  { %v5525_v32 = vsel %vm5473_vm4, %v7948_v4, 0.0 }
 0x9b8   :  { %5526 = vadd.xlane.f32.xlu1 %v5525_v32 }
 0x9b9   :  { %v7950_v1 = vpop.eup %7949 }
 0x9ba   :  { %v5534_v52 = vsel %vm5473_vm4, %v7950_v1, 0.0 }
 0x9bb   :  { %v7952_v37 = vpop.eup %7951  ;;  %5535 = vadd.xlane.f32.xlu0 %v5534_v52 }
 0x9bc   :  { %v5537_v45 = vsel %vm5473_vm4, %v7952_v37, 0.0 }
 0x9bd   :  { %v7954_v7 = vpop.eup %7953  ;;  %5538 = vadd.xlane.f32.xlu1 %v5537_v45 }
 0x9be   :  { %v5540_v38 = vsel %vm5473_vm4, %v7954_v7, 0.0 }
 0x9bf   :  { %v7956_v57 = vpop.eup %7955  ;;  %5541 = vadd.xlane.f32.xlu0 %v5540_v38 }
 0x9c0   :  { %v5543_v8 = vsel %vm5473_vm4, %v7956_v57, 0.0 }
 0x9c1   :  { %5544 = vadd.xlane.f32.xlu1 %v5543_v8 }
 0xa3f   :  { %v5530_v44 = vpop.xlane.xlu0 %5529 }
 0xa40   :  { %7957 = vlog2.f32 %v5530_v44 }
 0xa41   :  { %v5533_v5 = vpop.xlane.xlu1 %5532 }
 0xa42   :  { %7959 = vlog2.f32 %v5533_v5 }
 0xa43   :  { %v5524_v49 = vpop.xlane.xlu0 %5523 }
 0xa44   :  { %7961 = vlog2.f32 %v5524_v49 }
 0xa45   :  { %v5527_v35 = vpop.xlane.xlu1 %5526 }
 0xa46   :  { %7963 = vlog2.f32 %v5527_v35 }
 0xa48   :  { %v5536_v58 = vpop.xlane.xlu0 %5535 }
 0xa49   :  { %7965 = vlog2.f32 %v5536_v58 }
 0xa4a   :  { %v7958_v60 = vpop.eup %7957  ;;  %v5539_v15 = vpop.xlane.xlu1 %5538 }
 0xa4b   :  { %v5551_v14 = vmul.f32 0.6931472, %v7958_v60  ;;  %7967 = vlog2.f32 %v5539_v15 }
 0xa4c   :  { %v7960_v27 = vpop.eup %7959  ;;  %v5542_v13 = vpop.xlane.xlu0 %5541 }
 0xa4d   :  { %v5564_v12 = vsub.f32 %v9591_v39, %v5551_v14  ;;  %v5553_v25 = vmul.f32 0.6931472, %v7960_v27  ;;  %7969 = vlog2.f32 %v5542_v13 }
 0xa4e   :  { %v7962_v24 = vpop.eup %7961  ;;  %v5545_v33 = vpop.xlane.xlu1 %5544 }
 0xa4f   :  { %5572 = vst.msk [vmem:[%s9679_s16 + $0x10] sm:$0xff] %vm5473_vm4, %v5564_v12  ;;  %v5565_v20 = vsub.f32 %v9594_v34, %v5553_v25  ;;  %v5547_v28 = vmul.f32 0.6931472, %v7962_v24  ;;  %7971 = vlog2.f32 %v5545_v33 }
 0xa50   :  { %v7964_v48 = vpop.eup %7963 }
 0xa51   :  { %5573 = vst.msk [vmem:[%s9679_s16 + $0x18] sm:$0xff] %vm5473_vm4, %v5565_v20  ;;  %v5562_v36 = vsub.f32 %v9597_v23, %v5547_v28  ;;  %v5549_v3 = vmul.f32 0.6931472, %v7964_v48 }
 0xa53   :  { %v7966_v63 = vpop.eup %7965  ;;  %5570 = vst.msk [vmem:[%s9679_s16] sm:$0xff] %vm5473_vm4, %v5562_v36  ;;  %v5563_v40 = vsub.f32 %v9600_v16, %v5549_v3 }
 0xa54   :  { %v5555_v42 = vmul.f32 0.6931472, %v7966_v63 }
 0xa55   :  { %v7968_v21 = vpop.eup %7967  ;;  %5571 = vst.msk [vmem:[%s9679_s16 + $0x8] sm:$0xff] %vm5473_vm4, %v5563_v40 }
 0xa56   :  { %v5566_v41 = vsub.f32 %v9603_v30, %v5555_v42  ;;  %v5557_v31 = vmul.f32 0.6931472, %v7968_v21 }
 0xa57   :  { %v7970_v39 = vpop.eup %7969 }
 0xa58   :  { %5574 = vst.msk [vmem:[%s9679_s16 + $0x20] sm:$0xff] %vm5473_vm4, %v5566_v41  ;;  %v5567_v18 = vsub.f32 %v9606_v50, %v5557_v31  ;;  %v5559_v62 = vmul.f32 0.6931472, %v7970_v39 }
 0xa59   :  { %v7972_v34 = vpop.eup %7971 }
 0xa5a   :  { %5575 = vst.msk [vmem:[%s9679_s16 + $0x28] sm:$0xff] %vm5473_vm4, %v5567_v18  ;;  %v5568_v11 = vsub.f32 %v9609_v26, %v5559_v62  ;;  %v5561_v43 = vmul.f32 0.6931472, %v7972_v34 }
 0xa5c   :  { %5576 = vst.msk [vmem:[%s9679_s16 + $0x30] sm:$0xff] %vm5473_vm4, %v5568_v11  ;;  %v5569_v23 = vsub.f32 %v9612_v22, %v5561_v43 }
 0xa5e   :  { %5577 = vst.msk [vmem:[%s9679_s16 + $0x38] sm:$0xff] %vm5473_vm4, %v5569_v23 }

</bundles_post_ra>
